<compile_context>
chip_gen: v7x
topology: tpu7x:2x2x1
jax: 0.10.0
libtpu: 0.0.40
codegen_flags: <defaults>
</compile_context>

<pallas_src>
import functools

import jax
import jax.numpy as jnp
from jax import lax
from jax.experimental import pallas as pl
from jax.experimental.pallas import tpu as pltpu

EPS = 1e-6


def ln_linear_kernel(x_ref, w_ref, bias_ref, o_ref):
    # x_ref:    (N, C)   f32  -- same block every grid step -> stays resident in VMEM
    # w_ref:    (C, TN)  bf16 -- gamma-folded, pre-transposed weight tile (streamed)
    # bias_ref: (1, TN)  f32  -- beta-folded bias tile
    # o_ref:    (N, TN)
    x = x_ref[...].astype(jnp.float32)

    # Affine-free LayerNorm (gamma/beta folded into W/bias at model load). Stats kept
    # in f32 (v5e VPU/EUP have no bf16). Recomputed per Cout tile: a few hundred ns of
    # VPU/XLU/EUP work, fully hidden under the weight-tile DMA; keeping it per-tile keeps
    # the grid axis 'parallel' so v7x's two TensorCores each stream half the weight.
    mean = jnp.mean(x, axis=-1, keepdims=True)
    xc = x - mean
    var = jnp.mean(xc * xc, axis=-1, keepdims=True)
    y = xc * lax.rsqrt(var + EPS)

    # y @ W_tile on the MXU: bf16 operands, f32 accumulation. Weight is already in
    # (Cin, Cout) contraction layout -> no per-tile XLU transpose/relayout risk.
    out = jnp.dot(y.astype(jnp.bfloat16), w_ref[...],
                  preferred_element_type=jnp.float32)
    o_ref[...] = (out + bias_ref[...]).astype(o_ref.dtype)


def prepare_ln_linear_params(gamma, beta, weight, bias):
    """One-time (model-load) parameter transform.

    Folds the LayerNorm affine into the Linear:
        (xhat * gamma + beta) @ W^T + b  ==  xhat @ (W * gamma)^T + (W @ beta + b)
    then pre-transposes and bf16-casts the folded weight so the per-call kernel
    streams it in its MXU-preferred (Cin, Cout) contraction layout.
    """
    gamma = gamma.astype(jnp.float32)
    beta = beta.astype(jnp.float32)
    weight = weight.astype(jnp.float32)     # (Cout, Cin), PyTorch Linear layout
    bias = bias.astype(jnp.float32)         # (Cout,)

    w_folded = weight * gamma[None, :]                    # (Cout, Cin), f32
    b_folded = weight @ beta + bias                       # (Cout,),     f32
    w_t = jnp.asarray(w_folded.T, dtype=jnp.bfloat16)     # (Cin, Cout), bf16
    return w_t, b_folded


def _pick_tn(cout, tn):
    """Pick a Cout tile size; prefer an even number of tiles (4, then 2) so v7x's
    two TensorCores get balanced work; never silently collapse to a single tile
    unless nothing else divides."""
    if cout % tn == 0 and (cout // tn) in (2, 4):
        return tn
    for n_tiles in (4, 2):
        cand = cout // n_tiles
        if cout % n_tiles == 0 and cand % 128 == 0:
            return cand
    if cout % tn == 0:
        return tn
    return cout


@functools.partial(jax.jit, static_argnames=("tn", "out_dtype"))
def layernorm_linear(x, w_t, bias_folded, *, tn=768, out_dtype=None):
    """Fused LayerNorm(eps=1e-6, affine) -> Linear, with the LN affine pre-folded
    into (w_t, bias_folded) by prepare_ln_linear_params.

    x:           (B, H, W, C) channels-last, f32
    w_t:         (C, Cout) bf16 -- gamma-folded, pre-transposed weight
    bias_folded: (Cout,)   f32  -- beta-folded bias
    out_dtype:   None -> x.dtype (matches the PyTorch module); pass jnp.bfloat16 if
                 the downstream op consumes bf16 (halves output HBM writeback).
    """
    B, H, W, C = x.shape
    Cout = w_t.shape[1]
    N = B * H * W
    out_dtype = x.dtype if out_dtype is None else out_dtype

    tn = _pick_tn(Cout, tn)
    n_tiles = Cout // tn

    x2 = x.reshape(N, C)
    bias2 = bias_folded.reshape(1, Cout).astype(jnp.float32)
    # No-op when the caller pre-converted at model load (intended usage).
    w = w_t if w_t.dtype == jnp.bfloat16 else w_t.astype(jnp.bfloat16)

    bytes_accessed = (
        x2.size * 4                                   # activations in
        + w.size * 2                                  # bf16 weight stream (dominant)
        + bias2.size * 4
        + N * Cout * jnp.dtype(out_dtype).itemsize    # output writeback
    )

    out = pl.pallas_call(
        ln_linear_kernel,
        out_shape=jax.ShapeDtypeStruct((N, Cout), out_dtype),
        grid_spec=pltpu.PrefetchScalarGridSpec(
            num_scalar_prefetch=0,
            grid=(n_tiles,),
            in_specs=[
                pl.BlockSpec((N, C), lambda j: (0, 0)),    # x: resident across steps
                pl.BlockSpec((C, tn), lambda j: (0, j)),   # weight tile (streamed/pipelined)
                pl.BlockSpec((1, tn), lambda j: (0, j)),   # bias tile
            ],
            out_specs=pl.BlockSpec((N, tn), lambda j: (0, j)),
        ),
        compiler_params=pltpu.CompilerParams(
            dimension_semantics=("parallel",),   # 4 independent Cout tiles -> 2:2 on v7x
            vmem_limit_bytes=32 << 20,           # footprint ~5 MiB; portable to v7x's 64 MiB
        ),
        cost_estimate=pl.CostEstimate(
            flops=2 * N * C * Cout,
            transcendentals=N * n_tiles,         # LN rsqrt recomputed once per Cout tile
            bytes_accessed=bytes_accessed,
        ),
    )(x2, w, bias2)

    return out.reshape(B, H, W, Cout)


if __name__ == "__main__":
    key = jax.random.PRNGKey(0)
    kx, kw, kb, kg, kbe = jax.random.split(key, 5)

    # Shapes implied by the PyTorch module: x186 = (1, 14, 14, 768), Linear(768 -> 3072).
    B, H, W, C, Cout = 1, 14, 14, 768, 3072

    x = jax.random.normal(kx, (B, H, W, C), dtype=jnp.float32)
    gamma = 1.0 + 0.01 * jax.random.normal(kg, (C,), dtype=jnp.float32)
    beta = 0.01 * jax.random.normal(kbe, (C,), dtype=jnp.float32)
    weight = 0.02 * jax.random.normal(kw, (Cout, C), dtype=jnp.float32)
    bias = 0.01 * jax.random.normal(kb, (Cout,), dtype=jnp.float32)

    # One-time model-load transform: fold gamma/beta into W/bias, transpose, cast bf16.
    w_t, bias_folded = jax.block_until_ready(
        prepare_ln_linear_params(gamma, beta, weight, bias))

    out = layernorm_linear(x, w_t, bias_folded)
    out = jax.block_until_ready(out)

    # Pure-JAX f32 reference of the original module (LayerNorm -> Linear).
    mean = jnp.mean(x, axis=-1, keepdims=True)
    var = jnp.mean((x - mean) ** 2, axis=-1, keepdims=True)
    y_ref = (x - mean) * lax.rsqrt(var + EPS) * gamma + beta
    ref = jnp.einsum("bhwc,oc->bhwo", y_ref, weight,
                     precision=lax.Precision.HIGHEST) + bias

    assert out.shape == (B, H, W, Cout)
    assert out.dtype == x.dtype
    # bf16 weight / bf16 LN-output at the MXU (f32 accumulation) => bf16-level tolerance
    # against the pure-f32 reference.
    assert jnp.allclose(out, ref, atol=2e-2, rtol=2e-2), float(jnp.max(jnp.abs(out - ref)))

    print("KERNEL_OK")
</pallas_src>

<mosaic_0001>
module attributes {stable_mosaic.version = 11 : i64} {
  func.func @ln_linear_kernel(%arg0: i32, %arg1: memref<196x768xf32, #tpu.memory_space<vmem>>, %arg2: memref<768x768xbf16, #tpu.memory_space<vmem>>, %arg3: memref<1x768xf32, #tpu.memory_space<vmem>>, %arg4: memref<196x768xf32, #tpu.memory_space<vmem>>) attributes {dimension_semantics = [#tpu.dimension_semantics<parallel>], iteration_bounds = array<i64: 4>, scalar_prefetch = 0 : i64, scratch_operands = 0 : i64, tpu.core_type = #tpu.core_type<tc>, window_params = [{pipeline_mode = #tpu.pipeline_mode<synchronous>, transform_indices = @transform_0, window_bounds = array<i64: 196, 768>}, {transform_indices = @transform_1, window_bounds = array<i64: 768, 768>}, {transform_indices = @transform_2, window_bounds = array<i64: 1, 768>}, {transform_indices = @transform_3, window_bounds = array<i64: 196, 768>}]} {
    %c0 = arith.constant 0 : index
    %c0_0 = arith.constant 0 : index
    %0 = vector.load %arg1[%c0, %c0_0] : memref<196x768xf32, #tpu.memory_space<vmem>>, vector<196x768xf32>
    %cst = arith.constant dense<0.000000e+00> : vector<196xf32>
    %1 = vector.multi_reduction <add>, %0, %cst [1] : vector<196x768xf32> to vector<196xf32>
    %2 = vector.shape_cast %1 : vector<196xf32> to vector<196x1xf32>
    %cst_1 = arith.constant 7.680000e+02 : f32
    %3 = vector.broadcast %cst_1 : f32 to vector<196x1xf32>
    %4 = arith.divf %2, %3 : vector<196x1xf32>
    %5 = vector.broadcast %4 : vector<196x1xf32> to vector<196x768xf32>
    %6 = arith.subf %0, %5 : vector<196x768xf32>
    %7 = arith.mulf %6, %6 : vector<196x768xf32>
    %cst_2 = arith.constant dense<0.000000e+00> : vector<196xf32>
    %8 = vector.multi_reduction <add>, %7, %cst_2 [1] : vector<196x768xf32> to vector<196xf32>
    %9 = vector.shape_cast %8 : vector<196xf32> to vector<196x1xf32>
    %cst_3 = arith.constant 7.680000e+02 : f32
    %10 = vector.broadcast %cst_3 : f32 to vector<196x1xf32>
    %11 = arith.divf %9, %10 : vector<196x1xf32>
    %cst_4 = arith.constant 9.99999997E-7 : f32
    %12 = vector.broadcast %cst_4 : f32 to vector<196x1xf32>
    %13 = arith.addf %11, %12 : vector<196x1xf32>
    %14 = math.rsqrt %13 : vector<196x1xf32>
    %15 = vector.broadcast %14 : vector<196x1xf32> to vector<196x768xf32>
    %16 = arith.mulf %6, %15 : vector<196x768xf32>
    %17 = arith.truncf %16 : vector<196x768xf32> to vector<196x768xbf16>
    %c0_5 = arith.constant 0 : index
    %c0_6 = arith.constant 0 : index
    %18 = vector.load %arg2[%c0_5, %c0_6] : memref<768x768xbf16, #tpu.memory_space<vmem>>, vector<768x768xbf16>
    %cst_7 = arith.constant dense<0.000000e+00> : vector<196x768xf32>
    %19 = tpu.matmul %17, %18, %cst_7 {dimension_numbers = #tpu.dot_dimension_numbers<[1], [0], [0], [1], [0, 0, 1, 1], [], []>} : vector<196x768xbf16>, vector<768x768xbf16>, vector<196x768xf32> -> vector<196x768xf32>
    %c0_8 = arith.constant 0 : index
    %c0_9 = arith.constant 0 : index
    %20 = vector.load %arg3[%c0_8, %c0_9] : memref<1x768xf32, #tpu.memory_space<vmem>>, vector<1x768xf32>
    %21 = vector.broadcast %20 : vector<1x768xf32> to vector<196x768xf32>
    %22 = arith.addf %19, %21 : vector<196x768xf32>
    %c0_10 = arith.constant 0 : index
    %c0_11 = arith.constant 0 : index
    %23 = vector.load %arg4[%c0_10, %c0_11] : memref<196x768xf32, #tpu.memory_space<vmem>>, vector<196x768xf32>
    tpu.vector_store %arg4[%c0_10, %c0_11], %22 {strides = array<i32>} : memref<196x768xf32, #tpu.memory_space<vmem>>, vector<196x768xf32>,
    return
  }
  func.func @transform_0(%arg0: i32) -> (i32, i32) {
    %c0_i32 = arith.constant 0 : i32
    %c0_i32_0 = arith.constant 0 : i32
    %c0_i32_1 = arith.constant 0 : i32
    return %c0_i32, %c0_i32_0 : i32, i32
  }
  func.func @transform_1(%arg0: i32) -> (i32, i32) {
    %c0_i32 = arith.constant 0 : i32
    %c0_i32_0 = arith.constant 0 : i32
    return %c0_i32, %arg0 : i32, i32
  }
  func.func @transform_2(%arg0: i32) -> (i32, i32) {
    %c0_i32 = arith.constant 0 : i32
    %c0_i32_0 = arith.constant 0 : i32
    return %c0_i32, %arg0 : i32, i32
  }
  func.func @transform_3(%arg0: i32) -> (i32, i32) {
    %c0_i32 = arith.constant 0 : i32
    %c0_i32_0 = arith.constant 0 : i32
    return %c0_i32, %arg0 : i32, i32
  }
}

</mosaic_0001>

<bundles_post_ra>
// kernel: layernorm_linear.1
= control target key start
LH: loop header
LB: loop body
LE: loop exit
PB: predicated region body
PF: predicated region fallthrough
CT: control target
= control target key end

     0   :  { %8 = vsyncpa [#allocation3], 0  ;;  %s10151_s0 = inlined_call_operand.vmem [shape: f32[196,768], index: 0, kind: input, shape index: {}]   ;;  %s10152_s1 = inlined_call_operand.hbm [shape: bf16[768,3072], index: 1, kind: input, shape index: {}]   ;;  %s10153_s2 = inlined_call_operand.vmem [shape: f32[1,3072], index: 2, kind: input, shape index: {}]   ;;  %s10154_s3 = inlined_call_operand.vmem [shape: f32[196,3072], index: 3, kind: output, shape index: {}]  }
   0x1   :  { %10 = vsyncpa [#allocation3 + $0x1], 0  ;;  %s6659_s12 = smov 0   ;;  %s6661_s13 = smov 0  }
   0x2   :  { %s6663_s14 = smov 0   ;;  %s6665_s15 = smov 0  }
   0x3 LB: > { %s6678_s16 = sadd.s32 4294967295, %s6633_s15   ;;  %s6681_s17 = sadd.s32 1, %s6633_s15   ;;  %s6633_s15 = sphi %s6665_s15, %s10726_s15   ;;  %s6629_s14 = sphi %s6663_s14, %s10725_s14   ;;  %s6625_s13 = sphi %s6661_s13, %s10724_s13   ;;  %s6621_s12 = sphi %s6659_s12, %s10723_s12  }
   0x4   : > { %s41_s18 = ssub.s32 %s6633_s15, %s6681_s17  ;;  %s44_s19 = sadd.s32 1, %s6629_s14 }
   0x5   : > { %p42_p0 = scmp.eq.s32.totalorder %s41_s18, 0  ;;  %p51_p1 = scmp.ne.s32.totalorder %s6629_s14, %s6625_s13 }
   0x6   : > { %p52_p2 = scmp.eq.s32.totalorder %s6633_s15, 0  ;;  %p57_p3 = scmp.ne.s32.totalorder %s6625_s13, %s6621_s12 }
   0x7   : > { %s6691_s20 = scalar_select %p42_p0, %s6629_s14, %s44_s19  }
   0x8   : > { %p53_p4 = por %p52_p2, %p51_p1  ;;  %p58_p5 = scmp.eq.s32.totalorder %s6678_s16, 0 }
   0x9   : > { %p107_p6 = scmp.eq.s32.totalorder %s6678_s16, 3  ;;  %p5900_p8 = scmp.lt.s32.totalorder %s6633_s15, 4 }
   0xa   : > { %p6695_p7 = por %p58_p5, %p57_p3  ;;  %s136_s23 = sand.u32 1, %s6629_s14  }
   0xb   : > { %p6700_p9 = por %p107_p6, %p51_p1  ;;  %s5891_s24 = smul.u32 2304, %s136_s23 }
   0xc   : > { %s5399_s25 = smul.u32 384, %s6633_s15  ;;  %p6706_p10 = pnand %p5900_p8, %p53_p4 }
   0xd   : > { %s10349_s22 = scalar_select %p6700_p9, 1, 0 }
   0xe   : > { %s6713_s29 = scalar_lea.hbm %s10152_s1, %s5399_s25  ;;  %s140_s30 = scalar_lea.vmem [#allocation2], %s5891_s24 }
   0xf   : > { %s147_s4 = sshll.u32 %s140_s30, 4  ;;  %s6717_s5 = scalar_lea.sflag [#allocation3], %s136_s23  ;;  %s6715_s4 = int_to_ptr.vmem [resolvable:$true] %s147_s4 }
  0x10   : > { %s6569_s6 = scalar_lea.hbm %s6713_s29, 36864  ;;  %p6571_p12 = pneg %p6706_p10 }
  0x11   : > { %p6570_p11 = scmp.ne.s32.totalorder %s6713_s29, %s6569_s6  ;;  %s6574_s9 = scalar_lea.hbm %s10152_s1, 147456 }
  0x12   : > { %p6575_p1 = scmp.lt.u32.totalorder %s6713_s29, %s10152_s1  ;;  %p6576_p2 = scmp.lt.u32.totalorder %s6574_s9, %s6569_s6 }
  0x13   : > { %p6572_p13 = pnand %p6571_p12, %p6570_p11  ;;  %p6578_p4 = scmp.lt.u32.totalorder %s6569_s6, %s6713_s29 }
  0x14   : > { %p6577_p3 = por %p6576_p2, %p6575_p1 }
  0x15   : > { %p6573_p0 = pneg %p6572_p13 }
  0x16   : > { %p6579_p5 = por %p6578_p4, %p6577_p3 }
  0x18   : > { %p6580_p6 = pnand %p6579_p5, %p6573_p0 }
  0x1a   : > { %6583 = shalt.err (!%p6580_p6)
}
  0x1b   : > { %s6584_s12 = scalar_lea.vmem %s6715_s4, 36864  ;;  %s6635_s18 = smov [#allocation2]  }
  0x1c   : > { %p6585_p8 = scmp.ne.s32.totalorder %s6715_s4, %s6584_s12  ;;  %s6589_s19 = sshll.u32 %s6635_s18, 4  ;;  %s6590_s19 = int_to_ptr.vmem [resolvable:$false] %s6589_s19 }
  0x1d   : > { %s6591_s23 = scalar_lea.vmem %s6590_s19, 73728  ;;  %p6592_p9 = scmp.lt.s32.totalorder %s6715_s4, %s6590_s19 }
  0x1e   : > { %p6587_p11 = pnand %p6585_p8, %p6571_p12  ;;  %p6593_p1 = scmp.lt.s32.totalorder %s6591_s23, %s6584_s12 }
  0x20   : > { %p6588_p13 = pneg %p6587_p11  ;;  %p6594_p2 = por %p6593_p1, %p6592_p9 }
  0x22   : > { %p6595_p3 = pnand %p6594_p2, %p6588_p13 }
  0x24   : > { %6598 = shalt.err (!%p6595_p3)
}
  0x25   : > { %s6636_s24 = smov 1536   ;;  %s6637_s25 = smov 384  }
  0x26   : > { %s6638_s27 = smov 24   ;;  %p5107_p12 = scmp.ge.s32.totalorder %s6633_s15, 1 }
  0x27   : > { %5899 = dma.hbm_to_vmem [thread:$0]  (!%p6706_p10), %s6713_s29, 36864, %s6715_s4, %s6717_s5, %s6636_s24, %s6637_s25, %s6638_s27  }
  0x28   : > { %p163_p0 = scmp.lt.s32.totalorder %s6633_s15, 5 }
  0x2a   : > { %p164_p4 = pnand %p5107_p12, %p163_p0 }
  0x2c   : > { %167 = sbr.rel (%p164_p4) target bundleno = 1197 (0x4ad), region = 32 }
  0x33   : > { %s6748_s28 = sand.u32 1, %s6625_s13  }
  0x34   : > { %s5892_s30 = smul.u32 2304, %s6748_s28  ;;  %s170_s6 = scalar_lea.sflag [#allocation3], %s6748_s28 }
  0x36   : > { %s6752_s7 = scalar_lea.vmem [#allocation2], %s5892_s30 }
  0x37   : > { %6616 = dma.done.wait (%p6695_p7), %s170_s6, 36864  }
  0x38   : > { %6618 = vsyncadd (%p6695_p7), %s170_s6, 4294930432  ;;  %v206_v0 = vld [vmem:[%s10151_s0] sm:$0xff]  ;;  %v207_v1 = vld [vmem:[%s10151_s0 + $0x8] sm:$0xff]  ;;  %vm524_vm0 = vcmask 1043456   ;;  %s200_s18 = smul.u32 6, %s6678_s16  ;;  %p10722_p9 = scmp.ne.s32.totalorder %s10349_s22, 0 }
  0x39   : > { %v208_v2 = vld [vmem:[%s10151_s0 + $0x10] sm:$0xff]  ;;  %v209_v3 = vld [vmem:[%s10151_s0 + $0x18] sm:$0xff]  ;;  %v356_v4 = vadd.f32 %v207_v1, %v206_v0  ;;  %v218_v5 = vld [vmem:[%s10151_s0 + $0x60] sm:$0xff]  ;;  %s5893_s25 = smul.u32 1200, %s6748_s28 }
  0x3a   : > { %v219_v6 = vld [vmem:[%s10151_s0 + $0x68] sm:$0xff]  ;;  %v220_v7 = vld [vmem:[%s10151_s0 + $0x70] sm:$0xff]  ;;  %v210_v8 = vld [vmem:[%s10151_s0 + $0x20] sm:$0xff]  ;;  %p201_p7 = scmp.lt.s32.totalorder %s200_s18, 23 }
  0x3b   : > { %v357_v9 = vadd.f32 %v356_v4, %v208_v2  ;;  %v221_v10 = vld [vmem:[%s10151_s0 + $0x78] sm:$0xff]  ;;  %v370_v11 = vadd.f32 %v219_v6, %v218_v5  ;;  %v212_v12 = vld [vmem:[%s10151_s0 + $0x30] sm:$0xff]  ;;  %v214_v14 = vld [vmem:[%s10151_s0 + $0x40] sm:$0xff]  ;;  %s9306_s28 = scalar_lea.vmem [#allocation4], %s5893_s25 }
  0x3c   : > { %v213_v13 = vld [vmem:[%s10151_s0 + $0x38] sm:$0xff]  ;;  %v211_v15 = vld [vmem:[%s10151_s0 + $0x28] sm:$0xff]  ;;  %v222_v17 = vld [vmem:[%s10151_s0 + $0x80] sm:$0xff]  ;;  %s10728_s18 = smov (!%p201_p7, %s200_s18), 23 }
  0x3d   : > { %v358_v16 = vadd.f32 %v357_v9, %v209_v3  ;;  %v371_v18 = vadd.f32 %v370_v11, %v220_v7  ;;  %v215_v19 = vld [vmem:[%s10151_s0 + $0x48] sm:$0xff]  ;;  %v363_v20 = vadd.f32 %v213_v13, %v212_v12  ;;  %v224_v21 = vld [vmem:[%s10151_s0 + $0x90] sm:$0xff]  ;;  %v225_v22 = vld [vmem:[%s10151_s0 + $0x98] sm:$0xff]  ;;  %s9268_s24 = scalar_lea.vmem %s10153_s2, %s10728_s18 }
  0x3e   : > { %v226_v23 = vld [vmem:[%s10151_s0 + $0xa0] sm:$0xff]  ;;  %v223_v25 = vld [vmem:[%s10151_s0 + $0x88] sm:$0xff]  ;;  %v216_v27 = vld [vmem:[%s10151_s0 + $0x50] sm:$0xff]  ;;  %v377_v29 = vadd.f32 %v225_v22, %v224_v21 }
  0x3f   : > { %v359_v24 = vadd.f32 %v358_v16, %v210_v8  ;;  %v372_v26 = vadd.f32 %v371_v18, %v221_v10  ;;  %v364_v28 = vadd.f32 %v363_v20, %v214_v14  ;;  %v227_v30 = vld [vmem:[%s10151_s0 + $0xa8] sm:$0xff]  ;;  %v236_v31 = vld [vmem:[%s10151_s0 + $0xf0] sm:$0xff]  ;;  %v237_v32 = vld [vmem:[%s10151_s0 + $0xf8] sm:$0xff] }
  0x40   : > { %v217_v35 = vld [vmem:[%s10151_s0 + $0x58] sm:$0xff]  ;;  %v228_v37 = vld [vmem:[%s10151_s0 + $0xb0] sm:$0xff]  ;;  %v378_v38 = vadd.f32 %v377_v29, %v226_v23  ;;  %v238_v39 = vld [vmem:[%s10151_s0 + $0x100] sm:$0xff]  ;;  %v391_v41 = vadd.f32 %v237_v32, %v236_v31 }
  0x41   : > { %v360_v33 = vadd.f32 %v359_v24, %v211_v15  ;;  %v373_v34 = vadd.f32 %v372_v26, %v222_v17  ;;  %v365_v36 = vadd.f32 %v364_v28, %v215_v19  ;;  %v229_v40 = vld [vmem:[%s10151_s0 + $0xb8] sm:$0xff]  ;;  %v230_v42 = vld [vmem:[%s10151_s0 + $0xc0] sm:$0xff]  ;;  %v231_v43 = vld [vmem:[%s10151_s0 + $0xc8] sm:$0xff] }
  0x42   : > { %v232_v44 = vld [vmem:[%s10151_s0 + $0xd0] sm:$0xff]  ;;  %v379_v47 = vadd.f32 %v378_v38, %v227_v30  ;;  %v239_v48 = vld [vmem:[%s10151_s0 + $0x108] sm:$0xff]  ;;  %v233_v50 = vld [vmem:[%s10151_s0 + $0xd8] sm:$0xff]  ;;  %v384_v51 = vadd.f32 %v231_v43, %v230_v42  ;;  %v392_v52 = vadd.f32 %v391_v41, %v238_v39 }
  0x43   : > { %361 = vadd.xlane.f32.xlu0 %v360_v33  ;;  %v374_v45 = vadd.f32 %v373_v34, %v223_v25  ;;  %v366_v46 = vadd.f32 %v365_v36, %v216_v27  ;;  %v240_v49 = vld [vmem:[%s10151_s0 + $0x110] sm:$0xff]  ;;  %v249_v54 = vld [vmem:[%s10151_s0 + $0x158] sm:$0xff]  ;;  %v250_v55 = vld [vmem:[%s10151_s0 + $0x160] sm:$0xff] }
  0x44   : > { %v248_v53 = vld [vmem:[%s10151_s0 + $0x150] sm:$0xff]  ;;  %v380_v57 = vadd.f32 %v379_v47, %v228_v37  ;;  %v241_v58 = vld [vmem:[%s10151_s0 + $0x118] sm:$0xff]  ;;  %v234_v59 = vld [vmem:[%s10151_s0 + $0xe0] sm:$0xff]  ;;  %v385_v60 = vadd.f32 %v384_v51, %v232_v44  ;;  %v393_v63 = vadd.f32 %v392_v52, %v239_v48 }
  0x45   : > { %375 = vadd.xlane.f32.xlu1 %v374_v45  ;;  %v367_v56 = vadd.f32 %v366_v46, %v217_v35  ;;  %v251_v61 = vld [vmem:[%s10151_s0 + $0x168] sm:$0xff]  ;;  %v405_v62 = vadd.f32 %v249_v54, %v248_v53  ;;  %v242_v0 = vld [vmem:[%s10151_s0 + $0x120] sm:$0xff]  ;;  %v244_v2 = vld [vmem:[%s10151_s0 + $0x130] sm:$0xff] }
  0x46   : > { %v243_v1 = vld [vmem:[%s10151_s0 + $0x128] sm:$0xff]  ;;  %v381_v3 = vadd.f32 %v380_v57, %v229_v40  ;;  %v386_v5 = vadd.f32 %v385_v60, %v233_v50  ;;  %v252_v6 = vld [vmem:[%s10151_s0 + $0x170] sm:$0xff]  ;;  %v245_v8 = vld [vmem:[%s10151_s0 + $0x138] sm:$0xff]  ;;  %v394_v10 = vadd.f32 %v393_v63, %v240_v49 }
  0x47   : > { %368 = vadd.xlane.f32.xlu0 %v367_v56  ;;  %v235_v4 = vld [vmem:[%s10151_s0 + $0xe8] sm:$0xff]  ;;  %v406_v7 = vadd.f32 %v405_v62, %v250_v55  ;;  %v398_v9 = vadd.f32 %v243_v1, %v242_v0  ;;  %v260_v11 = vld [vmem:[%s10151_s0 + $0x1b0] sm:$0xff]  ;;  %v261_v12 = vld [vmem:[%s10151_s0 + $0x1b8] sm:$0xff] }
  0x48   : > { %v262_v13 = vld [vmem:[%s10151_s0 + $0x1c0] sm:$0xff]  ;;  %v387_v14 = vadd.f32 %v386_v5, %v234_v59  ;;  %v253_v15 = vld [vmem:[%s10151_s0 + $0x178] sm:$0xff]  ;;  %v419_v19 = vadd.f32 %v261_v12, %v260_v11  ;;  %v395_v20 = vadd.f32 %v394_v10, %v241_v58  ;;  %v263_v21 = vld [vmem:[%s10151_s0 + $0x1c8] sm:$0xff] }
  0x49   : > { %382 = vadd.xlane.f32.xlu1 %v381_v3  ;;  %v407_v16 = vadd.f32 %v406_v7, %v251_v61  ;;  %v246_v17 = vld [vmem:[%s10151_s0 + $0x140] sm:$0xff]  ;;  %v399_v18 = vadd.f32 %v398_v9, %v244_v2  ;;  %v255_v23 = vld [vmem:[%s10151_s0 + $0x188] sm:$0xff]  ;;  %v264_v28 = vld [vmem:[%s10151_s0 + $0x1d0] sm:$0xff] }
  0x4a   : > { %v254_v22 = vld [vmem:[%s10151_s0 + $0x180] sm:$0xff]  ;;  %v388_v24 = vadd.f32 %v387_v14, %v235_v4  ;;  %v247_v26 = vld [vmem:[%s10151_s0 + $0x148] sm:$0xff]  ;;  %v420_v29 = vadd.f32 %v419_v19, %v262_v13  ;;  %v256_v30 = vld [vmem:[%s10151_s0 + $0x190] sm:$0xff] }
  0x4b   : > { %v408_v25 = vadd.f32 %v407_v16, %v252_v6  ;;  %v400_v27 = vadd.f32 %v399_v18, %v245_v8  ;;  %v265_v31 = vld [vmem:[%s10151_s0 + $0x1d8] sm:$0xff]  ;;  %v412_v32 = vadd.f32 %v255_v23, %v254_v22  ;;  %v272_v33 = vld [vmem:[%s10151_s0 + $0x210] sm:$0xff]  ;;  %v258_v39 = vld [vmem:[%s10151_s0 + $0x1a0] sm:$0xff] }
  0x4c   : > { %v273_v34 = vld [vmem:[%s10151_s0 + $0x218] sm:$0xff]  ;;  %389 = vadd.xlane.f32.xlu0 %v388_v24  ;;  %v421_v37 = vadd.f32 %v420_v29, %v263_v21  ;;  %v274_v40 = vld [vmem:[%s10151_s0 + $0x220] sm:$0xff]  ;;  %v267_v44 = vld [vmem:[%s10151_s0 + $0x1e8] sm:$0xff] }
  0x4d   : > { %396 = vadd.xlane.f32.xlu1 %v395_v20  ;;  %v409_v35 = vadd.f32 %v408_v25, %v253_v15  ;;  %v401_v36 = vadd.f32 %v400_v27, %v246_v17  ;;  %v257_v38 = vld [vmem:[%s10151_s0 + $0x198] sm:$0xff]  ;;  %v413_v41 = vadd.f32 %v412_v32, %v256_v30  ;;  %v433_v42 = vadd.f32 %v273_v34, %v272_v33  ;;  %v266_v43 = vld [vmem:[%s10151_s0 + $0x1e0] sm:$0xff]  ;;  %v268_v45 = vld [vmem:[%s10151_s0 + $0x1f0] sm:$0xff] }
  0x4e   : > { %v422_v47 = vadd.f32 %v421_v37, %v264_v28  ;;  %v259_v48 = vld [vmem:[%s10151_s0 + $0x1a8] sm:$0xff]  ;;  %v276_v50 = vld [vmem:[%s10151_s0 + $0x230] sm:$0xff]  ;;  %v269_v51 = vld [vmem:[%s10151_s0 + $0x1f8] sm:$0xff]  ;;  %v426_v52 = vadd.f32 %v267_v44, %v266_v43 }
  0x4f   : > { %v402_v46 = vadd.f32 %v401_v36, %v247_v26  ;;  %v275_v49 = vld [vmem:[%s10151_s0 + $0x228] sm:$0xff]  ;;  %v414_v53 = vadd.f32 %v413_v41, %v257_v38  ;;  %v434_v54 = vadd.f32 %v433_v42, %v274_v40  ;;  %v284_v55 = vld [vmem:[%s10151_s0 + $0x270] sm:$0xff]  ;;  %v285_v56 = vld [vmem:[%s10151_s0 + $0x278] sm:$0xff] }
  0x50   : > { %v286_v57 = vld [vmem:[%s10151_s0 + $0x280] sm:$0xff]  ;;  %v423_v58 = vadd.f32 %v422_v47, %v265_v31  ;;  %v277_v59 = vld [vmem:[%s10151_s0 + $0x238] sm:$0xff]  ;;  %v427_v61 = vadd.f32 %v426_v52, %v268_v45  ;;  %v287_v62 = vld [vmem:[%s10151_s0 + $0x288] sm:$0xff]  ;;  %v447_v63 = vadd.f32 %v285_v56, %v284_v55 }
  0x51   : > { %410 = vadd.xlane.f32.xlu1 %v409_v35  ;;  %403 = vadd.xlane.f32.xlu0 %v402_v46  ;;  %v270_v60 = vld [vmem:[%s10151_s0 + $0x200] sm:$0xff]  ;;  %v415_v0 = vadd.f32 %v414_v53, %v258_v39  ;;  %v435_v1 = vadd.f32 %v434_v54, %v275_v49  ;;  %v279_v3 = vld [vmem:[%s10151_s0 + $0x248] sm:$0xff]  ;;  %v280_v4 = vld [vmem:[%s10151_s0 + $0x250] sm:$0xff] }
  0x52   : > { %v278_v2 = vld [vmem:[%s10151_s0 + $0x240] sm:$0xff]  ;;  %v271_v5 = vld [vmem:[%s10151_s0 + $0x208] sm:$0xff]  ;;  %v428_v6 = vadd.f32 %v427_v61, %v269_v51  ;;  %v288_v7 = vld [vmem:[%s10151_s0 + $0x290] sm:$0xff]  ;;  %v448_v8 = vadd.f32 %v447_v63, %v286_v57 }
  0x53   : > { %v281_v9 = vld [vmem:[%s10151_s0 + $0x258] sm:$0xff]  ;;  %v440_v10 = vadd.f32 %v279_v3, %v278_v2  ;;  %v416_v11 = vadd.f32 %v415_v0, %v259_v48  ;;  %v436_v12 = vadd.f32 %v435_v1, %v276_v50  ;;  %v296_v13 = vld [vmem:[%s10151_s0 + $0x2d0] sm:$0xff]  ;;  %v298_v15 = vld [vmem:[%s10151_s0 + $0x2e0] sm:$0xff] }
  0x54   : > { %v297_v14 = vld [vmem:[%s10151_s0 + $0x2d8] sm:$0xff]  ;;  %v429_v16 = vadd.f32 %v428_v6, %v270_v60  ;;  %v449_v18 = vadd.f32 %v448_v8, %v287_v62  ;;  %v282_v19 = vld [vmem:[%s10151_s0 + $0x260] sm:$0xff]  ;;  %v299_v23 = vld [vmem:[%s10151_s0 + $0x2e8] sm:$0xff] }
  0x55   : > { %424 = vadd.xlane.f32.xlu1 %v423_v58  ;;  %v289_v17 = vld [vmem:[%s10151_s0 + $0x298] sm:$0xff]  ;;  %v441_v20 = vadd.f32 %v440_v10, %v280_v4  ;;  %v461_v21 = vadd.f32 %v297_v14, %v296_v13  ;;  %417 = vadd.xlane.f32.xlu0 %v416_v11  ;;  %v437_v22 = vadd.f32 %v436_v12, %v277_v59  ;;  %v290_v24 = vld [vmem:[%s10151_s0 + $0x2a0] sm:$0xff]  ;;  %v291_v25 = vld [vmem:[%s10151_s0 + $0x2a8] sm:$0xff] }
  0x56   : > { %v430_v26 = vadd.f32 %v429_v16, %v271_v5  ;;  %v450_v27 = vadd.f32 %v449_v18, %v288_v7  ;;  %v283_v28 = vld [vmem:[%s10151_s0 + $0x268] sm:$0xff]  ;;  %v300_v30 = vld [vmem:[%s10151_s0 + $0x2f0] sm:$0xff]  ;;  %v301_v33 = vld [vmem:[%s10151_s0 + $0x2f8] sm:$0xff]  ;;  %v454_v34 = vadd.f32 %v291_v25, %v290_v24 }
  0x57   : > { %v442_v29 = vadd.f32 %v441_v20, %v281_v9  ;;  %v462_v31 = vadd.f32 %v461_v21, %v298_v15  ;;  %v292_v32 = vld [vmem:[%s10151_s0 + $0x2b0] sm:$0xff]  ;;  %v309_v36 = vld [vmem:[%s10151_s0 + $0x338] sm:$0xff]  ;;  %v310_v37 = vld [vmem:[%s10151_s0 + $0x340] sm:$0xff] }
  0x58   : > { %v308_v35 = vld [vmem:[%s10151_s0 + $0x330] sm:$0xff]  ;;  %v451_v38 = vadd.f32 %v450_v27, %v289_v17  ;;  %v293_v41 = vld [vmem:[%s10151_s0 + $0x2b8] sm:$0xff]  ;;  %v294_v42 = vld [vmem:[%s10151_s0 + $0x2c0] sm:$0xff]  ;;  %v455_v45 = vadd.f32 %v454_v34, %v292_v32 }
  0x59   : > { %438 = vadd.xlane.f32.xlu1 %v437_v22  ;;  %v443_v39 = vadd.f32 %v442_v29, %v282_v19  ;;  %v463_v40 = vadd.f32 %v462_v31, %v299_v23  ;;  %v311_v43 = vld [vmem:[%s10151_s0 + $0x348] sm:$0xff]  ;;  %v475_v44 = vadd.f32 %v309_v36, %v308_v35  ;;  %431 = vadd.xlane.f32.xlu0 %v430_v26  ;;  %v302_v46 = vld [vmem:[%s10151_s0 + $0x300] sm:$0xff]  ;;  %v304_v48 = vld [vmem:[%s10151_s0 + $0x310] sm:$0xff] }
  0x5a   : > { %v303_v47 = vld [vmem:[%s10151_s0 + $0x308] sm:$0xff]  ;;  %v312_v52 = vld [vmem:[%s10151_s0 + $0x350] sm:$0xff]  ;;  %v305_v54 = vld [vmem:[%s10151_s0 + $0x318] sm:$0xff]  ;;  %v456_v56 = vadd.f32 %v455_v45, %v293_v41 }
  0x5b   : > { %v444_v49 = vadd.f32 %v443_v39, %v283_v28  ;;  %v464_v50 = vadd.f32 %v463_v40, %v300_v30  ;;  %v295_v51 = vld [vmem:[%s10151_s0 + $0x2c8] sm:$0xff]  ;;  %v476_v53 = vadd.f32 %v475_v44, %v310_v37  ;;  %v468_v55 = vadd.f32 %v303_v47, %v302_v46  ;;  %v320_v57 = vld [vmem:[%s10151_s0 + $0x390] sm:$0xff]  ;;  %v321_v58 = vld [vmem:[%s10151_s0 + $0x398] sm:$0xff] }
  0x5c   : > { %v322_v59 = vld [vmem:[%s10151_s0 + $0x3a0] sm:$0xff]  ;;  %v313_v61 = vld [vmem:[%s10151_s0 + $0x358] sm:$0xff]  ;;  %v323_v1 = vld [vmem:[%s10151_s0 + $0x3a8] sm:$0xff]  ;;  %v489_v2 = vadd.f32 %v321_v58, %v320_v57  ;;  %v457_v3 = vadd.f32 %v456_v56, %v294_v42 }
  0x5d   : > { %452 = vadd.xlane.f32.xlu1 %v451_v38  ;;  %v465_v60 = vadd.f32 %v464_v50, %v301_v33  ;;  %v477_v62 = vadd.f32 %v476_v53, %v311_v43  ;;  %v306_v63 = vld [vmem:[%s10151_s0 + $0x320] sm:$0xff]  ;;  %v469_v0 = vadd.f32 %v468_v55, %v304_v48  ;;  %445 = vadd.xlane.f32.xlu0 %v444_v49  ;;  %v315_v5 = vld [vmem:[%s10151_s0 + $0x368] sm:$0xff]  ;;  %v316_v6 = vld [vmem:[%s10151_s0 + $0x370] sm:$0xff] }
  0x5e   : > { %v314_v4 = vld [vmem:[%s10151_s0 + $0x360] sm:$0xff]  ;;  %v307_v8 = vld [vmem:[%s10151_s0 + $0x328] sm:$0xff]  ;;  %v324_v10 = vld [vmem:[%s10151_s0 + $0x3b0] sm:$0xff]  ;;  %v490_v11 = vadd.f32 %v489_v2, %v322_v59  ;;  %v458_v13 = vadd.f32 %v457_v3, %v295_v51 }
  0x5f   : > { %v478_v7 = vadd.f32 %v477_v62, %v312_v52  ;;  %v470_v9 = vadd.f32 %v469_v0, %v305_v54  ;;  %v482_v12 = vadd.f32 %v315_v5, %v314_v4  ;;  %v317_v14 = vld [vmem:[%s10151_s0 + $0x378] sm:$0xff]  ;;  %v332_v15 = vld [vmem:[%s10151_s0 + $0x3f0] sm:$0xff]  ;;  %v318_v21 = vld [vmem:[%s10151_s0 + $0x380] sm:$0xff] }
  0x60   : > { %v333_v16 = vld [vmem:[%s10151_s0 + $0x3f8] sm:$0xff]  ;;  %v491_v20 = vadd.f32 %v490_v11, %v323_v1  ;;  %v334_v23 = vld [vmem:[%s10151_s0 + $0x400] sm:$0xff]  ;;  %v327_v26 = vld [vmem:[%s10151_s0 + $0x3c8] sm:$0xff] }
  0x61   : > { %466 = vadd.xlane.f32.xlu1 %v465_v60  ;;  %v479_v17 = vadd.f32 %v478_v7, %v313_v61  ;;  %v471_v18 = vadd.f32 %v470_v9, %v306_v63  ;;  %v325_v19 = vld [vmem:[%s10151_s0 + $0x3b8] sm:$0xff]  ;;  %v483_v22 = vadd.f32 %v482_v12, %v316_v6  ;;  %459 = vadd.xlane.f32.xlu0 %v458_v13  ;;  %v326_v25 = vld [vmem:[%s10151_s0 + $0x3c0] sm:$0xff]  ;;  %v328_v27 = vld [vmem:[%s10151_s0 + $0x3d0] sm:$0xff] }
  0x62   : > { %v503_v24 = vadd.f32 %v333_v16, %v332_v15  ;;  %v492_v29 = vadd.f32 %v491_v20, %v324_v10  ;;  %v319_v30 = vld [vmem:[%s10151_s0 + $0x388] sm:$0xff]  ;;  %v329_v33 = vld [vmem:[%s10151_s0 + $0x3d8] sm:$0xff]  ;;  %v496_v34 = vadd.f32 %v327_v26, %v326_v25  ;;  %v344_v36 = vld [vmem:[%s10151_s0 + $0x450] sm:$0xff] }
  0x63   : > { %v472_v28 = vadd.f32 %v471_v18, %v307_v8  ;;  %v484_v31 = vadd.f32 %v483_v22, %v317_v14  ;;  %v335_v32 = vld [vmem:[%s10151_s0 + $0x408] sm:$0xff]  ;;  %v345_v37 = vld [vmem:[%s10151_s0 + $0x458] sm:$0xff]  ;;  %v346_v38 = vld [vmem:[%s10151_s0 + $0x460] sm:$0xff] }
  0x64   : > { %v504_v35 = vadd.f32 %v503_v24, %v334_v23  ;;  %v493_v39 = vadd.f32 %v492_v29, %v325_v19  ;;  %v336_v41 = vld [vmem:[%s10151_s0 + $0x410] sm:$0xff]  ;;  %v330_v42 = vld [vmem:[%s10151_s0 + $0x3e0] sm:$0xff]  ;;  %v497_v43 = vadd.f32 %v496_v34, %v328_v27  ;;  %v347_v44 = vld [vmem:[%s10151_s0 + $0x468] sm:$0xff]  ;;  %v517_v45 = vadd.f32 %v345_v37, %v344_v36 }
  0x65   : > { %480 = vadd.xlane.f32.xlu1 %v479_v17  ;;  %v485_v40 = vadd.f32 %v484_v31, %v318_v21  ;;  %473 = vadd.xlane.f32.xlu0 %v472_v28  ;;  %v338_v47 = vld [vmem:[%s10151_s0 + $0x420] sm:$0xff]  ;;  %v339_v48 = vld [vmem:[%s10151_s0 + $0x428] sm:$0xff]  ;;  %v340_v49 = vld [vmem:[%s10151_s0 + $0x430] sm:$0xff] }
  0x66   : > { %v505_v46 = vadd.f32 %v504_v35, %v335_v32  ;;  %v337_v51 = vld [vmem:[%s10151_s0 + $0x418] sm:$0xff]  ;;  %v498_v52 = vadd.f32 %v497_v43, %v329_v33  ;;  %v518_v53 = vadd.f32 %v517_v45, %v346_v38  ;;  %v510_v54 = vadd.f32 %v339_v48, %v338_v47  ;;  %v331_v56 = vld [vmem:[%s10151_s0 + $0x3e8] sm:$0xff]  ;;  %v348_v57 = vld [vmem:[%s10151_s0 + $0x470] sm:$0xff] }
  0x67   : > { %v486_v50 = vadd.f32 %v485_v40, %v319_v30  ;;  %v341_v58 = vld [vmem:[%s10151_s0 + $0x438] sm:$0xff]  ;;  %v342_v62 = vld [vmem:[%s10151_s0 + $0x440] sm:$0xff]  ;;  %v343_v1 = vld [vmem:[%s10151_s0 + $0x448] sm:$0xff] }
  0x68   : > { %v506_v55 = vadd.f32 %v505_v46, %v336_v41  ;;  %v499_v59 = vadd.f32 %v498_v52, %v330_v42  ;;  %v349_v60 = vld [vmem:[%s10151_s0 + $0x478] sm:$0xff]  ;;  %v519_v61 = vadd.f32 %v518_v53, %v347_v44  ;;  %v511_v63 = vadd.f32 %v510_v54, %v340_v49  ;;  %v350_v8 = vld [vmem:[%s10151_s0 + $0x480] sm:$0xf]  ;;  %v351_v9 = vld [vmem:[%s10151_s0 + $0x488] sm:$0xf] }
  0x69   : > { %494 = vadd.xlane.f32.xlu1 %v493_v39  ;;  %487 = vadd.xlane.f32.xlu0 %v486_v50  ;;  %v352_v10 = vld [vmem:[%s10151_s0 + $0x490] sm:$0xf]  ;;  %v525_v11 = vsel %vm524_vm0, %v350_v8, 0.0  ;;  %v526_v12 = vsel %vm524_vm0, %v351_v9, 0.0  ;;  %v353_v13 = vld [vmem:[%s10151_s0 + $0x498] sm:$0xf] }
  0x6a   : > { %v507_v0 = vadd.f32 %v506_v55, %v337_v51  ;;  %v500_v2 = vadd.f32 %v499_v59, %v331_v56  ;;  %v520_v3 = vadd.f32 %v519_v61, %v348_v57  ;;  %v512_v4 = vadd.f32 %v511_v63, %v341_v58  ;;  %v5936_v16 = vld [vmem:[%s6752_s7 + $0x4] ss:$24 sps:$4 sm:$0xff]   ;;  %v5940_v18 = vld [vmem:[%s6752_s7] ss:$24 sps:$4 sm:$0xff]   ;;  %v5942_v20 = vld [vmem:[%s6752_s7 + $0x34] ss:$24 sps:$4 sm:$0xff]  }
  0x6b   : > { %v527_v14 = vadd.f32 %v526_v12, %v525_v11  ;;  %v528_v15 = vsel %vm524_vm0, %v352_v10, 0.0  ;;  %v5938_v17 = vld [vmem:[%s6752_s7 + $0x304] ss:$24 sps:$4 sm:$0xff]   ;;  %v5941_v19 = vld [vmem:[%s6752_s7 + $0x300] ss:$24 sps:$4 sm:$0xff]   ;;  %3108 = vmatprep.subr.bf16.mxu1 %v5936_v16  ;;  %v530_v23 = vsel %vm524_vm0, %v353_v13, 0.0 }
  0x6c   : > { %v521_v5 = vadd.f32 %v520_v3, %v349_v60  ;;  %v513_v6 = vadd.f32 %v512_v4, %v342_v62  ;;  %v5944_v21 = vld [vmem:[%s6752_s7 + $0x334] ss:$24 sps:$4 sm:$0xff]   ;;  %3269 = vmatprep.subr.bf16.mxu0 %v5938_v17  ;;  %3109 = vmatpush1.bf16.msra.mxu1 %v5940_v18  ;;  %v5946_v24 = vld [vmem:[%s6752_s7 + $0x30] ss:$24 sps:$4 sm:$0xff]   ;;  %v354_v26 = vld [vmem:[%s10151_s0 + $0x4a0] sm:$0xf] }
  0x6d   : > { %508 = vadd.xlane.f32.xlu1 %v507_v0  ;;  %501 = vadd.xlane.f32.xlu0 %v500_v2  ;;  %v529_v22 = vadd.f32 %v528_v15, %v527_v14  ;;  %v5947_v25 = vld [vmem:[%s6752_s7 + $0x330] ss:$24 sps:$4 sm:$0xff]   ;;  %v5948_v27 = vld [vmem:[%s6752_s7 + $0x64] ss:$24 sps:$4 sm:$0xff]   ;;  %v532_v30 = vsel %vm524_vm0, %v354_v26, 0.0 }
  0x6e   : > { %v514_v7 = vadd.f32 %v513_v6, %v343_v1  ;;  %3270 = vmatpush1.bf16.msra.mxu0 %v5941_v19  ;;  %3110 = vmatprep.subr.bf16.mxu1 %v5942_v20  ;;  %v5950_v28 = vld [vmem:[%s6752_s7 + $0x364] ss:$24 sps:$4 sm:$0xff]   ;;  %v5952_v31 = vld [vmem:[%s6752_s7 + $0x60] ss:$24 sps:$4 sm:$0xff]   ;;  %v355_v33 = vld [vmem:[%s10151_s0 + $0x4a8] sm:$0xf] }
  0x6f   : > { %3271 = vmatprep.subr.bf16.mxu0 %v5944_v21  ;;  %v531_v29 = vadd.f32 %v530_v23, %v529_v22  ;;  %v5953_v32 = vld [vmem:[%s6752_s7 + $0x360] ss:$24 sps:$4 sm:$0xff]   ;;  %v5954_v34 = vld [vmem:[%s6752_s7 + $0x94] ss:$24 sps:$4 sm:$0xff]   ;;  %v534_v40 = vsel %vm524_vm0, %v355_v33, 0.0 }
  0x70   : > { %3111 = vmatpush1.bf16.msra.mxu1 %v5946_v24  ;;  %v5956_v35 = vld [vmem:[%s6752_s7 + $0x394] ss:$24 sps:$4 sm:$0xff]   ;;  %v5958_v41 = vld [vmem:[%s6752_s7 + $0x90] ss:$24 sps:$4 sm:$0xff]   ;;  %v6418_v42 = vld [vmem:[%s10151_s0] sm:$0xff] }
  0x71   : > { %522 = vadd.xlane.f32.xlu1 %v521_v5  ;;  %515 = vadd.xlane.f32.xlu0 %v514_v7  ;;  %v533_v38 = vadd.f32 %v532_v30, %v531_v29  ;;  %v6419_v44 = vld [vmem:[%s10151_s0 + $0x8] sm:$0xff]  ;;  %v6420_v46 = vld [vmem:[%s10151_s0 + $0x10] sm:$0xff]  ;;  %v5960_v49 = vld [vmem:[%s6752_s7 + $0xc4] ss:$24 sps:$4 sm:$0xff]  }
  0x72   : > { %3272 = vmatpush1.bf16.msra.mxu0 %v5947_v25  ;;  %3112 = vmatprep.subr.bf16.mxu1 %v5948_v27  ;;  %v5959_v48 = vld [vmem:[%s6752_s7 + $0x390] ss:$24 sps:$4 sm:$0xff]   ;;  %v6421_v52 = vld [vmem:[%s10151_s0 + $0x18] sm:$0xff]  ;;  %v6422_v54 = vld [vmem:[%s10151_s0 + $0x20] sm:$0xff] }
  0x73   : > { %3273 = vmatprep.subr.bf16.mxu0 %v5950_v28  ;;  %v5962_v56 = vld [vmem:[%s6752_s7 + $0x3c4] ss:$24 sps:$4 sm:$0xff]   ;;  %v5964_v57 = vld [vmem:[%s6752_s7 + $0xc0] ss:$24 sps:$4 sm:$0xff]   ;;  %v7264_v61 = vadd.f32 %v534_v40, %v533_v38  ;;  %v5966_v63 = vld [vmem:[%s6752_s7 + $0xf4] ss:$24 sps:$4 sm:$0xff]  }
  0x74   : > { %3113 = vmatpush1.bf16.msra.mxu1 %v5952_v31  ;;  %v5965_v62 = vld [vmem:[%s6752_s7 + $0x3c0] ss:$24 sps:$4 sm:$0xff]   ;;  %v6423_v1 = vld [vmem:[%s10151_s0 + $0x28] sm:$0xff]  ;;  %v6424_v8 = vld [vmem:[%s10151_s0 + $0x30] sm:$0xff] }
  0x75   : > { %3114 = vmatprep.subr.bf16.mxu1 %v5954_v34  ;;  %v6425_v10 = vld [vmem:[%s10151_s0 + $0x38] sm:$0xff]  ;;  %v6426_v12 = vld [vmem:[%s10151_s0 + $0x40] sm:$0xff]  ;;  %v6427_v14 = vld [vmem:[%s10151_s0 + $0x48] sm:$0xff] }
  0x76   : > { %3274 = vmatpush1.bf16.msra.mxu0 %v5953_v32  ;;  %v6428_v16 = vld [vmem:[%s10151_s0 + $0x50] sm:$0xff]  ;;  %v6429_v18 = vld [vmem:[%s10151_s0 + $0x58] sm:$0xff]  ;;  %v6431_v31 = vld [vmem:[%s10151_s0 + $0x60] sm:$0xff] }
  0x77   : > { %3275 = vmatprep.subr.bf16.mxu0 %v5956_v35  ;;  %v5968_v20 = vld [vmem:[%s6752_s7 + $0x3f4] ss:$24 sps:$4 sm:$0xff]   ;;  %v5970_v33 = vld [vmem:[%s6752_s7 + $0xf0] ss:$24 sps:$4 sm:$0xff]   ;;  %v5972_v38 = vld [vmem:[%s6752_s7 + $0x124] ss:$24 sps:$4 sm:$0xff]  }
  0x78   : > { %3115 = vmatpush1.bf16.msra.mxu1 %v5958_v41  ;;  %v6430_v24 = vld [vmem:[%s10151_s0 + $0x90] sm:$0xff]  ;;  %v6433_v41 = vld [vmem:[%s10151_s0 + $0xa0] sm:$0xff] }
  0x79   : > { %3116 = vmatprep.subr.bf16.mxu1 %v5960_v49 }
  0x7a   : > { %3276 = vmatpush1.bf16.msra.mxu0 %v5959_v48  ;;  %v6435_v48 = vld [vmem:[%s10151_s0 + $0xb0] sm:$0xff] }
  0x7b   : > { %3277 = vmatprep.subr.bf16.mxu0 %v5962_v56 }
  0x7c   : > { %3117 = vmatpush1.bf16.msra.mxu1 %v5964_v57 }
  0x7d   : > { %3118 = vmatprep.subr.bf16.mxu1 %v5966_v63 }
  0x7e   : > { %3278 = vmatpush1.bf16.msra.mxu0 %v5965_v62  ;;  %v6436_v62 = vld [vmem:[%s10151_s0 + $0xb8] sm:$0xff] }
  0x7f   : > { %3279 = vmatprep.subr.bf16.mxu0 %v5968_v20  ;;  %v6438_v20 = vld [vmem:[%s10151_s0 + $0x70] sm:$0xff] }
  0x80   : > { %3119 = vmatpush1.bf16.msra.mxu1 %v5970_v33 }
  0x81   : > { %3120 = vmatprep.subr.bf16.mxu1 %v5972_v38 }
  0xd0   : > { %v362_v36 = vpop.xlane.xlu0 %361 }
  0xd1   : > { %v539_v37 = vmul.f32 0.0013020834, %v362_v36 }
  0xd2   : > { %v376_v39 = vpop.xlane.xlu1 %375 }
  0xd3   : > { %v7232_v43 = vsub.f32 %v6418_v42, %v539_v37  ;;  %v7237_v45 = vsub.f32 %v6419_v44, %v539_v37  ;;  %v7242_v47 = vsub.f32 %v6420_v46, %v539_v37  ;;  %v7246_v50 = vmul.f32 0.0013020834, %v376_v39  ;;  %v6432_v39 = vld [vmem:[%s10151_s0 + $0x98] sm:$0xff]  ;;  %v6434_v44 = vld [vmem:[%s10151_s0 + $0xa8] sm:$0xff] }
  0xd4   : > { %v369_v51 = vpop.xlane.xlu0 %368  ;;  %v7251_v53 = vsub.f32 %v6421_v52, %v539_v37  ;;  %v7256_v55 = vsub.f32 %v6422_v54, %v539_v37  ;;  %v7271_v2 = vsub.f32 %v6423_v1, %v539_v37  ;;  %v5971_v37 = vld [vmem:[%s6752_s7 + $0x3f0] ss:$24 sps:$4 sm:$0xff]  }
  0xd5   : > { %v540_v58 = vmul.f32 0.0013020834, %v369_v51  ;;  %v714_v59 = vmul.f32 %v7232_v43, %v7232_v43  ;;  %v715_v60 = vmul.f32 %v7237_v45, %v7237_v45  ;;  %v716_v3 = vmul.f32 %v7242_v47, %v7242_v47  ;;  %v5974_v51 = vld [vmem:[%s6752_s7 + $0x424] ss:$24 sps:$4 sm:$0xff]   ;;  %3280 = vmatpush1.bf16.msra.mxu0 %v5971_v37 }
  0xd6   : > { %v383_v0 = vpop.xlane.xlu1 %382  ;;  %v717_v4 = vmul.f32 %v7251_v53, %v7251_v53  ;;  %v718_v5 = vmul.f32 %v7256_v55, %v7256_v55  ;;  %v719_v28 = vmul.f32 %v7271_v2, %v7271_v2  ;;  %v7329_v32 = vsub.f32 %v6431_v31, %v7246_v50  ;;  %3281 = vmatprep.subr.bf16.mxu0 %v5974_v51  ;;  %v5983_v51 = vld [vmem:[%s6752_s7 + $0x450] ss:$24 sps:$4 sm:$0xff]  }
  0xd7   : > { %v542_v6 = vmul.f32 0.0013020834, %v383_v0  ;;  %v864_v7 = vadd.f32 %v715_v60, %v714_v59  ;;  %v7282_v9 = vsub.f32 %v6424_v8, %v540_v58  ;;  %v7287_v11 = vsub.f32 %v6425_v10, %v540_v58  ;;  %v5978_v10 = vld [vmem:[%s6752_s7 + $0x154] ss:$24 sps:$4 sm:$0xff]  }
  0xd8   : > { %v7292_v13 = vsub.f32 %v6426_v12, %v540_v58  ;;  %v7297_v15 = vsub.f32 %v6427_v14, %v540_v58  ;;  %v7302_v17 = vsub.f32 %v6428_v16, %v540_v58  ;;  %v7307_v19 = vsub.f32 %v6429_v18, %v540_v58  ;;  %v6437_v16 = vld [vmem:[%s10151_s0 + $0x68] sm:$0xff] }
  0xd9   : > { %v865_v21 = vadd.f32 %v864_v7, %v716_v3  ;;  %v720_v22 = vmul.f32 %v7282_v9, %v7282_v9  ;;  %v721_v23 = vmul.f32 %v7287_v11, %v7287_v11  ;;  %v7317_v25 = vsub.f32 %v6430_v24, %v542_v6  ;;  %v390_v27 = vpop.xlane.xlu0 %389  ;;  %v5976_v3 = vld [vmem:[%s6752_s7 + $0x120] ss:$24 sps:$4 sm:$0xff]  }
  0xda   : > { %v397_v26 = vpop.xlane.xlu1 %396  ;;  %v722_v29 = vmul.f32 %v7292_v13, %v7292_v13  ;;  %v723_v30 = vmul.f32 %v7297_v15, %v7297_v15  ;;  %v724_v35 = vmul.f32 %v7302_v17, %v7302_v17  ;;  %v7339_v40 = vsub.f32 %v6432_v39, %v542_v6  ;;  %3121 = vmatpush1.bf16.msra.mxu1 %v5976_v3 }
  0xdb   : > { %v866_v34 = vadd.f32 %v865_v21, %v717_v4  ;;  %v871_v36 = vadd.f32 %v721_v23, %v720_v22  ;;  %v7344_v42 = vsub.f32 %v6433_v41, %v542_v6  ;;  %v7349_v46 = vsub.f32 %v6434_v44, %v542_v6  ;;  %v5980_v22 = vld [vmem:[%s6752_s7 + $0x454] ss:$24 sps:$4 sm:$0xff]   ;;  %3122 = vmatprep.subr.bf16.mxu1 %v5978_v10 }
  0xdc   : > { %v7354_v49 = vsub.f32 %v6435_v48, %v542_v6  ;;  %v725_v54 = vmul.f32 %v7307_v19, %v7307_v19  ;;  %v732_v57 = vmul.f32 %v7317_v25, %v7317_v25  ;;  %v7361_v58 = vmul.f32 0.0013020834, %v397_v26  ;;  %v6439_v26 = vld [vmem:[%s10151_s0 + $0x78] sm:$0xff]  ;;  %v6441_v44 = vld [vmem:[%s10151_s0 + $0x88] sm:$0xff] }
  0xdd   : > { %v867_v52 = vadd.f32 %v866_v34, %v718_v5  ;;  %v872_v56 = vadd.f32 %v871_v36, %v722_v29  ;;  %v7366_v63 = vsub.f32 %v6436_v62, %v542_v6  ;;  %v733_v0 = vmul.f32 %v7339_v40, %v7339_v40  ;;  %v5977_v6 = vld [vmem:[%s6752_s7 + $0x420] ss:$24 sps:$4 sm:$0xff]   ;;  %v5982_v36 = vld [vmem:[%s6752_s7 + $0x150] ss:$24 sps:$4 sm:$0xff]  }
  0xde   : > { %v411_v59 = vpop.xlane.xlu1 %410  ;;  %v404_v60 = vpop.xlane.xlu0 %403  ;;  %v734_v1 = vmul.f32 %v7344_v42, %v7344_v42  ;;  %v7373_v4 = vmul.f32 0.0013020834, %v390_v27  ;;  %v735_v8 = vmul.f32 %v7349_v46, %v7349_v46  ;;  %v736_v12 = vmul.f32 %v7354_v49, %v7354_v49  ;;  %3282 = vmatpush1.bf16.msra.mxu0 %v5977_v6  ;;  %v6445_v10 = vld [vmem:[%s10151_s0 + $0x108] sm:$0xff]  ;;  %3123 = vmatpush1.bf16.msra.mxu1 %v5982_v36 }
  0xdf   : > { %v868_v5 = vadd.f32 %v867_v52, %v719_v28  ;;  %v873_v7 = vadd.f32 %v872_v56, %v723_v30  ;;  %v885_v14 = vadd.f32 %v733_v0, %v732_v57  ;;  %v7385_v18 = vsub.f32 %v6437_v16, %v7246_v50  ;;  %v6440_v28 = vld [vmem:[%s10151_s0 + $0x80] sm:$0xff]  ;;  %3283 = vmatprep.subr.bf16.mxu0 %v5980_v22  ;;  %v6446_v16 = vld [vmem:[%s10151_s0 + $0x110] sm:$0xff] }
  0xe0   : > { %v7391_v21 = vsub.f32 %v6438_v20, %v7246_v50  ;;  %v7394_v23 = vmul.f32 0.0013020834, %v411_v59  ;;  %v7400_v27 = vsub.f32 %v6439_v26, %v7246_v50  ;;  %v7406_v29 = vsub.f32 %v6440_v28, %v7246_v50  ;;  %v5984_v52 = vld [vmem:[%s6752_s7 + $0x184] ss:$24 sps:$4 sm:$0xff]  }
  0xe1   : > { %869 = vadd.xlane.f32.xlu0 %v868_v5  ;;  %v874_v24 = vadd.f32 %v873_v7, %v724_v35  ;;  %v886_v31 = vadd.f32 %v885_v14, %v734_v1  ;;  %v726_v33 = vmul.f32 %v7329_v32, %v7329_v32  ;;  %v727_v34 = vmul.f32 %v7385_v18, %v7385_v18  ;;  %v6443_v1 = vld [vmem:[%s10151_s0 + $0xf8] sm:$0xff]  ;;  %v6444_v5 = vld [vmem:[%s10151_s0 + $0x100] sm:$0xff] }
  0xe2   : > { %v425_v30 = vpop.xlane.xlu1 %424  ;;  %v728_v35 = vmul.f32 %v7391_v21, %v7391_v21  ;;  %v7415_v37 = vmul.f32 0.0013020834, %v404_v60  ;;  %v418_v38 = vpop.xlane.xlu0 %417  ;;  %v737_v41 = vmul.f32 %v7366_v63, %v7366_v63  ;;  %v7423_v48 = vsub.f32 %v6441_v44, %v7246_v50  ;;  %v5986_v60 = vld [vmem:[%s6752_s7 + $0x484] ss:$24 sps:$4 sm:$0xff]   ;;  %v6442_v50 = vld [vmem:[%s10151_s0 + $0xf0] sm:$0xff]  ;;  %3284 = vmatpush1.bf16.msra.mxu0 %v5983_v51  ;;  %3124 = vmatprep.subr.bf16.mxu1 %v5984_v52 }
  0xe3   : > { %v875_v39 = vadd.f32 %v874_v24, %v725_v54  ;;  %v887_v56 = vadd.f32 %v886_v31, %v735_v8  ;;  %v729_v57 = vmul.f32 %v7400_v27, %v7400_v27  ;;  %v730_v54 = vmul.f32 %v7406_v29, %v7406_v29  ;;  %v6447_v24 = vld [vmem:[%s10151_s0 + $0x118] sm:$0xff]  ;;  %3285 = vmatprep.subr.bf16.mxu0 %v5986_v60 }
  0xe4   : > { %v878_v59 = vadd.f32 %v727_v34, %v726_v33  ;;  %v7432_v62 = vmul.f32 0.0013020834, %v425_v30  ;;  %v7439_v0 = vsub.f32 %v6442_v50, %v7361_v58  ;;  %v7445_v3 = vsub.f32 %v6443_v1, %v7361_v58  ;;  %v5988_v31 = vld [vmem:[%s6752_s7 + $0x180] ss:$24 sps:$4 sm:$0xff]   ;;  %v6449_v50 = vld [vmem:[%s10151_s0 + $0xc8] sm:$0xff] }
  0xe5   : > { %536 = vadd.xlane.f32.xlu0 %v7264_v61  ;;  %876 = vadd.xlane.f32.xlu1 %v875_v39  ;;  %v7451_v61 = vsub.f32 %v6444_v5, %v7361_v58  ;;  %v888_v8 = vadd.f32 %v887_v56, %v736_v12  ;;  %v7457_v14 = vsub.f32 %v6445_v10, %v7361_v58  ;;  %v7465_v22 = vmul.f32 0.0013020834, %v418_v38  ;;  %v5989_v33 = vld [vmem:[%s6752_s7 + $0x480] ss:$24 sps:$4 sm:$0xff]   ;;  %v5992_v39 = vld [vmem:[%s6752_s7 + $0x4b4] ss:$24 sps:$4 sm:$0xff]  }
  0xe6   : > { %v439_v7 = vpop.xlane.xlu1 %438  ;;  %v879_v6 = vadd.f32 %v878_v59, %v728_v35  ;;  %v7463_v20 = vsub.f32 %v6446_v16, %v7361_v58  ;;  %v432_v12 = vpop.xlane.xlu0 %431  ;;  %v7471_v26 = vsub.f32 %v6447_v24, %v7361_v58  ;;  %v744_v28 = vmul.f32 %v7439_v0, %v7439_v0  ;;  %v5990_v58 = vld [vmem:[%s6752_s7 + $0x1b4] ss:$24 sps:$4 sm:$0xff]   ;;  %v6448_v59 = vld [vmem:[%s10151_s0 + $0xc0] sm:$0xff]  ;;  %v6451_v10 = vld [vmem:[%s10151_s0 + $0xd8] sm:$0xff]  ;;  %3125 = vmatpush1.bf16.msra.mxu1 %v5988_v31 }
  0xe7   : > { %v745_v30 = vmul.f32 %v7445_v3, %v7445_v3  ;;  %v889_v34 = vadd.f32 %v888_v8, %v737_v41  ;;  %v731_v35 = vmul.f32 %v7423_v48, %v7423_v48  ;;  %v746_v38 = vmul.f32 %v7451_v61, %v7451_v61  ;;  %v6452_v24 = vld [vmem:[%s10151_s0 + $0xe0] sm:$0xff]  ;;  %3286 = vmatpush1.bf16.msra.mxu0 %v5989_v33 }
  0xe8   : > { %10351 = vst [vmem:[#allocation6_spill] sm:$0xff] %v7463_v20  ;;  %v880_v36 = vadd.f32 %v879_v6, %v729_v57  ;;  %v747_v44 = vmul.f32 %v7457_v14, %v7457_v14  ;;  %v748_v51 = vmul.f32 %v7463_v20, %v7463_v20  ;;  %v749_v52 = vmul.f32 %v7471_v26, %v7471_v26 }
  0xe9   : > { %v899_v41 = vadd.f32 %v745_v30, %v744_v28  ;;  %890 = vadd.xlane.f32.xlu0 %v889_v34  ;;  %v7495_v60 = vsub.f32 %v6448_v59, %v7373_v4  ;;  %v7501_v1 = vsub.f32 %v6449_v50, %v7373_v4  ;;  %v7509_v8 = vmul.f32 0.0013020834, %v439_v7  ;;  %v5994_v30 = vld [vmem:[%s6752_s7 + $0x1b0] ss:$24 sps:$4 sm:$0xff]   ;;  %3126 = vmatprep.subr.bf16.mxu1 %v5990_v58 }
  0xea   : > { %v881_v56 = vadd.f32 %v880_v36, %v730_v54  ;;  %v453_v57 = vpop.xlane.xlu1 %452  ;;  %v6450_v54 = vld [vmem:[%s10151_s0 + $0xd0] sm:$0xff]  ;;  %v7515_v16 = vsub.f32 %v6451_v10, %v7373_v4  ;;  %v7521_v28 = vsub.f32 %v6452_v24, %v7373_v4  ;;  %v7525_v34 = vmul.f32 0.0013020834, %v432_v12  ;;  %3287 = vmatprep.subr.bf16.mxu0 %v5992_v39  ;;  %3127 = vmatpush1.bf16.msra.mxu1 %v5994_v30 }
  0xeb   : > { %10352 = vst [vmem:[#allocation7_spill] sm:$0xff] %v7495_v60  ;;  %v7507_v5 = vsub.f32 %v6450_v54, %v7373_v4  ;;  %v900_v6 = vadd.f32 %v899_v41, %v746_v38  ;;  %v5995_v7 = vld [vmem:[%s6752_s7 + $0x4b0] ss:$24 sps:$4 sm:$0xff]   ;;  %v446_v38 = vpop.xlane.xlu0 %445  ;;  %v738_v50 = vmul.f32 %v7495_v60, %v7495_v60  ;;  %v7535_v31 = vmul.f32 0.0013020834, %v453_v57 }
  0xec   : > { %10354 = vst [vmem:[#allocation9_spill] sm:$0xff] %v7515_v16  ;;  %10355 = vst [vmem:[#allocation10_spill] sm:$0xff] %v7521_v28  ;;  %v882_v36 = vadd.f32 %v881_v56, %v731_v35  ;;  %v6453_v41 = vld [vmem:[%s10151_s0 + $0xe8] sm:$0xff]  ;;  %v739_v12 = vmul.f32 %v7501_v1, %v7501_v1  ;;  %v741_v56 = vmul.f32 %v7515_v16, %v7515_v16  ;;  %v6454_v58 = vld [vmem:[%s10151_s0 + $0x150] sm:$0xff]  ;;  %3288 = vmatpush1.bf16.msra.mxu0 %v5995_v7 }
  0xed   : > { %10353 = vst [vmem:[#allocation8_spill] sm:$0xff] %v7507_v5  ;;  %v7531_v59 = vsub.f32 %v6453_v41, %v7373_v4  ;;  %v901_v33 = vadd.f32 %v900_v6, %v747_v44  ;;  %v740_v35 = vmul.f32 %v7507_v5, %v7507_v5  ;;  %v742_v4 = vmul.f32 %v7521_v28, %v7521_v28  ;;  %v6455_v44 = vld [vmem:[%s10151_s0 + $0x158] sm:$0xff] }
  0xee   : > { %883 = vadd.xlane.f32.xlu1 %v882_v36  ;;  %v467_v54 = vpop.xlane.xlu1 %466  ;;  %v7549_v39 = vsub.f32 %v6454_v58, %v7394_v23  ;;  %v7555_v57 = vsub.f32 %v6455_v44, %v7394_v23  ;;  %v7557_v6 = vmul.f32 0.0013020834, %v446_v38  ;;  %v892_v24 = vadd.f32 %v739_v12, %v738_v50  ;;  %v6456_v36 = vld [vmem:[%s10151_s0 + $0x160] sm:$0xff]  ;;  %v6457_v38 = vld [vmem:[%s10151_s0 + $0x168] sm:$0xff]  ;;  %v6458_v50 = vld [vmem:[%s10151_s0 + $0x170] sm:$0xff] }
  0xef   : > { %10356 = vst [vmem:[#allocation11_spill] sm:$0xff] %v7531_v59  ;;  %v902_v10 = vadd.f32 %v901_v33, %v748_v51  ;;  %v7563_v41 = vsub.f32 %v6456_v36, %v7394_v23  ;;  %v743_v58 = vmul.f32 %v7531_v59, %v7531_v59  ;;  %v7567_v20 = vmul.f32 0.0013020834, %v467_v54  ;;  %v6459_v44 = vld [vmem:[%s10151_s0 + $0x178] sm:$0xff] }
  0xf0   : > { %10357 = vst [vmem:[#allocation12_spill] sm:$0xff] %v7549_v39  ;;  %10358 = vst [vmem:[#allocation13_spill] sm:$0xff] %v7555_v57  ;;  %v7573_v51 = vsub.f32 %v6457_v38, %v7394_v23  ;;  %v7579_v33 = vsub.f32 %v6458_v50, %v7394_v23  ;;  %v893_v7 = vadd.f32 %v892_v24, %v740_v35  ;;  %v6460_v50 = vld [vmem:[%s10151_s0 + $0x120] sm:$0xff] }
  0xf1   : > { %10359 = vst [vmem:[#allocation14_spill] sm:$0xff] %v7563_v41  ;;  %v903_v30 = vadd.f32 %v902_v10, %v749_v52  ;;  %v756_v12 = vmul.f32 %v7549_v39, %v7549_v39  ;;  %v757_v54 = vmul.f32 %v7555_v57, %v7555_v57  ;;  %v7589_v36 = vsub.f32 %v6459_v44, %v7394_v23  ;;  %v6461_v44 = vld [vmem:[%s10151_s0 + $0x128] sm:$0xff]  ;;  %v5996_v39 = vld [vmem:[%s6752_s7 + $0x1e4] ss:$24 sps:$4 sm:$0xff]   ;;  %v6001_v28 = vld [vmem:[%s6752_s7 + $0x4e0] ss:$24 sps:$4 sm:$0xff]  }
  0xf2   : > { %10360 = vst [vmem:[#allocation15_spill] sm:$0xff] %v7573_v51  ;;  %10361 = vst [vmem:[#allocation16_spill] sm:$0xff] %v7579_v33  ;;  %v758_v52 = vmul.f32 %v7563_v41, %v7563_v41  ;;  %v759_v35 = vmul.f32 %v7573_v51, %v7573_v51  ;;  %v760_v10 = vmul.f32 %v7579_v33, %v7579_v33  ;;  %v5998_v33 = vld [vmem:[%s6752_s7 + $0x4e4] ss:$24 sps:$4 sm:$0xff]   ;;  %v6465_v57 = vld [vmem:[%s10151_s0 + $0x148] sm:$0xff]  ;;  %3128 = vmatprep.subr.bf16.mxu1 %v5996_v39  ;;  %v481_v39 = vpop.xlane.xlu1 %480 }
  0xf3   : > { %904 = vadd.xlane.f32.xlu0 %v903_v30  ;;  %v894_v24 = vadd.f32 %v893_v7, %v741_v56  ;;  %v913_v38 = vadd.f32 %v757_v54, %v756_v12  ;;  %v7601_v23 = vsub.f32 %v6460_v50, %v7415_v37  ;;  %v7607_v41 = vsub.f32 %v6461_v44, %v7415_v37  ;;  %v6000_v30 = vld [vmem:[%s6752_s7 + $0x1e0] ss:$24 sps:$4 sm:$0xff]   ;;  %v460_v56 = vpop.xlane.xlu0 %459  ;;  %v6462_v7 = vld [vmem:[%s10151_s0 + $0x130] sm:$0xff] }
  0xf4   : > { %v7616_v12 = vsub.f32 %v6462_v7, %v7415_v37  ;;  %v6463_v54 = vld [vmem:[%s10151_s0 + $0x138] sm:$0xff]  ;;  %v6464_v44 = vld [vmem:[%s10151_s0 + $0x140] sm:$0xff]  ;;  %v7634_v7 = vsub.f32 %v6465_v57, %v7415_v37  ;;  %3289 = vmatprep.subr.bf16.mxu0 %v5998_v33  ;;  %3129 = vmatpush1.bf16.msra.mxu1 %v6000_v30 }
  0xf5   : > { %10362 = vst [vmem:[#allocation17_spill] sm:$0xff] %v7601_v23  ;;  %10363 = vst [vmem:[#allocation18_spill] sm:$0xff] %v7607_v41  ;;  %v7622_v50 = vsub.f32 %v6463_v54, %v7415_v37  ;;  %v7628_v51 = vsub.f32 %v6464_v44, %v7415_v37  ;;  %v895_v59 = vadd.f32 %v894_v24, %v742_v4  ;;  %3290 = vmatpush1.bf16.msra.mxu0 %v6001_v28  ;;  %v6468_v28 = vld [vmem:[%s10151_s0 + $0x1c0] sm:$0xff] }
  0xf6   : > { %10364 = vst [vmem:[#allocation19_spill] sm:$0xff] %v7616_v12  ;;  %10367 = vst [vmem:[#allocation22_spill] sm:$0xff] %v7634_v7  ;;  %v914_v5 = vadd.f32 %v913_v38, %v758_v52  ;;  %v750_v54 = vmul.f32 %v7601_v23, %v7601_v23  ;;  %v751_v60 = vmul.f32 %v7607_v41, %v7607_v41  ;;  %v7649_v52 = vmul.f32 0.0013020834, %v460_v56  ;;  %v6002_v23 = vld [vmem:[%s6752_s7 + $0x214] ss:$24 sps:$4 sm:$0xff]  }
  0xf7   : > { %10365 = vst [vmem:[#allocation20_spill] sm:$0xff] %v7622_v50  ;;  %10366 = vst [vmem:[#allocation21_spill] sm:$0xff] %v7628_v51  ;;  %v761_v44 = vmul.f32 %v7589_v36, %v7589_v36  ;;  %v752_v16 = vmul.f32 %v7616_v12, %v7616_v12  ;;  %v753_v37 = vmul.f32 %v7622_v50, %v7622_v50  ;;  %v6004_v41 = vld [vmem:[%s6752_s7 + $0x514] ss:$24 sps:$4 sm:$0xff]   ;;  %3130 = vmatprep.subr.bf16.mxu1 %v6002_v23  ;;  %v6472_v23 = vld [vmem:[%s10151_s0 + $0x180] sm:$0xff] }
  0xf8   : > { %v754_v4 = vmul.f32 %v7628_v51, %v7628_v51  ;;  %v896_v57 = vadd.f32 %v895_v59, %v743_v58  ;;  %v915_v24 = vadd.f32 %v914_v5, %v759_v35  ;;  %v906_v38 = vadd.f32 %v751_v60, %v750_v54  ;;  %v6466_v50 = vld [vmem:[%s10151_s0 + $0x1b0] sm:$0xff]  ;;  %v6467_v5 = vld [vmem:[%s10151_s0 + $0x1b8] sm:$0xff]  ;;  %v6469_v56 = vld [vmem:[%s10151_s0 + $0x1c8] sm:$0xff]  ;;  %3291 = vmatprep.subr.bf16.mxu0 %v6004_v41  ;;  %v474_v51 = vpop.xlane.xlu0 %473 }
  0xf9   : > { %v755_v12 = vmul.f32 %v7634_v7, %v7634_v7  ;;  %v7659_v33 = vsub.f32 %v6466_v50, %v7432_v62  ;;  %v7665_v60 = vsub.f32 %v6467_v5, %v7432_v62  ;;  %v7671_v59 = vsub.f32 %v6468_v28, %v7432_v62  ;;  %v6006_v58 = vld [vmem:[%s6752_s7 + $0x210] ss:$24 sps:$4 sm:$0xff]  }
  0xfa   : > { %897 = vadd.xlane.f32.xlu1 %v896_v57  ;;  %v916_v35 = vadd.f32 %v915_v24, %v760_v10  ;;  %v907_v30 = vadd.f32 %v906_v38, %v752_v16  ;;  %v7678_v50 = vsub.f32 %v6469_v56, %v7432_v62  ;;  %v6470_v54 = vld [vmem:[%s10151_s0 + $0x1d0] sm:$0xff]  ;;  %v7686_v28 = vmul.f32 0.0013020834, %v481_v39  ;;  %3131 = vmatpush1.bf16.msra.mxu1 %v6006_v58  ;;  %v6476_v58 = vld [vmem:[%s10151_s0 + $0x1a0] sm:$0xff] }
  0xfb   : > { %10368 = vst [vmem:[#allocation23_spill] sm:$0xff] %v7659_v33  ;;  %10369 = vst [vmem:[#allocation24_spill] sm:$0xff] %v7665_v60  ;;  %v7684_v5 = vsub.f32 %v6470_v54, %v7432_v62  ;;  %v768_v10 = vmul.f32 %v7659_v33, %v7659_v33  ;;  %v769_v16 = vmul.f32 %v7665_v60, %v7665_v60  ;;  %v6007_v24 = vld [vmem:[%s6752_s7 + $0x510] ss:$24 sps:$4 sm:$0xff]   ;;  %v6471_v54 = vld [vmem:[%s10151_s0 + $0x1d8] sm:$0xff] }
  0xfc   : > { %10370 = vst [vmem:[#allocation25_spill] sm:$0xff] %v7671_v59  ;;  %10371 = vst [vmem:[#allocation26_spill] sm:$0xff] %v7678_v50  ;;  %v770_v57 = vmul.f32 %v7671_v59, %v7671_v59  ;;  %v917_v38 = vadd.f32 %v916_v35, %v761_v44  ;;  %v908_v56 = vadd.f32 %v907_v30, %v753_v37  ;;  %v6474_v35 = vld [vmem:[%s10151_s0 + $0x190] sm:$0xff]  ;;  %3292 = vmatpush1.bf16.msra.mxu0 %v6007_v24  ;;  %v495_v24 = vpop.xlane.xlu1 %494 }
  0xfd   : > { %10372 = vst [vmem:[#allocation27_spill] sm:$0xff] %v7684_v5  ;;  %v7699_v39 = vsub.f32 %v6471_v54, %v7432_v62  ;;  %v771_v33 = vmul.f32 %v7678_v50, %v7678_v50  ;;  %v772_v60 = vmul.f32 %v7684_v5, %v7684_v5  ;;  %v927_v59 = vadd.f32 %v769_v16, %v768_v10  ;;  %v6473_v62 = vld [vmem:[%s10151_s0 + $0x188] sm:$0xff]  ;;  %v6475_v10 = vld [vmem:[%s10151_s0 + $0x198] sm:$0xff] }
  0xfe   : > { %v7709_v44 = vsub.f32 %v6472_v23, %v7465_v22  ;;  %v7715_v37 = vsub.f32 %v6473_v62, %v7465_v22  ;;  %918 = vadd.xlane.f32.xlu0 %v917_v38  ;;  %v909_v41 = vadd.f32 %v908_v56, %v754_v4  ;;  %v7721_v30 = vsub.f32 %v6474_v35, %v7465_v22  ;;  %v6477_v56 = vld [vmem:[%s10151_s0 + $0x1a8] sm:$0xff] }
  0xff   : > { %10373 = vst [vmem:[#allocation28_spill] sm:$0xff] %v7699_v39  ;;  %v7727_v16 = vsub.f32 %v6475_v10, %v7465_v22  ;;  %v7733_v4 = vsub.f32 %v6476_v58, %v7465_v22  ;;  %v928_v38 = vadd.f32 %v927_v59, %v770_v57  ;;  %v7739_v54 = vsub.f32 %v6477_v56, %v7465_v22 }
 0x100   : > { %10374 = vst [vmem:[#allocation29_spill] sm:$0xff] %v7709_v44  ;;  %10375 = vst [vmem:[#allocation30_spill] sm:$0xff] %v7715_v37  ;;  %v762_v23 = vmul.f32 %v7709_v44, %v7709_v44  ;;  %v763_v62 = vmul.f32 %v7715_v37, %v7715_v37  ;;  %v910_v35 = vadd.f32 %v909_v41, %v755_v12  ;;  %v7745_v10 = vmul.f32 0.0013020834, %v474_v51  ;;  %v6008_v12 = vld [vmem:[%s6752_s7 + $0x244] ss:$24 sps:$4 sm:$0xff]  }
 0x101   : > { %10376 = vst [vmem:[#allocation31_spill] sm:$0xff] %v7721_v30  ;;  %10377 = vst [vmem:[#allocation32_spill] sm:$0xff] %v7727_v16  ;;  %v773_v59 = vmul.f32 %v7699_v39, %v7699_v39  ;;  %v764_v57 = vmul.f32 %v7721_v30, %v7721_v30  ;;  %v929_v58 = vadd.f32 %v928_v38, %v771_v33  ;;  %v6010_v51 = vld [vmem:[%s6752_s7 + $0x544] ss:$24 sps:$4 sm:$0xff]   ;;  %v6478_v30 = vld [vmem:[%s10151_s0 + $0x210] sm:$0xff]  ;;  %3132 = vmatprep.subr.bf16.mxu1 %v6008_v12 }
 0x102   : > { %10378 = vst [vmem:[#allocation33_spill] sm:$0xff] %v7733_v4  ;;  %10379 = vst [vmem:[#allocation34_spill] sm:$0xff] %v7739_v54  ;;  %v765_v22 = vmul.f32 %v7727_v16, %v7727_v16  ;;  %v766_v56 = vmul.f32 %v7733_v4, %v7733_v4  ;;  %v920_v44 = vadd.f32 %v763_v62, %v762_v23  ;;  %911 = vadd.xlane.f32.xlu1 %v910_v35  ;;  %v6479_v38 = vld [vmem:[%s10151_s0 + $0x218] sm:$0xff]  ;;  %v6480_v62 = vld [vmem:[%s10151_s0 + $0x220] sm:$0xff] }
 0x103   : > { %v767_v41 = vmul.f32 %v7739_v54, %v7739_v54  ;;  %v7763_v33 = vsub.f32 %v6478_v30, %v7509_v8  ;;  %v7769_v23 = vsub.f32 %v6479_v38, %v7509_v8  ;;  %v7775_v35 = vsub.f32 %v6480_v62, %v7509_v8  ;;  %v6012_v4 = vld [vmem:[%s6752_s7 + $0x240] ss:$24 sps:$4 sm:$0xff]   ;;  %v6481_v30 = vld [vmem:[%s10151_s0 + $0x228] sm:$0xff]  ;;  %v6482_v38 = vld [vmem:[%s10151_s0 + $0x230] sm:$0xff]  ;;  %3293 = vmatprep.subr.bf16.mxu0 %v6010_v51 }
 0x104   : > { %v6013_v54 = vld [vmem:[%s6752_s7 + $0x540] ss:$24 sps:$4 sm:$0xff]   ;;  %v930_v16 = vadd.f32 %v929_v58, %v772_v60  ;;  %v921_v37 = vadd.f32 %v920_v44, %v764_v57  ;;  %v7783_v5 = vsub.f32 %v6481_v30, %v7509_v8  ;;  %v7789_v39 = vsub.f32 %v6482_v38, %v7509_v8  ;;  %3133 = vmatpush1.bf16.msra.mxu1 %v6012_v4 }
 0x105   : > { %10380 = vst [vmem:[#allocation35_spill] sm:$0xff] %v7763_v33  ;;  %10381 = vst [vmem:[#allocation36_spill] sm:$0xff] %v7769_v23  ;;  %v7791_v62 = vmul.f32 0.0013020834, %v495_v24  ;;  %v780_v60 = vmul.f32 %v7763_v33, %v7763_v33  ;;  %v781_v44 = vmul.f32 %v7769_v23, %v7769_v23  ;;  %v782_v57 = vmul.f32 %v7775_v35, %v7775_v35  ;;  %v6483_v38 = vld [vmem:[%s10151_s0 + $0x238] sm:$0xff]  ;;  %v488_v33 = vpop.xlane.xlu0 %487 }
 0x106   : > { %10382 = vst [vmem:[#allocation37_spill] sm:$0xff] %v7775_v35  ;;  %10383 = vst [vmem:[#allocation38_spill] sm:$0xff] %v7783_v5  ;;  %v931_v58 = vadd.f32 %v930_v16, %v773_v59  ;;  %v922_v30 = vadd.f32 %v921_v37, %v765_v22  ;;  %v7803_v12 = vsub.f32 %v6483_v38, %v7509_v8  ;;  %v6484_v37 = vld [vmem:[%s10151_s0 + $0x1e0] sm:$0xff]  ;;  %v6485_v8 = vld [vmem:[%s10151_s0 + $0x1e8] sm:$0xff]  ;;  %3294 = vmatpush1.bf16.msra.mxu0 %v6013_v54 }
 0x107   : > { %10384 = vst [vmem:[#allocation39_spill] sm:$0xff] %v7789_v39  ;;  %v783_v24 = vmul.f32 %v7783_v5, %v7783_v5  ;;  %v784_v23 = vmul.f32 %v7789_v39, %v7789_v39  ;;  %v941_v50 = vadd.f32 %v781_v44, %v780_v60  ;;  %v7813_v16 = vsub.f32 %v6484_v37, %v7525_v34  ;;  %v6486_v22 = vld [vmem:[%s10151_s0 + $0x1f0] sm:$0xff]  ;;  %v6487_v60 = vld [vmem:[%s10151_s0 + $0x1f8] sm:$0xff]  ;;  %v6488_v54 = vld [vmem:[%s10151_s0 + $0x200] sm:$0xff]  ;;  %v509_v39 = vpop.xlane.xlu1 %508 }
 0x108   : > { %10385 = vst [vmem:[#allocation40_spill] sm:$0xff] %v7803_v12  ;;  %v7819_v59 = vsub.f32 %v6485_v8, %v7525_v34  ;;  %932 = vadd.xlane.f32.xlu0 %v931_v58  ;;  %v923_v4 = vadd.f32 %v922_v30, %v766_v56  ;;  %v7825_v51 = vsub.f32 %v6486_v22, %v7525_v34  ;;  %v6489_v30 = vld [vmem:[%s10151_s0 + $0x208] sm:$0xff] }
 0x109   : > { %10386 = vst [vmem:[#allocation41_spill] sm:$0xff] %v7813_v16  ;;  %v7831_v44 = vsub.f32 %v6487_v60, %v7525_v34  ;;  %v7837_v56 = vsub.f32 %v6488_v54, %v7525_v34  ;;  %v942_v58 = vadd.f32 %v941_v50, %v782_v57  ;;  %v7843_v38 = vsub.f32 %v6489_v30, %v7525_v34  ;;  %v502_v35 = vpop.xlane.xlu0 %501  ;;  %v6019_v5 = vld [vmem:[%s6752_s7 + $0x570] ss:$24 sps:$4 sm:$0xff]  }
 0x10a   : > { %10387 = vst [vmem:[#allocation42_spill] sm:$0xff] %v7819_v59  ;;  %10388 = vst [vmem:[#allocation43_spill] sm:$0xff] %v7825_v51  ;;  %v774_v37 = vmul.f32 %v7813_v16, %v7813_v16  ;;  %v775_v8 = vmul.f32 %v7819_v59, %v7819_v59  ;;  %v924_v22 = vadd.f32 %v923_v4, %v767_v41  ;;  %v7849_v60 = vmul.f32 0.0013020834, %v488_v33  ;;  %v6490_v33 = vld [vmem:[%s10151_s0 + $0x270] sm:$0xff]  ;;  %v6491_v4 = vld [vmem:[%s10151_s0 + $0x278] sm:$0xff] }
 0x10b   : > { %10389 = vst [vmem:[#allocation44_spill] sm:$0xff] %v7831_v44  ;;  %10390 = vst [vmem:[#allocation45_spill] sm:$0xff] %v7837_v56  ;;  %v785_v54 = vmul.f32 %v7803_v12, %v7803_v12  ;;  %v776_v50 = vmul.f32 %v7825_v51, %v7825_v51  ;;  %v943_v57 = vadd.f32 %v942_v58, %v783_v24  ;;  %v7893_v59 = vmul.f32 0.0013020834, %v509_v39 }
 0x10c   : > { %10391 = vst [vmem:[#allocation46_spill] sm:$0xff] %v7843_v38  ;;  %v777_v34 = vmul.f32 %v7831_v44, %v7831_v44  ;;  %v778_v30 = vmul.f32 %v7837_v56, %v7837_v56  ;;  %v934_v16 = vadd.f32 %v775_v8, %v774_v37  ;;  %925 = vadd.xlane.f32.xlu1 %v924_v22  ;;  %v6492_v37 = vld [vmem:[%s10151_s0 + $0x280] sm:$0xff]  ;;  %v6014_v44 = vld [vmem:[%s6752_s7 + $0x274] ss:$24 sps:$4 sm:$0xff]  }
 0x10d   : > { %v779_v41 = vmul.f32 %v7843_v38, %v7843_v38  ;;  %v7865_v24 = vsub.f32 %v6490_v33, %v7535_v31  ;;  %v7871_v58 = vsub.f32 %v6491_v4, %v7535_v31  ;;  %v7877_v8 = vsub.f32 %v6492_v37, %v7535_v31  ;;  %v6493_v33 = vld [vmem:[%s10151_s0 + $0x288] sm:$0xff]  ;;  %v6494_v4 = vld [vmem:[%s10151_s0 + $0x290] sm:$0xff]  ;;  %3134 = vmatprep.subr.bf16.mxu1 %v6014_v44 }
 0x10e   : > { %v944_v22 = vadd.f32 %v943_v57, %v784_v23  ;;  %v935_v56 = vadd.f32 %v934_v16, %v776_v50  ;;  %v7883_v38 = vsub.f32 %v6493_v33, %v7535_v31  ;;  %v7889_v51 = vsub.f32 %v6494_v4, %v7535_v31  ;;  %v6016_v37 = vld [vmem:[%s6752_s7 + $0x574] ss:$24 sps:$4 sm:$0xff]   ;;  %v6018_v57 = vld [vmem:[%s6752_s7 + $0x270] ss:$24 sps:$4 sm:$0xff]   ;;  %v6495_v4 = vld [vmem:[%s10151_s0 + $0x298] sm:$0xff] }
 0x10f   : > { %10392 = vst [vmem:[#allocation47_spill] sm:$0xff] %v7865_v24  ;;  %10393 = vst [vmem:[#allocation48_spill] sm:$0xff] %v7871_v58  ;;  %v792_v23 = vmul.f32 %v7865_v24, %v7865_v24  ;;  %v793_v16 = vmul.f32 %v7871_v58, %v7871_v58  ;;  %v794_v50 = vmul.f32 %v7877_v8, %v7877_v8  ;;  %3295 = vmatprep.subr.bf16.mxu0 %v6016_v37  ;;  %v6500_v37 = vld [vmem:[%s10151_s0 + $0x260] sm:$0xff] }
 0x110   : > { %10394 = vst [vmem:[#allocation49_spill] sm:$0xff] %v7877_v8  ;;  %10395 = vst [vmem:[#allocation50_spill] sm:$0xff] %v7883_v38  ;;  %v945_v33 = vadd.f32 %v944_v22, %v785_v54  ;;  %v936_v12 = vadd.f32 %v935_v56, %v777_v34  ;;  %v7906_v39 = vsub.f32 %v6495_v4, %v7535_v31  ;;  %v6496_v56 = vld [vmem:[%s10151_s0 + $0x240] sm:$0xff]  ;;  %v6497_v31 = vld [vmem:[%s10151_s0 + $0x248] sm:$0xff]  ;;  %3135 = vmatpush1.bf16.msra.mxu1 %v6018_v57 }
 0x111   : > { %10396 = vst [vmem:[#allocation51_spill] sm:$0xff] %v7889_v51  ;;  %v795_v24 = vmul.f32 %v7883_v38, %v7883_v38  ;;  %v796_v58 = vmul.f32 %v7889_v51, %v7889_v51  ;;  %v955_v8 = vadd.f32 %v793_v16, %v792_v23  ;;  %v7917_v54 = vsub.f32 %v6496_v56, %v7557_v6  ;;  %v6498_v22 = vld [vmem:[%s10151_s0 + $0x250] sm:$0xff]  ;;  %v6499_v16 = vld [vmem:[%s10151_s0 + $0x258] sm:$0xff] }
 0x112   : > { %10397 = vst [vmem:[#allocation52_spill] sm:$0xff] %v7906_v39  ;;  %v7923_v34 = vsub.f32 %v6497_v31, %v7557_v6  ;;  %946 = vadd.xlane.f32.xlu0 %v945_v33  ;;  %v937_v44 = vadd.f32 %v936_v12, %v778_v30  ;;  %v7929_v23 = vsub.f32 %v6498_v22, %v7557_v6  ;;  %v6501_v33 = vld [vmem:[%s10151_s0 + $0x268] sm:$0xff]  ;;  %v7953_v51 = vmul.f32 0.0013020834, %v502_v35 }
 0x113   : > { %10398 = vst [vmem:[#allocation53_spill] sm:$0xff] %v7917_v54  ;;  %v7935_v4 = vsub.f32 %v6499_v16, %v7557_v6  ;;  %v7941_v12 = vsub.f32 %v6500_v37, %v7557_v6  ;;  %v956_v30 = vadd.f32 %v955_v8, %v794_v50  ;;  %v7947_v56 = vsub.f32 %v6501_v33, %v7557_v6  ;;  %v523_v37 = vpop.xlane.xlu1 %522 }
 0x114   : > { %10399 = vst [vmem:[#allocation54_spill] sm:$0xff] %v7923_v34  ;;  %10400 = vst [vmem:[#allocation55_spill] sm:$0xff] %v7929_v23  ;;  %v786_v31 = vmul.f32 %v7917_v54, %v7917_v54  ;;  %v787_v22 = vmul.f32 %v7923_v34, %v7923_v34  ;;  %v938_v16 = vadd.f32 %v937_v44, %v779_v41  ;;  %3296 = vmatpush1.bf16.msra.mxu0 %v6019_v5  ;;  %v516_v44 = vpop.xlane.xlu0 %515  ;;  %v6024_v34 = vld [vmem:[%s6752_s7 + $0x2a0] ss:$24 sps:$4 sm:$0xff]  }
 0x115   : > { %10401 = vst [vmem:[#allocation56_spill] sm:$0xff] %v7935_v4  ;;  %10402 = vst [vmem:[#allocation57_spill] sm:$0xff] %v7941_v12  ;;  %v797_v8 = vmul.f32 %v7906_v39, %v7906_v39  ;;  %v788_v50 = vmul.f32 %v7929_v23, %v7929_v23  ;;  %v957_v6 = vadd.f32 %v956_v30, %v795_v24  ;;  %v6502_v23 = vld [vmem:[%s10151_s0 + $0x2d0] sm:$0xff]  ;;  %v6503_v24 = vld [vmem:[%s10151_s0 + $0x2d8] sm:$0xff]  ;;  %v7985_v54 = vmul.f32 0.0013020834, %v523_v37 }
 0x116   : > { %10403 = vst [vmem:[#allocation58_spill] sm:$0xff] %v7947_v56  ;;  %v789_v33 = vmul.f32 %v7935_v4, %v7935_v4  ;;  %v790_v57 = vmul.f32 %v7941_v12, %v7941_v12  ;;  %v948_v41 = vadd.f32 %v787_v22, %v786_v31  ;;  %939 = vadd.xlane.f32.xlu1 %v938_v16  ;;  %v6504_v31 = vld [vmem:[%s10151_s0 + $0x2e0] sm:$0xff]  ;;  %v6505_v4 = vld [vmem:[%s10151_s0 + $0x2e8] sm:$0xff]  ;;  %v6506_v39 = vld [vmem:[%s10151_s0 + $0x2f0] sm:$0xff]  ;;  %v8007_v38 = vmul.f32 0.0013020834, %v516_v44 }
 0x117   : > { %v791_v35 = vmul.f32 %v7947_v56, %v7947_v56  ;;  %v7969_v5 = vsub.f32 %v6502_v23, %v7567_v20  ;;  %v7975_v30 = vsub.f32 %v6503_v24, %v7567_v20  ;;  %v7981_v22 = vsub.f32 %v6504_v31, %v7567_v20  ;;  %v6020_v16 = vld [vmem:[%s6752_s7 + $0x2a4] ss:$24 sps:$4 sm:$0xff]  }
 0x118   : > { %v6022_v12 = vld [vmem:[%s6752_s7 + $0x5a4] ss:$24 sps:$4 sm:$0xff]   ;;  %v958_v56 = vadd.f32 %v957_v6, %v796_v58  ;;  %v949_v23 = vadd.f32 %v948_v41, %v788_v50  ;;  %v7991_v24 = vsub.f32 %v6505_v4, %v7567_v20  ;;  %v7998_v31 = vsub.f32 %v6506_v39, %v7567_v20  ;;  %3136 = vmatprep.subr.bf16.mxu1 %v6020_v16  ;;  %v6025_v4 = vld [vmem:[%s6752_s7 + $0x5a0] ss:$24 sps:$4 sm:$0xff]  }
 0x119   : > { %10404 = vst [vmem:[#allocation59_spill] sm:$0xff] %v7969_v5  ;;  %10405 = vst [vmem:[#allocation60_spill] sm:$0xff] %v7975_v30  ;;  %v804_v58 = vmul.f32 %v7969_v5, %v7969_v5  ;;  %v805_v50 = vmul.f32 %v7975_v30, %v7975_v30  ;;  %v806_v37 = vmul.f32 %v7981_v22, %v7981_v22  ;;  %v6507_v39 = vld [vmem:[%s10151_s0 + $0x2f8] sm:$0xff]  ;;  %3297 = vmatprep.subr.bf16.mxu0 %v6022_v12  ;;  %v6508_v16 = vld [vmem:[%s10151_s0 + $0x2a0] sm:$0xff] }
 0x11a   : > { %10406 = vst [vmem:[#allocation61_spill] sm:$0xff] %v7998_v31  ;;  %v959_v6 = vadd.f32 %v958_v56, %v797_v8  ;;  %v950_v41 = vadd.f32 %v949_v23, %v789_v33  ;;  %v8013_v7 = vsub.f32 %v6507_v39, %v7567_v20  ;;  %v807_v5 = vmul.f32 %v7991_v24, %v7991_v24  ;;  %v6509_v8 = vld [vmem:[%s10151_s0 + $0x2a8] sm:$0xff]  ;;  %v6510_v12 = vld [vmem:[%s10151_s0 + $0x2b0] sm:$0xff]  ;;  %v6511_v23 = vld [vmem:[%s10151_s0 + $0x2b8] sm:$0xff] }
 0x11b   : > { %v969_v30 = vadd.f32 %v805_v50, %v804_v58  ;;  %v8021_v56 = vsub.f32 %v6508_v16, %v7649_v52  ;;  %v8027_v33 = vsub.f32 %v6509_v8, %v7649_v52  ;;  %3137 = vmatpush1.bf16.msra.mxu1 %v6024_v34  ;;  %v8033_v44 = vsub.f32 %v6510_v12, %v7649_v52  ;;  %v6512_v34 = vld [vmem:[%s10151_s0 + $0x2c0] sm:$0xff]  ;;  %v6513_v12 = vld [vmem:[%s10151_s0 + $0x2c8] sm:$0xff] }
 0x11c   : > { %10407 = vst [vmem:[#allocation62_spill] sm:$0xff] %v8013_v7  ;;  %960 = vadd.xlane.f32.xlu0 %v959_v6  ;;  %v951_v20 = vadd.f32 %v950_v41, %v790_v57  ;;  %v8039_v58 = vsub.f32 %v6511_v23, %v7649_v52  ;;  %v8045_v57 = vsub.f32 %v6512_v34, %v7649_v52 }
 0x11d   : > { %10408 = vst [vmem:[#allocation63_spill] sm:$0xff] %v8021_v56  ;;  %10409 = vst [vmem:[#allocation64_spill] sm:$0xff] %v8027_v33  ;;  %v808_v50 = vmul.f32 %v7998_v31, %v7998_v31  ;;  %v970_v6 = vadd.f32 %v969_v30, %v806_v37  ;;  %v798_v41 = vmul.f32 %v8021_v56, %v8021_v56  ;;  %3298 = vmatpush1.bf16.msra.mxu0 %v6025_v4 }
 0x11e   : > { %10410 = vst [vmem:[#allocation65_spill] sm:$0xff] %v8033_v44  ;;  %10411 = vst [vmem:[#allocation66_spill] sm:$0xff] %v8039_v58  ;;  %v799_v39 = vmul.f32 %v8027_v33, %v8027_v33  ;;  %v952_v16 = vadd.f32 %v951_v20, %v791_v35  ;;  %v809_v8 = vmul.f32 %v8013_v7, %v8013_v7  ;;  %v6514_v20 = vld [vmem:[%s10151_s0 + $0x330] sm:$0xff]  ;;  %v6520_v7 = vld [vmem:[%s10151_s0 + $0x300] sm:$0xff] }
 0x11f   : > { %10412 = vst [vmem:[#allocation67_spill] sm:$0xff] %v8045_v57  ;;  %v8059_v23 = vsub.f32 %v6513_v12, %v7649_v52  ;;  %v800_v30 = vmul.f32 %v8033_v44, %v8033_v44  ;;  %v971_v37 = vadd.f32 %v970_v6, %v807_v5  ;;  %v801_v35 = vmul.f32 %v8039_v58, %v8039_v58  ;;  %v6515_v12 = vld [vmem:[%s10151_s0 + $0x338] sm:$0xff]  ;;  %v6516_v6 = vld [vmem:[%s10151_s0 + $0x340] sm:$0xff]  ;;  %v6030_v44 = vld [vmem:[%s6752_s7 + $0x2d0] ss:$24 sps:$4 sm:$0xff]  }
 0x120   : > { %v962_v4 = vadd.f32 %v799_v39, %v798_v41  ;;  %v8069_v34 = vsub.f32 %v6514_v20, %v7686_v28  ;;  %953 = vadd.xlane.f32.xlu1 %v952_v16  ;;  %v802_v52 = vmul.f32 %v8045_v57, %v8045_v57  ;;  %v8077_v5 = vsub.f32 %v6515_v12, %v7686_v28  ;;  %v6517_v39 = vld [vmem:[%s10151_s0 + $0x348] sm:$0xff]  ;;  %v6518_v58 = vld [vmem:[%s10151_s0 + $0x350] sm:$0xff] }
 0x121   : > { %10413 = vst [vmem:[#allocation68_spill] sm:$0xff] %v8059_v23  ;;  %v8083_v41 = vsub.f32 %v6516_v6, %v7686_v28  ;;  %v8089_v16 = vsub.f32 %v6517_v39, %v7686_v28  ;;  %v6026_v20 = vld [vmem:[%s6752_s7 + $0x2d4] ss:$24 sps:$4 sm:$0xff]   ;;  %v972_v12 = vadd.f32 %v971_v37, %v808_v50  ;;  %v8098_v6 = vsub.f32 %v6518_v58, %v7686_v28  ;;  %v6519_v39 = vld [vmem:[%s10151_s0 + $0x358] sm:$0xff]  ;;  %v6031_v37 = vld [vmem:[%s6752_s7 + $0x5d0] ss:$24 sps:$4 sm:$0xff]  }
 0x122   : > { %10414 = vst [vmem:[#allocation69_spill] sm:$0xff] %v8069_v34  ;;  %v6028_v57 = vld [vmem:[%s6752_s7 + $0x5d4] ss:$24 sps:$4 sm:$0xff]   ;;  %v963_v56 = vadd.f32 %v962_v4, %v800_v30  ;;  %v816_v33 = vmul.f32 %v8069_v34, %v8069_v34  ;;  %v803_v31 = vmul.f32 %v8059_v23, %v8059_v23  ;;  %v8108_v50 = vsub.f32 %v6519_v39, %v7686_v28 }
 0x123   : > { %10415 = vst [vmem:[#allocation70_spill] sm:$0xff] %v8083_v41  ;;  %v817_v30 = vmul.f32 %v8077_v5, %v8077_v5  ;;  %v818_v58 = vmul.f32 %v8083_v41, %v8083_v41  ;;  %3138 = vmatprep.subr.bf16.mxu1 %v6026_v20  ;;  %v973_v4 = vadd.f32 %v972_v12, %v809_v8  ;;  %v6521_v41 = vld [vmem:[%s10151_s0 + $0x308] sm:$0xff] }
 0x124   : > { %v964_v34 = vadd.f32 %v963_v56, %v801_v35  ;;  %v819_v23 = vmul.f32 %v8089_v16, %v8089_v16  ;;  %v8121_v28 = vsub.f32 %v6520_v7, %v7745_v10  ;;  %3299 = vmatprep.subr.bf16.mxu0 %v6028_v57  ;;  %v8127_v20 = vsub.f32 %v6521_v41, %v7745_v10  ;;  %v6522_v56 = vld [vmem:[%s10151_s0 + $0x310] sm:$0xff]  ;;  %v6523_v7 = vld [vmem:[%s10151_s0 + $0x318] sm:$0xff]  ;;  %v6524_v41 = vld [vmem:[%s10151_s0 + $0x320] sm:$0xff] }
 0x125   : > { %v983_v39 = vadd.f32 %v817_v30, %v816_v33  ;;  %v8133_v8 = vsub.f32 %v6522_v56, %v7745_v10  ;;  %v8139_v33 = vsub.f32 %v6523_v7, %v7745_v10  ;;  %3139 = vmatpush1.bf16.msra.mxu1 %v6030_v44  ;;  %974 = vadd.xlane.f32.xlu0 %v973_v4  ;;  %v6525_v4 = vld [vmem:[%s10151_s0 + $0x328] sm:$0xff] }
 0x126   : > { %10416 = vst [vmem:[#allocation71_spill] sm:$0xff] %v8121_v28  ;;  %10417 = vst [vmem:[#allocation72_spill] sm:$0xff] %v8127_v20  ;;  %v965_v57 = vadd.f32 %v964_v34, %v802_v52  ;;  %v820_v35 = vmul.f32 %v8098_v6, %v8098_v6  ;;  %v8147_v12 = vsub.f32 %v6524_v41, %v7745_v10  ;;  %3300 = vmatpush1.bf16.msra.mxu0 %v6031_v37 }
 0x127   : > { %10418 = vst [vmem:[#allocation73_spill] sm:$0xff] %v8133_v8  ;;  %10419 = vst [vmem:[#allocation74_spill] sm:$0xff] %v8139_v33  ;;  %v810_v30 = vmul.f32 %v8121_v28, %v8121_v28  ;;  %v821_v56 = vmul.f32 %v8108_v50, %v8108_v50  ;;  %v984_v7 = vadd.f32 %v983_v39, %v818_v58  ;;  %v6526_v58 = vld [vmem:[%s10151_s0 + $0x390] sm:$0xff] }
 0x128   : > { %10420 = vst [vmem:[#allocation75_spill] sm:$0xff] %v8147_v12  ;;  %v811_v44 = vmul.f32 %v8127_v20, %v8127_v20  ;;  %v812_v34 = vmul.f32 %v8133_v8, %v8133_v8  ;;  %v966_v52 = vadd.f32 %v965_v57, %v803_v31  ;;  %v8161_v41 = vsub.f32 %v6525_v4, %v7745_v10  ;;  %v6527_v31 = vld [vmem:[%s10151_s0 + $0x398] sm:$0xff]  ;;  %v6528_v10 = vld [vmem:[%s10151_s0 + $0x3a0] sm:$0xff] }
 0x129   : > { %v813_v28 = vmul.f32 %v8139_v33, %v8139_v33  ;;  %v8169_v39 = vsub.f32 %v6526_v58, %v7791_v62  ;;  %v985_v8 = vadd.f32 %v984_v7, %v819_v23  ;;  %v8175_v57 = vsub.f32 %v6527_v31, %v7791_v62  ;;  %v6529_v23 = vld [vmem:[%s10151_s0 + $0x3a8] sm:$0xff]  ;;  %v6530_v7 = vld [vmem:[%s10151_s0 + $0x3b0] sm:$0xff]  ;;  %v6531_v20 = vld [vmem:[%s10151_s0 + $0x3b8] sm:$0xff] }
 0x12a   : > { %10421 = vst [vmem:[#allocation76_spill] sm:$0xff] %v8161_v41  ;;  %v976_v37 = vadd.f32 %v811_v44, %v810_v30  ;;  %v8181_v4 = vsub.f32 %v6528_v10, %v7791_v62  ;;  %967 = vadd.xlane.f32.xlu1 %v966_v52  ;;  %v814_v58 = vmul.f32 %v8147_v12, %v8147_v12 }
 0x12b   : > { %10422 = vst [vmem:[#allocation77_spill] sm:$0xff] %v8169_v39  ;;  %10423 = vst [vmem:[#allocation78_spill] sm:$0xff] %v8175_v57  ;;  %v8189_v30 = vsub.f32 %v6529_v23, %v7791_v62  ;;  %v8195_v44 = vsub.f32 %v6530_v7, %v7791_v62  ;;  %v828_v52 = vmul.f32 %v8169_v39, %v8169_v39 }
 0x12c   : > { %10424 = vst [vmem:[#allocation79_spill] sm:$0xff] %v8181_v4  ;;  %v986_v31 = vadd.f32 %v985_v8, %v820_v35  ;;  %v977_v10 = vadd.f32 %v976_v37, %v812_v34  ;;  %v829_v12 = vmul.f32 %v8175_v57, %v8175_v57  ;;  %v830_v33 = vmul.f32 %v8181_v4, %v8181_v4  ;;  %v6532_v35 = vld [vmem:[%s10151_s0 + $0x360] sm:$0xff]  ;;  %v6533_v57 = vld [vmem:[%s10151_s0 + $0x368] sm:$0xff] }
 0x12d   : > { %10425 = vst [vmem:[#allocation80_spill] sm:$0xff] %v8189_v30  ;;  %10426 = vst [vmem:[#allocation81_spill] sm:$0xff] %v8195_v44  ;;  %v815_v23 = vmul.f32 %v8161_v41, %v8161_v41  ;;  %v8209_v7 = vsub.f32 %v6531_v20, %v7791_v62  ;;  %v831_v8 = vmul.f32 %v8189_v30, %v8189_v30  ;;  %v6534_v30 = vld [vmem:[%s10151_s0 + $0x370] sm:$0xff] }
 0x12e   : > { %v8217_v34 = vsub.f32 %v6532_v35, %v7849_v60  ;;  %v987_v37 = vadd.f32 %v986_v31, %v821_v56  ;;  %v978_v4 = vadd.f32 %v977_v10, %v813_v28  ;;  %v997_v39 = vadd.f32 %v829_v12, %v828_v52  ;;  %v6535_v28 = vld [vmem:[%s10151_s0 + $0x378] sm:$0xff]  ;;  %v6536_v56 = vld [vmem:[%s10151_s0 + $0x380] sm:$0xff] }
 0x12f   : > { %v8223_v62 = vsub.f32 %v6533_v57, %v7849_v60  ;;  %v832_v20 = vmul.f32 %v8195_v44, %v8195_v44  ;;  %v8231_v35 = vsub.f32 %v6534_v30, %v7849_v60  ;;  %v8237_v12 = vsub.f32 %v6535_v28, %v7849_v60  ;;  %v6537_v44 = vld [vmem:[%s10151_s0 + $0x388] sm:$0xff] }
 0x130   : > { %10427 = vst [vmem:[#allocation82_spill] sm:$0xff] %v8217_v34  ;;  %v8243_v57 = vsub.f32 %v6536_v56, %v7849_v60  ;;  %988 = vadd.xlane.f32.xlu0 %v987_v37  ;;  %v979_v52 = vadd.f32 %v978_v4, %v814_v58  ;;  %v998_v31 = vadd.f32 %v997_v39, %v830_v33  ;;  %v6538_v56 = vld [vmem:[%s10151_s0 + $0x3f0] sm:$0xff] }
 0x131   : > { %10428 = vst [vmem:[#allocation83_spill] sm:$0xff] %v8231_v35  ;;  %v822_v30 = vmul.f32 %v8217_v34, %v8217_v34  ;;  %v823_v10 = vmul.f32 %v8223_v62, %v8223_v62  ;;  %v833_v28 = vmul.f32 %v8209_v7, %v8209_v7  ;;  %v8255_v41 = vsub.f32 %v6537_v44, %v7849_v60  ;;  %v6539_v44 = vld [vmem:[%s10151_s0 + $0x3f8] sm:$0xff] }
 0x132   : > { %10429 = vst [vmem:[#allocation84_spill] sm:$0xff] %v8243_v57  ;;  %v824_v4 = vmul.f32 %v8231_v35, %v8231_v35  ;;  %v825_v33 = vmul.f32 %v8237_v12, %v8237_v12  ;;  %v980_v39 = vadd.f32 %v979_v52, %v815_v23  ;;  %v999_v58 = vadd.f32 %v998_v31, %v831_v8  ;;  %v6540_v23 = vld [vmem:[%s10151_s0 + $0x400] sm:$0xff]  ;;  %v6541_v52 = vld [vmem:[%s10151_s0 + $0x408] sm:$0xff] }
 0x133   : > { %10430 = vst [vmem:[#allocation85_spill] sm:$0xff] %v8255_v41  ;;  %v990_v37 = vadd.f32 %v823_v10, %v822_v30  ;;  %v8265_v34 = vsub.f32 %v6538_v56, %v7893_v59  ;;  %v826_v60 = vmul.f32 %v8243_v57, %v8243_v57  ;;  %v8273_v35 = vsub.f32 %v6539_v44, %v7893_v59  ;;  %v6542_v56 = vld [vmem:[%s10151_s0 + $0x410] sm:$0xff] }
 0x134   : > { %v8279_v8 = vsub.f32 %v6540_v23, %v7893_v59  ;;  %v8285_v31 = vsub.f32 %v6541_v52, %v7893_v59  ;;  %981 = vadd.xlane.f32.xlu1 %v980_v39  ;;  %v1000_v30 = vadd.f32 %v999_v58, %v832_v20  ;;  %v8291_v44 = vsub.f32 %v6542_v56, %v7893_v59  ;;  %v6543_v52 = vld [vmem:[%s10151_s0 + $0x418] sm:$0xff] }
 0x135   : > { %10431 = vst [vmem:[#allocation86_spill] sm:$0xff] %v8265_v34  ;;  %10432 = vst [vmem:[#allocation87_spill] sm:$0xff] %v8273_v35  ;;  %v991_v10 = vadd.f32 %v990_v37, %v824_v4  ;;  %v840_v23 = vmul.f32 %v8265_v34, %v8265_v34  ;;  %v827_v57 = vmul.f32 %v8255_v41, %v8255_v41  ;;  %v6544_v34 = vld [vmem:[%s10151_s0 + $0x3c0] sm:$0xff] }
 0x136   : > { %10433 = vst [vmem:[#allocation88_spill] sm:$0xff] %v8279_v8  ;;  %10434 = vst [vmem:[#allocation89_spill] sm:$0xff] %v8291_v44  ;;  %v8301_v20 = vsub.f32 %v6543_v52, %v7893_v59  ;;  %v841_v4 = vmul.f32 %v8273_v35, %v8273_v35  ;;  %v842_v39 = vmul.f32 %v8279_v8, %v8279_v8  ;;  %v6545_v52 = vld [vmem:[%s10151_s0 + $0x3c8] sm:$0xff] }
 0x137   : > { %v1001_v58 = vadd.f32 %v1000_v30, %v833_v28  ;;  %v992_v37 = vadd.f32 %v991_v10, %v825_v33  ;;  %v843_v56 = vmul.f32 %v8285_v31, %v8285_v31  ;;  %v8313_v41 = vsub.f32 %v6544_v34, %v7953_v51  ;;  %v6546_v28 = vld [vmem:[%s10151_s0 + $0x3d0] sm:$0xff]  ;;  %v6547_v34 = vld [vmem:[%s10151_s0 + $0x3d8] sm:$0xff] }
 0x138   : > { %10435 = vst [vmem:[#allocation90_spill] sm:$0xff] %v8301_v20  ;;  %v1011_v59 = vadd.f32 %v841_v4, %v840_v23  ;;  %v8319_v35 = vsub.f32 %v6545_v52, %v7953_v51  ;;  %v8325_v33 = vsub.f32 %v6546_v28, %v7953_v51  ;;  %v8331_v30 = vsub.f32 %v6547_v34, %v7953_v51  ;;  %v6548_v4 = vld [vmem:[%s10151_s0 + $0x3e0] sm:$0xff] }
 0x139   : > { %10436 = vst [vmem:[#allocation91_spill] sm:$0xff] %v8313_v41  ;;  %1002 = vadd.xlane.f32.xlu0 %v1001_v58  ;;  %v993_v10 = vadd.f32 %v992_v37, %v826_v60  ;;  %v844_v23 = vmul.f32 %v8291_v44, %v8291_v44  ;;  %v8339_v52 = vsub.f32 %v6548_v4, %v7953_v51  ;;  %v6549_v44 = vld [vmem:[%s10151_s0 + $0x3e8] sm:$0xff] }
 0x13a   : > { %10437 = vst [vmem:[#allocation92_spill] sm:$0xff] %v8319_v35  ;;  %10438 = vst [vmem:[#allocation93_spill] sm:$0xff] %v8325_v33  ;;  %v834_v28 = vmul.f32 %v8313_v41, %v8313_v41  ;;  %v845_v8 = vmul.f32 %v8301_v20, %v8301_v20  ;;  %v1012_v34 = vadd.f32 %v1011_v59, %v842_v39  ;;  %v6550_v39 = vld [vmem:[%s10151_s0 + $0x450] sm:$0xff]  ;;  %v6555_v20 = vld [vmem:[%s10151_s0 + $0x478] sm:$0xff] }
 0x13b   : > { %10439 = vst [vmem:[#allocation94_spill] sm:$0xff] %v8331_v30  ;;  %10440 = vst [vmem:[#allocation95_spill] sm:$0xff] %v8339_v52  ;;  %v835_v60 = vmul.f32 %v8319_v35, %v8319_v35  ;;  %v836_v58 = vmul.f32 %v8325_v33, %v8325_v33  ;;  %v994_v37 = vadd.f32 %v993_v10, %v827_v57  ;;  %v6551_v57 = vld [vmem:[%s10151_s0 + $0x458] sm:$0xff] }
 0x13c   : > { %v8353_v4 = vsub.f32 %v6549_v44, %v7953_v51  ;;  %v837_v41 = vmul.f32 %v8331_v30, %v8331_v30  ;;  %v8361_v59 = vsub.f32 %v6550_v39, %v7985_v54  ;;  %v1013_v35 = vadd.f32 %v1012_v34, %v843_v56  ;;  %v6552_v51 = vld [vmem:[%s10151_s0 + $0x460] sm:$0xff]  ;;  %v6553_v56 = vld [vmem:[%s10151_s0 + $0x468] sm:$0xff]  ;;  %v6554_v34 = vld [vmem:[%s10151_s0 + $0x470] sm:$0xff] }
 0x13d   : > { %v1004_v33 = vadd.f32 %v835_v60, %v834_v28  ;;  %v8367_v10 = vsub.f32 %v6551_v57, %v7985_v54  ;;  %v8373_v44 = vsub.f32 %v6552_v51, %v7985_v54  ;;  %995 = vadd.xlane.f32.xlu1 %v994_v37  ;;  %v838_v39 = vmul.f32 %v8339_v52, %v8339_v52 }
 0x13e   : > { %10441 = vst [vmem:[#allocation96_spill] sm:$0xff] %v8353_v4  ;;  %10442 = vst [vmem:[#allocation97_spill] sm:$0xff] %v8361_v59  ;;  %v8381_v28 = vsub.f32 %v6553_v56, %v7985_v54  ;;  %v8387_v60 = vsub.f32 %v6554_v34, %v7985_v54  ;;  %v852_v37 = vmul.f32 %v8361_v59, %v8361_v59 }
 0x13f   : > { %10443 = vst [vmem:[#allocation98_spill] sm:$0xff] %v8367_v10  ;;  %10444 = vst [vmem:[#allocation99_spill] sm:$0xff] %v8373_v44  ;;  %v1014_v57 = vadd.f32 %v1013_v35, %v844_v23  ;;  %v1005_v51 = vadd.f32 %v1004_v33, %v836_v58  ;;  %v853_v52 = vmul.f32 %v8367_v10, %v8367_v10  ;;  %v6556_v33 = vld [vmem:[%s10151_s0 + $0x420] sm:$0xff]  ;;  %v6557_v10 = vld [vmem:[%s10151_s0 + $0x428] sm:$0xff] }
 0x140   : > { %10445 = vst [vmem:[#allocation100_spill] sm:$0xff] %v8381_v28  ;;  %10446 = vst [vmem:[#allocation101_spill] sm:$0xff] %v8387_v60  ;;  %v854_v30 = vmul.f32 %v8373_v44, %v8373_v44  ;;  %v839_v56 = vmul.f32 %v8353_v4, %v8353_v4  ;;  %v8401_v34 = vsub.f32 %v6555_v20, %v7985_v54 }
 0x141   : > { %v855_v35 = vmul.f32 %v8381_v28, %v8381_v28  ;;  %v8409_v23 = vsub.f32 %v6556_v33, %v8007_v38  ;;  %v1015_v58 = vadd.f32 %v1014_v57, %v845_v8  ;;  %v1006_v44 = vadd.f32 %v1005_v51, %v837_v41  ;;  %v6558_v28 = vld [vmem:[%s10151_s0 + $0x430] sm:$0xff]  ;;  %v6559_v41 = vld [vmem:[%s10151_s0 + $0x438] sm:$0xff] }
 0x142   : > { %10447 = vst [vmem:[#allocation102_spill] sm:$0xff] %v8401_v34  ;;  %v1025_v59 = vadd.f32 %v853_v52, %v852_v37  ;;  %v8415_v54 = vsub.f32 %v6557_v10, %v8007_v38  ;;  %v856_v20 = vmul.f32 %v8387_v60, %v8387_v60  ;;  %v8423_v33 = vsub.f32 %v6558_v28, %v8007_v38  ;;  %v6560_v52 = vld [vmem:[%s10151_s0 + $0x440] sm:$0xff]  ;;  %v6561_v60 = vld [vmem:[%s10151_s0 + $0x448] sm:$0xff] }
 0x143   : > { %10448 = vst [vmem:[#allocation103_spill] sm:$0xff] %v8409_v23  ;;  %v8429_v8 = vsub.f32 %v6559_v41, %v8007_v38  ;;  %v8435_v10 = vsub.f32 %v6560_v52, %v8007_v38  ;;  %1016 = vadd.xlane.f32.xlu0 %v1015_v58  ;;  %v1007_v37 = vadd.f32 %v1006_v44, %v838_v39 }
 0x144   : > { %10449 = vst [vmem:[#allocation104_spill] sm:$0xff] %v8415_v54  ;;  %10450 = vst [vmem:[#allocation105_spill] sm:$0xff] %v8423_v33  ;;  %v1026_v57 = vadd.f32 %v1025_v59, %v854_v30  ;;  %v846_v28 = vmul.f32 %v8409_v23, %v8409_v23  ;;  %v847_v51 = vmul.f32 %v8415_v54, %v8415_v54 }
 0x145   : > { %v857_v41 = vmul.f32 %v8401_v34, %v8401_v34  ;;  %v8447_v4 = vsub.f32 %v6561_v60, %v8007_v38  ;;  %v848_v44 = vmul.f32 %v8423_v33, %v8423_v33  ;;  %v1008_v30 = vadd.f32 %v1007_v37, %v839_v56  ;;  %v6040_v37 = vld [vmem:[%s6752_s7 + $0xc] ss:$24 sps:$4 sm:$0xff]  }
 0x146   : > { %v1027_v59 = vadd.f32 %v1026_v57, %v855_v35  ;;  %v849_v39 = vmul.f32 %v8429_v8, %v8429_v8  ;;  %v1018_v58 = vadd.f32 %v847_v51, %v846_v28  ;;  %v850_v23 = vmul.f32 %v8435_v10, %v8435_v10  ;;  %v6034_v35 = vld [vmem:[%s6752_s7 + $0x604] ss:$24 sps:$4 sm:$0xff]   ;;  %3591 = vmatprep.subr.bf16.mxu1 %v6040_v37 }
 0x147   : > { %1009 = vadd.xlane.f32.xlu1 %v1008_v30  ;;  %v851_v38 = vmul.f32 %v8447_v4, %v8447_v4  ;;  %3430 = vmatprep.subr.bf16.mxu0 %v6034_v35  ;;  %v6567_v35 = vld [vmem:[%s10151_s0 + $0x4a8] sm:$0xf] }
 0x148   : > { %v1028_v52 = vadd.f32 %v1027_v59, %v856_v20  ;;  %v1019_v54 = vadd.f32 %v1018_v58, %v848_v44 }
 0x14a   : > { %v1029_v34 = vadd.f32 %v1028_v52, %v857_v41  ;;  %v1020_v60 = vadd.f32 %v1019_v54, %v849_v39  ;;  %v6563_v54 = vld [vmem:[%s10151_s0 + $0x488] sm:$0xf]  ;;  %v6564_v39 = vld [vmem:[%s10151_s0 + $0x490] sm:$0xf]  ;;  %v6565_v52 = vld [vmem:[%s10151_s0 + $0x498] sm:$0xf] }
 0x14c   : > { %1030 = vadd.xlane.f32.xlu0 %v1029_v34  ;;  %v1021_v33 = vadd.f32 %v1020_v60, %v850_v23  ;;  %v6562_v34 = vld [vmem:[%s10151_s0 + $0x480] sm:$0xf] }
 0x14d   : > { %v6566_v60 = vld [vmem:[%s10151_s0 + $0x4a0] sm:$0xf] }
 0x14e   : > { %v1022_v56 = vadd.f32 %v1021_v33, %v851_v38 }
 0x150   : > { %1023 = vadd.xlane.f32.xlu1 %v1022_v56 }
 0x16e   : > { %v870_v57 = vpop.xlane.xlu0 %869 }
 0x16f   : > { %v1045_v28 = vmul.f32 0.0013020834, %v870_v57 }
 0x171   : > { %v1070_v20 = vadd.f32 1e-06, %v1045_v28 }
 0x172   : > { %v877_v51 = vpop.xlane.xlu1 %876  ;;  %v537_v30 = vpop.xlane.xlu0 %536 }
 0x173   : > { %6368 = vrsqrt.f32 %v1070_v20  ;;  %v1046_v44 = vmul.f32 0.0013020834, %v877_v51  ;;  %v563_v41 = vmul.f32 0.0013020834, %v537_v30 }
 0x175   : > { %v1071_v59 = vadd.f32 1e-06, %v1046_v44  ;;  %v8462_v23 = vsub.f32 %v6562_v34, %v563_v41  ;;  %v8467_v33 = vsub.f32 %v6563_v54, %v563_v41  ;;  %v8472_v58 = vsub.f32 %v6564_v39, %v563_v41 }
 0x176   : > { %v8477_v38 = vsub.f32 %v6565_v52, %v563_v41  ;;  %v8482_v56 = vsub.f32 %v6566_v60, %v563_v41  ;;  %v8487_v37 = vsub.f32 %v6567_v35, %v563_v41  ;;  %v891_v57 = vpop.xlane.xlu0 %890 }
 0x177   : > { %10451 = vst [vmem:[#allocation106_spill] sm:$0xff] %v8462_v23  ;;  %10452 = vst [vmem:[#allocation107_spill] sm:$0xff] %v8467_v33  ;;  %6370 = vrsqrt.f32 %v1071_v59  ;;  %v858_v28 = vmul.f32 %v8462_v23, %v8462_v23  ;;  %v859_v20 = vmul.f32 %v8467_v33, %v8467_v33  ;;  %v860_v51 = vmul.f32 %v8472_v58, %v8472_v58 }
 0x178   : > { %10453 = vst [vmem:[#allocation108_spill] sm:$0xff] %v8472_v58  ;;  %10454 = vst [vmem:[#allocation109_spill] sm:$0xff] %v8477_v38  ;;  %v1048_v30 = vmul.f32 0.0013020834, %v891_v57  ;;  %v861_v44 = vmul.f32 %v8477_v38, %v8477_v38  ;;  %v862_v52 = vmul.f32 %v8482_v56, %v8482_v56  ;;  %v863_v60 = vmul.f32 %v8487_v37, %v8487_v37 }
 0x179   : > { %10455 = vst [vmem:[#allocation110_spill] sm:$0xff] %v8482_v56  ;;  %10456 = vst [vmem:[#allocation111_spill] sm:$0xff] %v8487_v37  ;;  %v1032_v34 = vsel %vm524_vm0, %v858_v28, 0.0  ;;  %v1033_v41 = vsel %vm524_vm0, %v859_v20, 0.0  ;;  %v1035_v35 = vsel %vm524_vm0, %v860_v51, 0.0 }
 0x17a   : > { %v1073_v54 = vadd.f32 1e-06, %v1048_v30  ;;  %v1034_v59 = vadd.f32 %v1033_v41, %v1032_v34  ;;  %v1037_v38 = vsel %vm524_vm0, %v861_v44, 0.0  ;;  %v1039_v20 = vsel %vm524_vm0, %v862_v52, 0.0 }
 0x17b   : > { %v884_v39 = vpop.xlane.xlu1 %883  ;;  %v1041_v30 = vsel %vm524_vm0, %v863_v60, 0.0 }
 0x17c   : > { %v1047_v58 = vmul.f32 0.0013020834, %v884_v39  ;;  %6372 = vrsqrt.f32 %v1073_v54  ;;  %v1036_v57 = vadd.f32 %v1035_v35, %v1034_v59  ;;  %v6046_v35 = vld [vmem:[%s6752_s7 + $0x3c] ss:$24 sps:$4 sm:$0xff]  }
 0x17d   : > { %v6369_v23 = vpop.eup %6368 }
 0x17e   : > { %v1072_v28 = vadd.f32 1e-06, %v1047_v58  ;;  %v1038_v33 = vadd.f32 %v1037_v38, %v1036_v57  ;;  %v1121_v34 = vmul.f32 %v6369_v23, %v7237_v45  ;;  %v1123_v37 = vmul.f32 %v6369_v23, %v7251_v53 }
 0x17f   : > { %v1120_v51 = vmul.f32 %v6369_v23, %v7232_v43  ;;  %v1122_v44 = vmul.f32 %v6369_v23, %v7242_v47  ;;  %v1125_v58 = vmul.f32 %v6369_v23, %v7271_v2  ;;  %v1124_v38 = vmul.f32 %v6369_v23, %v7256_v55 }
 0x180   : > { %6374 = vrsqrt.f32 %v1072_v28  ;;  %v905_v41 = vpop.xlane.xlu0 %904  ;;  %v1040_v56 = vadd.f32 %v1039_v20, %v1038_v33  ;;  %v6035_v28 = vld [vmem:[%s6752_s7 + $0x630] ss:$24 sps:$4 sm:$0xff]  }
 0x181   : > { %v6371_v54 = vpop.eup %6370  ;;  %v1050_v59 = vmul.f32 0.0013020834, %v905_v41  ;;  %v6044_v20 = vld [vmem:[%s6752_s7 + $0x38] ss:$24 sps:$4 sm:$0xff]  }
 0x182   : > { %v1042_v39 = vadd.f32 %v1041_v30, %v1040_v56  ;;  %v1127_v45 = vmul.f32 %v6371_v54, %v7287_v11  ;;  %v1129_v33 = vmul.f32 %v6371_v54, %v7297_v15  ;;  %v1126_v53 = vmul.f32 %v6371_v54, %v7282_v9  ;;  %v6032_v56 = vld [vmem:[%s6752_s7 + $0x600] ss:$24 sps:$4 sm:$0xff]   ;;  %v6037_v9 = vld [vmem:[%s6752_s7 + $0x634] ss:$24 sps:$4 sm:$0xff]  }
 0x183   : > { %v1075_v43 = vadd.f32 1e-06, %v1050_v59  ;;  %v1128_v52 = vmul.f32 %v6371_v54, %v7292_v13  ;;  %v1131_v60 = vmul.f32 %v6371_v54, %v7307_v19  ;;  %v1130_v47 = vmul.f32 %v6371_v54, %v7302_v17  ;;  %v6038_v11 = vld [vmem:[%s6752_s7 + $0x8] ss:$24 sps:$4 sm:$0xff]   ;;  %v6052_v54 = vld [vmem:[%s6752_s7 + $0x6c] ss:$24 sps:$4 sm:$0xff]  }
 0x184   : > { %1043 = vadd.xlane.f32.xlu1 %v1042_v39  ;;  %v8519_v2 = vpack.c.bf16 %v1127_v45, %v1121_v34  ;;  %v8521_v55 = vpack.c.bf16 %v1129_v33, %v1123_v37  ;;  %v8523_v23 = vpack.c.bf16 %v1126_v53, %v1120_v51  ;;  %v6043_v51 = vld [vmem:[%s6752_s7 + $0x664] ss:$24 sps:$4 sm:$0xff]  }
 0x185   : > { %v8527_v15 = vpack.c.bf16 %v1128_v52, %v1122_v44  ;;  %v8531_v13 = vpack.c.bf16 %v1131_v60, %v1125_v58  ;;  %v8533_v19 = vpack.c.bf16 %v1130_v47, %v1124_v38  ;;  %6376 = vrsqrt.f32 %v1075_v43  ;;  %v6041_v52 = vld [vmem:[%s6752_s7 + $0x660] ss:$24 sps:$4 sm:$0xff]   ;;  %v6049_v47 = vld [vmem:[%s6752_s7 + $0x694] ss:$24 sps:$4 sm:$0xff]  }
 0x186   : > { %10457 = vst [vmem:[#allocation112_spill] sm:$0xff] %v8521_v55  ;;  %v6373_v17 = vpop.eup %6372  ;;  %3140 = vmatprep.mubr.bf16.mxu1 %v8519_v2  ;;  %3301 = vmatprep.mubr.bf16.mxu0 %v8521_v55 }
 0x187   : > { %10458 = vst [vmem:[#allocation113_spill] sm:$0xff] %v8527_v15  ;;  %v898_v57 = vpop.xlane.xlu1 %897  ;;  %3141 = vmatmul.mubr.bf16.vlgmr.msra.gmra.mrb[0].mxu1 %v8523_v23  ;;  %3302 = vmatmul.mubr.bf16.vlgmr.msra.gmra.mrb[0].mxu0 %v8527_v15  ;;  %v1139_v34 = vmul.f32 %v6373_v17, %v7339_v40  ;;  %v1141_v41 = vmul.f32 %v6373_v17, %v7349_v46  ;;  %v10526_v15 = vld [vmem:[#allocation57_spill] sm:$0xff] }
 0x188   : > { %v1049_v37 = vmul.f32 0.0013020834, %v898_v57  ;;  %3431 = vmatpush1.bf16.msra.mxu0 %v6032_v56  ;;  %3592 = vmatpush1.bf16.msra.mxu1 %v6038_v11  ;;  %v1138_v58 = vmul.f32 %v6373_v17, %v7317_v25  ;;  %v1140_v38 = vmul.f32 %v6373_v17, %v7344_v42  ;;  %v1143_v39 = vmul.f32 %v6373_v17, %v7366_v63  ;;  %v6056_v57 = vld [vmem:[%s6752_s7 + $0x98] ss:$24 sps:$4 sm:$0xff]  }
 0x189   : > { %3432 = vmatprep.subr.bf16.mxu0 %v6037_v9  ;;  %3593 = vmatprep.subr.bf16.mxu1 %v6046_v35  ;;  %v1142_v45 = vmul.f32 %v6373_v17, %v7354_v49  ;;  %v6047_v17 = vld [vmem:[%s6752_s7 + $0x690] ss:$24 sps:$4 sm:$0xff]  }
 0x18a   : > { %v1074_v30 = vadd.f32 1e-06, %v1049_v37  ;;  %v6375_v59 = vpop.eup %6374  ;;  %v6055_v37 = vld [vmem:[%s6752_s7 + $0x6c4] ss:$24 sps:$4 sm:$0xff]  }
 0x18b   : > { %v919_v44 = vpop.xlane.xlu0 %918  ;;  %v1133_v46 = vmul.f32 %v6375_v59, %v7385_v18  ;;  %v1135_v33 = vmul.f32 %v6375_v59, %v7400_v27  ;;  %v1132_v53 = vmul.f32 %v6375_v59, %v7329_v32  ;;  %v1134_v43 = vmul.f32 %v6375_v59, %v7391_v21  ;;  %v6050_v18 = vld [vmem:[%s6752_s7 + $0x68] ss:$24 sps:$4 sm:$0xff]  }
 0x18c   : > { %6378 = vrsqrt.f32 %v1074_v30  ;;  %v1052_v40 = vmul.f32 0.0013020834, %v919_v44  ;;  %3433 = vmatpush1.bf16.msra.mxu0 %v6035_v28  ;;  %3594 = vmatpush1.bf16.msra.mxu1 %v6044_v20  ;;  %v1137_v25 = vmul.f32 %v6375_v59, %v7423_v48  ;;  %v1136_v27 = vmul.f32 %v6375_v59, %v7406_v29  ;;  %v6058_v48 = vld [vmem:[%s6752_s7 + $0x9c] ss:$24 sps:$4 sm:$0xff]   ;;  %v6064_v28 = vld [vmem:[%s6752_s7 + $0xcc] ss:$24 sps:$4 sm:$0xff]  }
 0x18d   : > { %v8554_v63 = vpack.c.bf16 %v1139_v34, %v1133_v46  ;;  %v8556_v49 = vpack.c.bf16 %v1141_v41, %v1135_v33  ;;  %3434 = vmatprep.subr.bf16.mxu0 %v6043_v51  ;;  %3595 = vmatprep.subr.bf16.mxu1 %v6052_v54  ;;  %v8561_v60 = vpack.c.bf16 %v1138_v58, %v1132_v53  ;;  %v6053_v44 = vld [vmem:[%s6752_s7 + $0x6c0] ss:$24 sps:$4 sm:$0xff]   ;;  %v10462_v46 = vld [vmem:[#allocation7_spill] sm:$0xff] }
 0x18e   : > { %v1077_v42 = vadd.f32 1e-06, %v1052_v40  ;;  %v8563_v21 = vpack.c.bf16 %v1140_v38, %v1134_v43  ;;  %v8567_v56 = vpack.c.bf16 %v1143_v39, %v1137_v25  ;;  %v8571_v29 = vpack.c.bf16 %v1142_v45, %v1136_v27  ;;  %v6062_v58 = vld [vmem:[%s6752_s7 + $0xc8] ss:$24 sps:$4 sm:$0xff]   ;;  %v10461_v40 = vld [vmem:[#allocation9_spill] sm:$0xff] }
 0x18f   : > { %10459 = vst [vmem:[#allocation114_spill] sm:$0xff] %v8556_v49  ;;  %v912_v32 = vpop.xlane.xlu1 %911  ;;  %3150 = vmatprep.mubr.bf16.mxu1 %v8554_v63  ;;  %3311 = vmatprep.mubr.bf16.mxu0 %v8556_v49  ;;  %v6377_v9 = vpop.eup %6376  ;;  %v10464_v53 = vld [vmem:[#allocation11_spill] sm:$0xff]  ;;  %v10465_v25 = vld [vmem:[#allocation10_spill] sm:$0xff] }
 0x190   : > { %10460 = vst [vmem:[#allocation115_spill] sm:$0xff] %v8563_v21  ;;  %v1051_v11 = vmul.f32 0.0013020834, %v912_v32  ;;  %6380 = vrsqrt.f32 %v1077_v42  ;;  %3151 = vmatmul.mubr.bf16.gmra.mrb[4].mxu1 %v8561_v60  ;;  %3312 = vmatmul.mubr.bf16.gmra.mrb[4].mxu0 %v8563_v21  ;;  %v1151_v34 = vmul.f32 %v6377_v9, %v7445_v3  ;;  %v1153_v41 = vmul.f32 %v6377_v9, %v7457_v14  ;;  %v10466_v42 = vld [vmem:[#allocation6_spill] sm:$0xff]  ;;  %v6061_v32 = vld [vmem:[%s6752_s7 + $0x6f4] ss:$24 sps:$4 sm:$0xff]  }
 0x191   : > { %3435 = vmatpush1.bf16.msra.mxu0 %v6041_v52  ;;  %3596 = vmatpush1.bf16.msra.mxu1 %v6050_v18  ;;  %v1150_v54 = vmul.f32 %v6377_v9, %v7439_v0  ;;  %v1152_v59 = vmul.f32 %v6377_v9, %v7451_v61  ;;  %v1155_v38 = vmul.f32 %v6377_v9, %v7471_v26  ;;  %v10463_v61 = vld [vmem:[#allocation8_spill] sm:$0xff] }
 0x192   : > { %v1076_v35 = vadd.f32 1e-06, %v1051_v11  ;;  %3436 = vmatprep.subr.bf16.mxu0 %v6049_v47  ;;  %3597 = vmatprep.subr.bf16.mxu1 %v6058_v48  ;;  %v1154_v52 = vmul.f32 %v6377_v9, %v10466_v42  ;;  %v6070_v47 = vld [vmem:[%s6752_s7 + $0xfc] ss:$24 sps:$4 sm:$0xff]  }
 0x194   : > { %6382 = vrsqrt.f32 %v1076_v35 }
 0x195   : > { %v933_v20 = vpop.xlane.xlu0 %932  ;;  %3437 = vmatpush1.bf16.msra.mxu0 %v6047_v17  ;;  %3598 = vmatpush1.bf16.msra.mxu1 %v6056_v57  ;;  %v6059_v17 = vld [vmem:[%s6752_s7 + $0x6f0] ss:$24 sps:$4 sm:$0xff]  }
 0x196   : > { %v1054_v30 = vmul.f32 0.0013020834, %v933_v20  ;;  %v6379_v51 = vpop.eup %6378  ;;  %3438 = vmatprep.subr.bf16.mxu0 %v6055_v37  ;;  %3599 = vmatprep.subr.bf16.mxu1 %v6064_v28  ;;  %v6068_v57 = vld [vmem:[%s6752_s7 + $0xf8] ss:$24 sps:$4 sm:$0xff]   ;;  %v6067_v28 = vld [vmem:[%s6752_s7 + $0x724] ss:$24 sps:$4 sm:$0xff]  }
 0x197   : > { %v1145_v45 = vmul.f32 %v6379_v51, %v7501_v1  ;;  %v1147_v3 = vmul.f32 %v6379_v51, %v10461_v40  ;;  %v1144_v14 = vmul.f32 %v6379_v51, %v10462_v46  ;;  %v1146_v33 = vmul.f32 %v6379_v51, %v10463_v61  ;;  %v10469_v20 = vld [vmem:[#allocation13_spill] sm:$0xff]  ;;  %v6074_v46 = vld [vmem:[%s6752_s7 + $0x128] ss:$24 sps:$4 sm:$0xff]  }
 0x198   : > { %v1079_v39 = vadd.f32 1e-06, %v1054_v30  ;;  %v1149_v43 = vmul.f32 %v6379_v51, %v10464_v53  ;;  %v1148_v26 = vmul.f32 %v6379_v51, %v10465_v25 }
 0x199   : > { %v926_v0 = vpop.xlane.xlu1 %925  ;;  %v8593_v1 = vpack.c.bf16 %v1151_v34, %v1145_v45  ;;  %v8595_v27 = vpack.c.bf16 %v1153_v41, %v1147_v3  ;;  %v8599_v11 = vpack.c.bf16 %v1150_v54, %v1144_v14  ;;  %v8601_v35 = vpack.c.bf16 %v1152_v59, %v1146_v33  ;;  %3439 = vmatpush1.bf16.msra.mxu0 %v6053_v44  ;;  %v6076_v34 = vld [vmem:[%s6752_s7 + $0x12c] ss:$24 sps:$4 sm:$0xff]   ;;  %v10471_v44 = vld [vmem:[#allocation12_spill] sm:$0xff]  ;;  %v6065_v3 = vld [vmem:[%s6752_s7 + $0x720] ss:$24 sps:$4 sm:$0xff]  }
 0x19a   : > { %v1053_v18 = vmul.f32 0.0013020834, %v926_v0  ;;  %6384 = vrsqrt.f32 %v1079_v39  ;;  %v6381_v48 = vpop.eup %6380  ;;  %3600 = vmatpush1.bf16.msra.mxu1 %v6062_v58  ;;  %v8605_v9 = vpack.c.bf16 %v1155_v38, %v1149_v43  ;;  %v8614_v41 = vpack.c.bf16 %v1154_v52, %v1148_v26  ;;  %v10470_v54 = vld [vmem:[#allocation15_spill] sm:$0xff]  ;;  %v10472_v38 = vld [vmem:[#allocation14_spill] sm:$0xff]  ;;  %3440 = vmatprep.subr.bf16.mxu0 %v6061_v32  ;;  %v10473_v0 = vld [vmem:[#allocation16_spill] sm:$0xff] }
 0x19b   : > { %10467 = vst [vmem:[#allocation9_spill] sm:$0xff] %v8595_v27  ;;  %10468 = vst [vmem:[#allocation7_spill] sm:$0xff] %v8601_v35  ;;  %3160 = vmatprep.mubr.bf16.mxu1 %v8593_v1  ;;  %3321 = vmatprep.mubr.bf16.mxu0 %v8595_v27  ;;  %v1163_v30 = vmul.f32 %v6381_v48, %v10469_v20  ;;  %v1165_v59 = vmul.f32 %v6381_v48, %v10470_v54  ;;  %v10474_v33 = vld [vmem:[#allocation18_spill] sm:$0xff]  ;;  %v10475_v43 = vld [vmem:[#allocation20_spill] sm:$0xff] }
 0x19c   : > { %v1078_v37 = vadd.f32 1e-06, %v1053_v18  ;;  %3161 = vmatmul.mubr.bf16.gmra.mrb[8].mxu1 %v8599_v11  ;;  %3322 = vmatmul.mubr.bf16.gmra.mrb[8].mxu0 %v8601_v35  ;;  %v1162_v58 = vmul.f32 %v6381_v48, %v10471_v44  ;;  %v1164_v39 = vmul.f32 %v6381_v48, %v10472_v38  ;;  %v1167_v14 = vmul.f32 %v6381_v48, %v7589_v36  ;;  %v10476_v26 = vld [vmem:[#allocation17_spill] sm:$0xff]  ;;  %v10477_v52 = vld [vmem:[#allocation19_spill] sm:$0xff] }
 0x19d   : > { %3601 = vmatprep.subr.bf16.mxu1 %v6070_v47  ;;  %3441 = vmatpush1.bf16.msra.mxu0 %v6059_v17  ;;  %v1166_v61 = vmul.f32 %v6381_v48, %v10473_v0  ;;  %v10478_v47 = vld [vmem:[#allocation22_spill] sm:$0xff]  ;;  %v10479_v36 = vld [vmem:[#allocation21_spill] sm:$0xff]  ;;  %v6073_v44 = vld [vmem:[%s6752_s7 + $0x754] ss:$24 sps:$4 sm:$0xff]  }
 0x19e   : > { %6386 = vrsqrt.f32 %v1078_v37  ;;  %v6383_v45 = vpop.eup %6382  ;;  %3602 = vmatpush1.bf16.msra.mxu1 %v6068_v57  ;;  %3442 = vmatprep.subr.bf16.mxu0 %v6067_v28  ;;  %v6082_v28 = vld [vmem:[%s6752_s7 + $0x15c] ss:$24 sps:$4 sm:$0xff]  }
 0x19f   : > { %v947_v51 = vpop.xlane.xlu0 %946  ;;  %v1157_v53 = vmul.f32 %v6383_v45, %v10474_v33  ;;  %v1159_v25 = vmul.f32 %v6383_v45, %v10475_v43  ;;  %v1156_v42 = vmul.f32 %v6383_v45, %v10476_v26  ;;  %v1158_v18 = vmul.f32 %v6383_v45, %v10477_v52  ;;  %3603 = vmatprep.subr.bf16.mxu1 %v6076_v34  ;;  %v6071_v34 = vld [vmem:[%s6752_s7 + $0x750] ss:$24 sps:$4 sm:$0xff]   ;;  %v10509_v35 = vld [vmem:[#allocation45_spill] sm:$0xff] }
 0x1a0   : > { %v1056_v40 = vmul.f32 0.0013020834, %v947_v51  ;;  %v1161_v17 = vmul.f32 %v6383_v45, %v10478_v47  ;;  %v1160_v57 = vmul.f32 %v6383_v45, %v10479_v36  ;;  %v6086_v47 = vld [vmem:[%s6752_s7 + $0x188] ss:$24 sps:$4 sm:$0xff]  }
 0x1a1   : > { %v8629_v48 = vpack.c.bf16 %v1163_v30, %v1157_v53  ;;  %v8631_v20 = vpack.c.bf16 %v1165_v59, %v1159_v25  ;;  %v8633_v51 = vpack.c.bf16 %v1162_v58, %v1156_v42  ;;  %v8635_v54 = vpack.c.bf16 %v1164_v39, %v1158_v18  ;;  %3443 = vmatpush1.bf16.msra.mxu0 %v6065_v3  ;;  %v6079_v58 = vld [vmem:[%s6752_s7 + $0x784] ss:$24 sps:$4 sm:$0xff]   ;;  %v10482_v3 = vld [vmem:[#allocation24_spill] sm:$0xff]  ;;  %v10484_v53 = vld [vmem:[#allocation23_spill] sm:$0xff] }
 0x1a2   : > { %v1081_v32 = vadd.f32 1e-06, %v1056_v40  ;;  %3604 = vmatpush1.bf16.msra.mxu1 %v6074_v46  ;;  %v6080_v40 = vld [vmem:[%s6752_s7 + $0x158] ss:$24 sps:$4 sm:$0xff]   ;;  %v8641_v45 = vpack.c.bf16 %v1167_v14, %v1161_v17  ;;  %v8643_v30 = vpack.c.bf16 %v1166_v61, %v1160_v57  ;;  %v6088_v39 = vld [vmem:[%s6752_s7 + $0x18c] ss:$24 sps:$4 sm:$0xff]   ;;  %3444 = vmatprep.subr.bf16.mxu0 %v6073_v44 }
 0x1a3   : > { %v940_v37 = vpop.xlane.xlu1 %939  ;;  %10480 = vst [vmem:[#allocation8_spill] sm:$0xff] %v8631_v20  ;;  %10481 = vst [vmem:[#allocation11_spill] sm:$0xff] %v8635_v54  ;;  %3170 = vmatprep.mubr.bf16.mxu1 %v8629_v48  ;;  %3331 = vmatprep.mubr.bf16.mxu0 %v8631_v20  ;;  %v10483_v61 = vld [vmem:[#allocation26_spill] sm:$0xff]  ;;  %v10485_v25 = vld [vmem:[#allocation25_spill] sm:$0xff] }
 0x1a4   : > { %v1055_v38 = vmul.f32 0.0013020834, %v940_v37  ;;  %6388 = vrsqrt.f32 %v1081_v32  ;;  %v6385_v59 = vpop.eup %6384  ;;  %3171 = vmatmul.mubr.bf16.gmra.mrb[12].mxu1 %v8633_v51  ;;  %3332 = vmatmul.mubr.bf16.gmra.mrb[12].mxu0 %v8635_v54  ;;  %v6077_v42 = vld [vmem:[%s6752_s7 + $0x780] ss:$24 sps:$4 sm:$0xff]   ;;  %v6085_v32 = vld [vmem:[%s6752_s7 + $0x7b4] ss:$24 sps:$4 sm:$0xff]  }
 0x1a5   : > { %v1175_v46 = vmul.f32 %v6385_v59, %v10482_v3  ;;  %3605 = vmatprep.subr.bf16.mxu1 %v6082_v28  ;;  %v1177_v33 = vmul.f32 %v6385_v59, %v10483_v61  ;;  %v1174_v43 = vmul.f32 %v6385_v59, %v10484_v53  ;;  %v1176_v26 = vmul.f32 %v6385_v59, %v10485_v25  ;;  %v10486_v17 = vld [vmem:[#allocation28_spill] sm:$0xff]  ;;  %v10487_v57 = vld [vmem:[#allocation27_spill] sm:$0xff]  ;;  %v10488_v44 = vld [vmem:[#allocation30_spill] sm:$0xff] }
 0x1a6   : > { %v1080_v0 = vadd.f32 1e-06, %v1055_v38  ;;  %3445 = vmatpush1.bf16.msra.mxu0 %v6071_v34  ;;  %3606 = vmatpush1.bf16.msra.mxu1 %v6080_v40  ;;  %v1179_v36 = vmul.f32 %v6385_v59, %v10486_v17  ;;  %v1178_v37 = vmul.f32 %v6385_v59, %v10487_v57  ;;  %v10489_v38 = vld [vmem:[#allocation32_spill] sm:$0xff]  ;;  %v10490_v3 = vld [vmem:[#allocation29_spill] sm:$0xff]  ;;  %v10491_v61 = vld [vmem:[#allocation31_spill] sm:$0xff] }
 0x1a7   : > { %3446 = vmatprep.subr.bf16.mxu0 %v6079_v58  ;;  %3607 = vmatprep.subr.bf16.mxu1 %v6088_v39  ;;  %v10492_v58 = vld [vmem:[#allocation34_spill] sm:$0xff]  ;;  %v10493_v39 = vld [vmem:[#allocation33_spill] sm:$0xff] }
 0x1a8   : > { %6390 = vrsqrt.f32 %v1080_v0  ;;  %v6387_v52 = vpop.eup %6386 }
 0x1a9   : > { %v961_v14 = vpop.xlane.xlu0 %960  ;;  %v1169_v28 = vmul.f32 %v6387_v52, %v10488_v44  ;;  %v1171_v0 = vmul.f32 %v6387_v52, %v10489_v38  ;;  %v1168_v34 = vmul.f32 %v6387_v52, %v10490_v3  ;;  %v1170_v40 = vmul.f32 %v6387_v52, %v10491_v61  ;;  %v6083_v44 = vld [vmem:[%s6752_s7 + $0x7b0] ss:$24 sps:$4 sm:$0xff]   ;;  %v6094_v38 = vld [vmem:[%s6752_s7 + $0x1bc] ss:$24 sps:$4 sm:$0xff]  }
 0x1aa   : > { %v1058_v18 = vmul.f32 0.0013020834, %v961_v14  ;;  %v1173_v53 = vmul.f32 %v6387_v52, %v10492_v58  ;;  %v1172_v25 = vmul.f32 %v6387_v52, %v10493_v39  ;;  %3447 = vmatpush1.bf16.msra.mxu0 %v6077_v42  ;;  %3608 = vmatpush1.bf16.msra.mxu1 %v6086_v47  ;;  %v6092_v52 = vld [vmem:[%s6752_s7 + $0x1b8] ss:$24 sps:$4 sm:$0xff]   ;;  %v6098_v39 = vld [vmem:[%s6752_s7 + $0x1e8] ss:$24 sps:$4 sm:$0xff]  }
 0x1ab   : > { %v8666_v17 = vpack.c.bf16 %v1175_v46, %v1169_v28  ;;  %v8668_v20 = vpack.c.bf16 %v1177_v33, %v1171_v0  ;;  %v8670_v59 = vpack.c.bf16 %v1174_v43, %v1168_v34  ;;  %v8672_v57 = vpack.c.bf16 %v1176_v26, %v1170_v40  ;;  %3448 = vmatprep.subr.bf16.mxu0 %v6085_v32  ;;  %v6100_v43 = vld [vmem:[%s6752_s7 + $0x1ec] ss:$24 sps:$4 sm:$0xff]   ;;  %v6089_v32 = vld [vmem:[%s6752_s7 + $0x7e0] ss:$24 sps:$4 sm:$0xff]  }
 0x1ac   : > { %v1083_v14 = vadd.f32 1e-06, %v1058_v18  ;;  %v6091_v18 = vld [vmem:[%s6752_s7 + $0x7e4] ss:$24 sps:$4 sm:$0xff]   ;;  %v8678_v61 = vpack.c.bf16 %v1179_v36, %v1173_v53  ;;  %v8680_v46 = vpack.c.bf16 %v1178_v37, %v1172_v25  ;;  %3609 = vmatprep.subr.bf16.mxu1 %v6094_v38  ;;  %v10500_v28 = vld [vmem:[#allocation35_spill] sm:$0xff]  ;;  %v10502_v25 = vld [vmem:[#allocation40_spill] sm:$0xff] }
 0x1ad   : > { %v954_v54 = vpop.xlane.xlu1 %953  ;;  %10494 = vst [vmem:[#allocation10_spill] sm:$0xff] %v8668_v20  ;;  %10495 = vst [vmem:[#allocation6_spill] sm:$0xff] %v8672_v57  ;;  %3180 = vmatprep.mubr.bf16.mxu1 %v8666_v17  ;;  %3341 = vmatprep.mubr.bf16.mxu0 %v8668_v20  ;;  %v10499_v36 = vld [vmem:[#allocation38_spill] sm:$0xff]  ;;  %v10501_v34 = vld [vmem:[#allocation37_spill] sm:$0xff] }
 0x1ae   : > { %v1057_v3 = vmul.f32 0.0013020834, %v954_v54  ;;  %6392 = vrsqrt.f32 %v1083_v14  ;;  %10496 = vst [vmem:[#allocation13_spill] sm:$0xff] %v8678_v61  ;;  %10497 = vst [vmem:[#allocation15_spill] sm:$0xff] %v8680_v46  ;;  %v6389_v33 = vpop.eup %6388  ;;  %3181 = vmatmul.mubr.bf16.gmra.mrb[16].mxu1 %v8670_v59  ;;  %3342 = vmatmul.mubr.bf16.gmra.mrb[16].mxu0 %v8672_v57  ;;  %v10498_v54 = vld [vmem:[#allocation36_spill] sm:$0xff] }
 0x1af   : > { %v1187_v42 = vmul.f32 %v6389_v33, %v10498_v54  ;;  %3449 = vmatpush1.bf16.msra.mxu0 %v6083_v44  ;;  %v1189_v37 = vmul.f32 %v6389_v33, %v10499_v36  ;;  %v1186_v0 = vmul.f32 %v6389_v33, %v10500_v28  ;;  %v1188_v40 = vmul.f32 %v6389_v33, %v10501_v34  ;;  %v6097_v14 = vld [vmem:[%s6752_s7 + $0x814] ss:$24 sps:$4 sm:$0xff]   ;;  %v10506_v28 = vld [vmem:[#allocation41_spill] sm:$0xff] }
 0x1b0   : > { %v1082_v26 = vadd.f32 1e-06, %v1057_v3  ;;  %3450 = vmatprep.subr.bf16.mxu0 %v6091_v18  ;;  %3610 = vmatpush1.bf16.msra.mxu1 %v6092_v52  ;;  %v1191_v44 = vmul.f32 %v6389_v33, %v10502_v25  ;;  %v10503_v3 = vld [vmem:[#allocation39_spill] sm:$0xff]  ;;  %v10505_v36 = vld [vmem:[#allocation44_spill] sm:$0xff] }
 0x1b1   : > { %3611 = vmatprep.subr.bf16.mxu1 %v6100_v43  ;;  %v1190_v38 = vmul.f32 %v6389_v33, %v10503_v3  ;;  %v10507_v34 = vld [vmem:[#allocation43_spill] sm:$0xff] }
 0x1b2   : > { %6394 = vrsqrt.f32 %v1082_v26  ;;  %v975_v47 = vpop.xlane.xlu0 %974  ;;  %v6391_v58 = vpop.eup %6390  ;;  %v10504_v26 = vld [vmem:[#allocation42_spill] sm:$0xff] }
 0x1b3   : > { %v1060_v53 = vmul.f32 0.0013020834, %v975_v47  ;;  %v1181_v54 = vmul.f32 %v6391_v58, %v10504_v26  ;;  %v1183_v57 = vmul.f32 %v6391_v58, %v10505_v36  ;;  %v1180_v20 = vmul.f32 %v6391_v58, %v10506_v28  ;;  %3451 = vmatpush1.bf16.msra.mxu0 %v6089_v32  ;;  %v10508_v47 = vld [vmem:[#allocation46_spill] sm:$0xff]  ;;  %v6095_v36 = vld [vmem:[%s6752_s7 + $0x810] ss:$24 sps:$4 sm:$0xff]  }
 0x1b4   : > { %v1182_v18 = vmul.f32 %v6391_v58, %v10507_v34  ;;  %v1185_v43 = vmul.f32 %v6391_v58, %v10508_v47  ;;  %v1184_v27 = vmul.f32 %v6391_v58, %v10509_v35  ;;  %3452 = vmatprep.subr.bf16.mxu0 %v6097_v14  ;;  %v6106_v28 = vld [vmem:[%s6752_s7 + $0x21c] ss:$24 sps:$4 sm:$0xff]   ;;  %3612 = vmatpush1.bf16.msra.mxu1 %v6098_v39  ;;  %v6104_v34 = vld [vmem:[%s6752_s7 + $0x218] ss:$24 sps:$4 sm:$0xff]   ;;  %v10516_v58 = vld [vmem:[#allocation50_spill] sm:$0xff] }
 0x1b5   : > { %v1085_v52 = vadd.f32 1e-06, %v1060_v53  ;;  %v8702_v21 = vpack.c.bf16 %v1187_v42, %v1181_v54  ;;  %v8704_v33 = vpack.c.bf16 %v1189_v37, %v1183_v57  ;;  %v8706_v3 = vpack.c.bf16 %v1186_v0, %v1180_v20  ;;  %v6103_v32 = vld [vmem:[%s6752_s7 + $0x844] ss:$24 sps:$4 sm:$0xff]   ;;  %v10515_v0 = vld [vmem:[#allocation48_spill] sm:$0xff]  ;;  %3613 = vmatprep.subr.bf16.mxu1 %v6106_v28 }
 0x1b6   : > { %v8708_v26 = vpack.c.bf16 %v1188_v40, %v1182_v18  ;;  %v8714_v35 = vpack.c.bf16 %v1191_v44, %v1185_v43  ;;  %v8716_v42 = vpack.c.bf16 %v1190_v38, %v1184_v27  ;;  %v6112_v20 = vld [vmem:[%s6752_s7 + $0x24c] ss:$24 sps:$4 sm:$0xff]   ;;  %v6101_v14 = vld [vmem:[%s6752_s7 + $0x840] ss:$24 sps:$4 sm:$0xff]  }
 0x1b7   : > { %v968_v25 = vpop.xlane.xlu1 %967  ;;  %10510 = vst [vmem:[#allocation12_spill] sm:$0xff] %v8704_v33  ;;  %10511 = vst [vmem:[#allocation14_spill] sm:$0xff] %v8706_v3  ;;  %6396 = vrsqrt.f32 %v1085_v52  ;;  %3190 = vmatprep.mubr.bf16.mxu1 %v8702_v21  ;;  %3351 = vmatprep.mubr.bf16.mxu0 %v8704_v33  ;;  %v10517_v44 = vld [vmem:[#allocation47_spill] sm:$0xff]  ;;  %v10518_v54 = vld [vmem:[#allocation49_spill] sm:$0xff] }
 0x1b8   : > { %10512 = vst [vmem:[#allocation16_spill] sm:$0xff] %v8708_v26  ;;  %v1059_v53 = vmul.f32 0.0013020834, %v968_v25  ;;  %10513 = vst [vmem:[#allocation18_spill] sm:$0xff] %v8714_v35  ;;  %v6393_v57 = vpop.eup %6392  ;;  %3191 = vmatmul.mubr.bf16.gmra.mrb[20].mxu1 %v8706_v3  ;;  %3352 = vmatmul.mubr.bf16.gmra.mrb[20].mxu0 %v8708_v26  ;;  %v6109_v52 = vld [vmem:[%s6752_s7 + $0x874] ss:$24 sps:$4 sm:$0xff]  }
 0x1b9   : > { %10514 = vst [vmem:[#allocation20_spill] sm:$0xff] %v8716_v42  ;;  %v1199_v40 = vmul.f32 %v6393_v57, %v10515_v0  ;;  %3453 = vmatpush1.bf16.msra.mxu0 %v6095_v36  ;;  %v1201_v39 = vmul.f32 %v6393_v57, %v10516_v58  ;;  %v1198_v38 = vmul.f32 %v6393_v57, %v10517_v44  ;;  %v6110_v25 = vld [vmem:[%s6752_s7 + $0x248] ss:$24 sps:$4 sm:$0xff]   ;;  %v10522_v58 = vld [vmem:[#allocation56_spill] sm:$0xff]  ;;  %v10523_v44 = vld [vmem:[#allocation53_spill] sm:$0xff] }
 0x1ba   : > { %v1084_v37 = vadd.f32 1e-06, %v1059_v53  ;;  %v1200_v18 = vmul.f32 %v6393_v57, %v10518_v54  ;;  %3454 = vmatprep.subr.bf16.mxu0 %v6103_v32  ;;  %3614 = vmatpush1.bf16.msra.mxu1 %v6104_v34  ;;  %v10519_v53 = vld [vmem:[#allocation52_spill] sm:$0xff]  ;;  %v10520_v0 = vld [vmem:[#allocation51_spill] sm:$0xff] }
 0x1bb   : > { %3615 = vmatprep.subr.bf16.mxu1 %v6112_v20  ;;  %v1203_v36 = vmul.f32 %v6393_v57, %v10519_v53  ;;  %v1202_v28 = vmul.f32 %v6393_v57, %v10520_v0  ;;  %v10524_v54 = vld [vmem:[#allocation55_spill] sm:$0xff] }
 0x1bc   : > { %6398 = vrsqrt.f32 %v1084_v37  ;;  %v6395_v47 = vpop.eup %6394  ;;  %v10521_v37 = vld [vmem:[#allocation54_spill] sm:$0xff] }
 0x1bd   : > { %v989_v27 = vpop.xlane.xlu0 %988  ;;  %v1193_v26 = vmul.f32 %v6395_v47, %v10521_v37  ;;  %v1195_v33 = vmul.f32 %v6395_v47, %v10522_v58  ;;  %v1192_v49 = vmul.f32 %v6395_v47, %v10523_v44  ;;  %v1194_v32 = vmul.f32 %v6395_v47, %v10524_v54  ;;  %3455 = vmatpush1.bf16.msra.mxu0 %v6101_v14  ;;  %v6107_v58 = vld [vmem:[%s6752_s7 + $0x870] ss:$24 sps:$4 sm:$0xff]   ;;  %v6118_v44 = vld [vmem:[%s6752_s7 + $0x27c] ss:$24 sps:$4 sm:$0xff]  }
 0x1be   : > { %v1062_v43 = vmul.f32 0.0013020834, %v989_v27  ;;  %v10525_v27 = vld [vmem:[#allocation58_spill] sm:$0xff]  ;;  %v1196_v55 = vmul.f32 %v6395_v47, %v10526_v15  ;;  %3456 = vmatprep.subr.bf16.mxu0 %v6109_v52  ;;  %3616 = vmatpush1.bf16.msra.mxu1 %v6110_v25  ;;  %v6116_v54 = vld [vmem:[%s6752_s7 + $0x278] ss:$24 sps:$4 sm:$0xff]  }
 0x1bf   : > { %v1197_v20 = vmul.f32 %v6395_v47, %v10525_v27  ;;  %v8738_v3 = vpack.c.bf16 %v1199_v40, %v1193_v26  ;;  %v8740_v57 = vpack.c.bf16 %v1201_v39, %v1195_v33  ;;  %v8742_v0 = vpack.c.bf16 %v1198_v38, %v1192_v49  ;;  %v6115_v14 = vld [vmem:[%s6752_s7 + $0x8a4] ss:$24 sps:$4 sm:$0xff]   ;;  %v6113_v38 = vld [vmem:[%s6752_s7 + $0x8a0] ss:$24 sps:$4 sm:$0xff]   ;;  %3617 = vmatprep.subr.bf16.mxu1 %v6118_v44 }
 0x1c0   : > { %v1087_v34 = vadd.f32 1e-06, %v1062_v43  ;;  %v8744_v37 = vpack.c.bf16 %v1200_v18, %v1194_v32  ;;  %v8752_v26 = vpack.c.bf16 %v1202_v28, %v1196_v55  ;;  %v6121_v49 = vld [vmem:[%s6752_s7 + $0x2ac] ss:$24 sps:$4 sm:$0xff]   ;;  %v10533_v18 = vld [vmem:[#allocation60_spill] sm:$0xff]  ;;  %v10536_v44 = vld [vmem:[#allocation61_spill] sm:$0xff] }
 0x1c1   : > { %v982_v53 = vpop.xlane.xlu1 %981  ;;  %10527 = vst [vmem:[#allocation17_spill] sm:$0xff] %v8738_v3  ;;  %10528 = vst [vmem:[#allocation19_spill] sm:$0xff] %v8740_v57  ;;  %v8750_v15 = vpack.c.bf16 %v1203_v36, %v1197_v20  ;;  %v6397_v33 = vpop.eup %6396  ;;  %3200 = vmatprep.mubr.bf16.mxu1 %v8738_v3  ;;  %3361 = vmatprep.mubr.bf16.mxu0 %v8740_v57  ;;  %v6119_v25 = vld [vmem:[%s6752_s7 + $0x2a8] ss:$24 sps:$4 sm:$0xff]   ;;  %v6124_v36 = vld [vmem:[%s6752_s7 + $0x8d4] ss:$24 sps:$4 sm:$0xff]  }
 0x1c2   : > { %10529 = vst [vmem:[#allocation22_spill] sm:$0xff] %v8742_v0  ;;  %10530 = vst [vmem:[#allocation21_spill] sm:$0xff] %v8744_v37  ;;  %v1061_v43 = vmul.f32 0.0013020834, %v982_v53  ;;  %6400 = vrsqrt.f32 %v1087_v34  ;;  %3201 = vmatmul.mubr.bf16.gmra.mrb[24].mxu1 %v8742_v0  ;;  %3362 = vmatmul.mubr.bf16.gmra.mrb[24].mxu0 %v8744_v37  ;;  %v1211_v52 = vmul.f32 %v6397_v33, %v10533_v18  ;;  %v10534_v32 = vld [vmem:[#allocation59_spill] sm:$0xff]  ;;  %v10535_v53 = vld [vmem:[#allocation62_spill] sm:$0xff] }
 0x1c3   : > { %10531 = vst [vmem:[#allocation24_spill] sm:$0xff] %v8750_v15  ;;  %10532 = vst [vmem:[#allocation26_spill] sm:$0xff] %v8752_v26  ;;  %3457 = vmatpush1.bf16.msra.mxu0 %v6107_v58  ;;  %v1213_v47 = vmul.f32 %v6397_v33, %v7991_v24  ;;  %3618 = vmatpush1.bf16.msra.mxu1 %v6116_v54  ;;  %v1210_v34 = vmul.f32 %v6397_v33, %v10534_v32  ;;  %v6127_v20 = vld [vmem:[%s6752_s7 + $0x2dc] ss:$24 sps:$4 sm:$0xff]   ;;  %v10539_v18 = vld [vmem:[#allocation63_spill] sm:$0xff] }
 0x1c4   : > { %v1086_v40 = vadd.f32 1e-06, %v1061_v43  ;;  %3458 = vmatprep.subr.bf16.mxu0 %v6115_v14  ;;  %v1212_v27 = vmul.f32 %v6397_v33, %v7981_v22  ;;  %3619 = vmatprep.subr.bf16.mxu1 %v6121_v49  ;;  %v1215_v58 = vmul.f32 %v6397_v33, %v10535_v53  ;;  %v1214_v43 = vmul.f32 %v6397_v33, %v10536_v44  ;;  %v10538_v14 = vld [vmem:[#allocation66_spill] sm:$0xff]  ;;  %v10540_v0 = vld [vmem:[#allocation65_spill] sm:$0xff]  ;;  %v10541_v22 = vld [vmem:[#allocation68_spill] sm:$0xff] }
 0x1c5   : > { %v10542_v26 = vld [vmem:[#allocation67_spill] sm:$0xff] }
 0x1c6   : > { %v1003_v39 = vpop.xlane.xlu0 %1002  ;;  %6402 = vrsqrt.f32 %v1086_v40  ;;  %v6399_v28 = vpop.eup %6398  ;;  %v6122_v44 = vld [vmem:[%s6752_s7 + $0x8d0] ss:$24 sps:$4 sm:$0xff]  }
 0x1c7   : > { %v1064_v55 = vmul.f32 0.0013020834, %v1003_v39  ;;  %v10537_v39 = vld [vmem:[#allocation64_spill] sm:$0xff]  ;;  %v1207_v54 = vmul.f32 %v6399_v28, %v10538_v14  ;;  %v1204_v37 = vmul.f32 %v6399_v28, %v10539_v18  ;;  %v1206_v32 = vmul.f32 %v6399_v28, %v10540_v0  ;;  %3459 = vmatpush1.bf16.msra.mxu0 %v6113_v38  ;;  %3620 = vmatpush1.bf16.msra.mxu1 %v6119_v25  ;;  %v6136_v38 = vld [vmem:[%s6752_s7 + $0x30c] ss:$24 sps:$4 sm:$0xff]  }
 0x1c8   : > { %v1205_v24 = vmul.f32 %v6399_v28, %v10537_v39  ;;  %v1209_v49 = vmul.f32 %v6399_v28, %v10541_v22  ;;  %v1208_v53 = vmul.f32 %v6399_v28, %v10542_v26  ;;  %3460 = vmatprep.subr.bf16.mxu0 %v6124_v36  ;;  %v6125_v39 = vld [vmem:[%s6752_s7 + $0x2d8] ss:$24 sps:$4 sm:$0xff]   ;;  %3621 = vmatprep.subr.bf16.mxu1 %v6127_v20  ;;  %v6130_v0 = vld [vmem:[%s6752_s7 + $0x14] ss:$24 sps:$4 sm:$0xff]  }
 0x1c9   : > { %v1089_v40 = vadd.f32 1e-06, %v1064_v55  ;;  %v8777_v55 = vpack.c.bf16 %v1213_v47, %v1207_v54  ;;  %v8781_v14 = vpack.c.bf16 %v1210_v34, %v1204_v37  ;;  %v8783_v18 = vpack.c.bf16 %v1212_v27, %v1206_v32  ;;  %v10547_v28 = vld [vmem:[#allocation69_spill] sm:$0xff]  ;;  %v10548_v27 = vld [vmem:[#allocation70_spill] sm:$0xff] }
 0x1ca   : > { %v996_v57 = vpop.xlane.xlu1 %995  ;;  %v8775_v33 = vpack.c.bf16 %v1211_v52, %v1205_v24  ;;  %v8787_v22 = vpack.c.bf16 %v1215_v58, %v1209_v49  ;;  %v8789_v26 = vpack.c.bf16 %v1214_v43, %v1208_v53  ;;  %v10549_v24 = vld [vmem:[#allocation72_spill] sm:$0xff]  ;;  %v10550_v32 = vld [vmem:[#allocation74_spill] sm:$0xff]  ;;  %v10551_v53 = vld [vmem:[#allocation71_spill] sm:$0xff] }
 0x1cb   : > { %v1063_v3 = vmul.f32 0.0013020834, %v996_v57  ;;  %6404 = vrsqrt.f32 %v1089_v40  ;;  %10543 = vst [vmem:[#allocation23_spill] sm:$0xff] %v8777_v55  ;;  %10544 = vst [vmem:[#allocation25_spill] sm:$0xff] %v8783_v18  ;;  %3371 = vmatprep.mubr.bf16.mxu0 %v8777_v55  ;;  %3461 = vmatpush1.bf16.msra.mxu0 %v6122_v44 }
 0x1cc   : > { %10545 = vst [vmem:[#allocation28_spill] sm:$0xff] %v8787_v22  ;;  %10546 = vst [vmem:[#allocation27_spill] sm:$0xff] %v8789_v26  ;;  %v6401_v57 = vpop.eup %6400  ;;  %3210 = vmatprep.mubr.bf16.mxu1 %v8775_v33  ;;  %3372 = vmatmul.mubr.bf16.gmra.mrb[28].mxu0 %v8783_v18 }
 0x1cd   : > { %v1088_v52 = vadd.f32 1e-06, %v1063_v3  ;;  %3211 = vmatmul.mubr.bf16.gmra.mrb[28].mxu1 %v8781_v14  ;;  %v1223_v25 = vmul.f32 %v6401_v57, %v8077_v5  ;;  %v1225_v36 = vmul.f32 %v6401_v57, %v8089_v16  ;;  %4074 = vmatprep.subr.bf16.mxu0 %v6130_v0  ;;  %v1222_v34 = vmul.f32 %v6401_v57, %v10547_v28  ;;  %v10552_v16 = vld [vmem:[#allocation73_spill] sm:$0xff]  ;;  %v10553_v0 = vld [vmem:[#allocation76_spill] sm:$0xff] }
 0x1ce   : > { %3622 = vmatpush1.bf16.msra.mxu1 %v6125_v39  ;;  %v1224_v20 = vmul.f32 %v6401_v57, %v10548_v27  ;;  %v1227_v58 = vmul.f32 %v6401_v57, %v8108_v50  ;;  %v1226_v43 = vmul.f32 %v6401_v57, %v8098_v6 }
 0x1cf   : > { %6406 = vrsqrt.f32 %v1088_v52  ;;  %3752 = vmatprep.subr.bf16.mxu1 %v6136_v38  ;;  %v10554_v52 = vld [vmem:[#allocation75_spill] sm:$0xff] }
 0x1d0   : > { %v1017_v37 = vpop.xlane.xlu0 %1016  ;;  %v6403_v3 = vpop.eup %6402 }
 0x1d1   : > { %v1066_v47 = vmul.f32 0.0013020834, %v1017_v37  ;;  %v1217_v54 = vmul.f32 %v6403_v3, %v10549_v24  ;;  %v1219_v49 = vmul.f32 %v6403_v3, %v10550_v32  ;;  %v1216_v5 = vmul.f32 %v6403_v3, %v10551_v53 }
 0x1d2   : > { %v1218_v39 = vmul.f32 %v6403_v3, %v10552_v16  ;;  %v1221_v38 = vmul.f32 %v6403_v3, %v10553_v0  ;;  %v1220_v37 = vmul.f32 %v6403_v3, %v10554_v52  ;;  %v10563_v16 = vld [vmem:[#allocation81_spill] sm:$0xff] }
 0x1d3   : > { %v1091_v40 = vadd.f32 1e-06, %v1066_v47  ;;  %v8807_v27 = vpack.c.bf16 %v1223_v25, %v1217_v54  ;;  %v8809_v50 = vpack.c.bf16 %v1225_v36, %v1219_v49  ;;  %v8811_v57 = vpack.c.bf16 %v1222_v34, %v1216_v5  ;;  %v10559_v36 = vld [vmem:[#allocation78_spill] sm:$0xff]  ;;  %v10561_v54 = vld [vmem:[#allocation77_spill] sm:$0xff]  ;;  %v10562_v49 = vld [vmem:[#allocation79_spill] sm:$0xff] }
 0x1d4   : > { %v1010_v44 = vpop.xlane.xlu1 %1009  ;;  %v8813_v47 = vpack.c.bf16 %v1224_v20, %v1218_v39  ;;  %v8815_v24 = vpack.c.bf16 %v1227_v58, %v1221_v38  ;;  %v8817_v32 = vpack.c.bf16 %v1226_v43, %v1220_v37  ;;  %v10560_v20 = vld [vmem:[#allocation80_spill] sm:$0xff]  ;;  %v10564_v37 = vld [vmem:[#allocation82_spill] sm:$0xff] }
 0x1d5   : > { %v1065_v28 = vmul.f32 0.0013020834, %v1010_v44  ;;  %6408 = vrsqrt.f32 %v1091_v40  ;;  %10555 = vst [vmem:[#allocation30_spill] sm:$0xff] %v8809_v50  ;;  %v6405_v6 = vpop.eup %6404  ;;  %3220 = vmatprep.mubr.bf16.mxu1 %v8807_v27  ;;  %3381 = vmatprep.mubr.bf16.mxu0 %v8809_v50  ;;  %v10567_v50 = vld [vmem:[#allocation84_spill] sm:$0xff] }
 0x1d6   : > { %10556 = vst [vmem:[#allocation32_spill] sm:$0xff] %v8813_v47  ;;  %10557 = vst [vmem:[#allocation29_spill] sm:$0xff] %v8815_v24  ;;  %3221 = vmatmul.mubr.bf16.gmra.mrb[32].mxu1 %v8811_v57  ;;  %3382 = vmatmul.mubr.bf16.gmra.mrb[32].mxu0 %v8813_v47  ;;  %v1235_v34 = vmul.f32 %v6405_v6, %v10559_v36  ;;  %v1237_v40 = vmul.f32 %v6405_v6, %v10560_v20  ;;  %v10566_v20 = vld [vmem:[#allocation85_spill] sm:$0xff] }
 0x1d7   : > { %10558 = vst [vmem:[#allocation31_spill] sm:$0xff] %v8817_v32  ;;  %v1090_v53 = vadd.f32 1e-06, %v1065_v28  ;;  %v1234_v43 = vmul.f32 %v6405_v6, %v10561_v54  ;;  %v1236_v5 = vmul.f32 %v6405_v6, %v10562_v49  ;;  %v1239_v44 = vmul.f32 %v6405_v6, %v8209_v7 }
 0x1d8   : > { %v1238_v39 = vmul.f32 %v6405_v6, %v10563_v16 }
 0x1d9   : > { %v1031_v3 = vpop.xlane.xlu0 %1030  ;;  %6410 = vrsqrt.f32 %v1090_v53  ;;  %v6407_v58 = vpop.eup %6406 }
 0x1da   : > { %v1068_v25 = vmul.f32 0.0013020834, %v1031_v3  ;;  %v1229_v38 = vmul.f32 %v6407_v58, %v8223_v62  ;;  %v1231_v52 = vmul.f32 %v6407_v58, %v8237_v12  ;;  %v1228_v28 = vmul.f32 %v6407_v58, %v10564_v37  ;;  %v10565_v3 = vld [vmem:[#allocation83_spill] sm:$0xff] }
 0x1db   : > { %v1230_v36 = vmul.f32 %v6407_v58, %v10565_v3  ;;  %v1233_v47 = vmul.f32 %v6407_v58, %v10566_v20  ;;  %v1232_v54 = vmul.f32 %v6407_v58, %v10567_v50  ;;  %v10572_v50 = vld [vmem:[#allocation87_spill] sm:$0xff] }
 0x1dc   : > { %v1093_v0 = vadd.f32 1e-06, %v1068_v25  ;;  %v8835_v49 = vpack.c.bf16 %v1235_v34, %v1229_v38  ;;  %v8837_v7 = vpack.c.bf16 %v1237_v40, %v1231_v52  ;;  %v8839_v6 = vpack.c.bf16 %v1234_v43, %v1228_v28  ;;  %v10577_v52 = vld [vmem:[#allocation92_spill] sm:$0xff] }
 0x1dd   : > { %v1024_v53 = vpop.xlane.xlu1 %1023  ;;  %v8841_v62 = vpack.c.bf16 %v1236_v5, %v1230_v36  ;;  %v8843_v12 = vpack.c.bf16 %v1239_v44, %v1233_v47  ;;  %v8845_v25 = vpack.c.bf16 %v1238_v39, %v1232_v54  ;;  %v10573_v47 = vld [vmem:[#allocation86_spill] sm:$0xff]  ;;  %v10574_v5 = vld [vmem:[#allocation88_spill] sm:$0xff]  ;;  %v10579_v36 = vld [vmem:[#allocation91_spill] sm:$0xff] }
 0x1de   : > { %v1067_v18 = vmul.f32 0.0013020834, %v1024_v53  ;;  %6412 = vrsqrt.f32 %v1093_v0  ;;  %10568 = vst [vmem:[#allocation34_spill] sm:$0xff] %v8837_v7  ;;  %3230 = vmatprep.mubr.bf16.mxu1 %v8835_v49  ;;  %3391 = vmatprep.mubr.bf16.mxu0 %v8837_v7  ;;  %v10575_v39 = vld [vmem:[#allocation90_spill] sm:$0xff]  ;;  %v10576_v0 = vld [vmem:[#allocation89_spill] sm:$0xff] }
 0x1df   : > { %10569 = vst [vmem:[#allocation33_spill] sm:$0xff] %v8841_v62  ;;  %10570 = vst [vmem:[#allocation36_spill] sm:$0xff] %v8843_v12  ;;  %v6409_v16 = vpop.eup %6408  ;;  %3231 = vmatmul.mubr.bf16.gmra.mrb[36].mxu1 %v8839_v6  ;;  %3392 = vmatmul.mubr.bf16.gmra.mrb[36].mxu0 %v8841_v62  ;;  %v10578_v53 = vld [vmem:[#allocation94_spill] sm:$0xff]  ;;  %v10580_v54 = vld [vmem:[#allocation93_spill] sm:$0xff] }
 0x1e0   : > { %10571 = vst [vmem:[#allocation38_spill] sm:$0xff] %v8845_v25  ;;  %v1092_v37 = vadd.f32 1e-06, %v1067_v18  ;;  %v1247_v34 = vmul.f32 %v6409_v16, %v10572_v50  ;;  %v1249_v40 = vmul.f32 %v6409_v16, %v8285_v31  ;;  %v1246_v43 = vmul.f32 %v6409_v16, %v10573_v47  ;;  %v10581_v50 = vld [vmem:[#allocation96_spill] sm:$0xff]  ;;  %v10582_v31 = vld [vmem:[#allocation95_spill] sm:$0xff] }
 0x1e1   : > { %v1248_v44 = vmul.f32 %v6409_v16, %v10574_v5  ;;  %v1251_v18 = vmul.f32 %v6409_v16, %v10575_v39  ;;  %v1250_v38 = vmul.f32 %v6409_v16, %v10576_v0 }
 0x1e2   : > { %6414 = vrsqrt.f32 %v1092_v37 }
 0x1e3   : > { %v6411_v58 = vpop.eup %6410 }
 0x1e4   : > { %v1241_v28 = vmul.f32 %v6411_v58, %v10577_v52  ;;  %v1243_v3 = vmul.f32 %v6411_v58, %v10578_v53  ;;  %v1240_v20 = vmul.f32 %v6411_v58, %v10579_v36  ;;  %v1242_v37 = vmul.f32 %v6411_v58, %v10580_v54  ;;  %v10590_v53 = vld [vmem:[#allocation97_spill] sm:$0xff] }
 0x1e5   : > { %v1245_v62 = vmul.f32 %v6411_v58, %v10581_v50  ;;  %v1244_v7 = vmul.f32 %v6411_v58, %v10582_v31  ;;  %v10589_v58 = vld [vmem:[#allocation100_spill] sm:$0xff]  ;;  %v10595_v50 = vld [vmem:[#allocation103_spill] sm:$0xff] }
 0x1e6   : > { %v8863_v55 = vpack.c.bf16 %v1247_v34, %v1241_v28  ;;  %v8865_v47 = vpack.c.bf16 %v1249_v40, %v1243_v3  ;;  %v8867_v39 = vpack.c.bf16 %v1246_v43, %v1240_v20  ;;  %v8869_v16 = vpack.c.bf16 %v1248_v44, %v1242_v37  ;;  %v10588_v34 = vld [vmem:[#allocation98_spill] sm:$0xff]  ;;  %v10591_v3 = vld [vmem:[#allocation99_spill] sm:$0xff]  ;;  %v10594_v20 = vld [vmem:[#allocation104_spill] sm:$0xff] }
 0x1e7   : > { %v8871_v0 = vpack.c.bf16 %v1251_v18, %v1245_v62  ;;  %v8873_v52 = vpack.c.bf16 %v1250_v38, %v1244_v7  ;;  %v10592_v18 = vld [vmem:[#allocation102_spill] sm:$0xff]  ;;  %v10593_v38 = vld [vmem:[#allocation101_spill] sm:$0xff] }
 0x1e8   : > { %10583 = vst [vmem:[#allocation35_spill] sm:$0xff] %v8865_v47  ;;  %v6413_v5 = vpop.eup %6412  ;;  %10584 = vst [vmem:[#allocation37_spill] sm:$0xff] %v8867_v39  ;;  %3240 = vmatprep.mubr.bf16.mxu1 %v8863_v55  ;;  %3401 = vmatprep.mubr.bf16.mxu0 %v8865_v47 }
 0x1e9   : > { %10585 = vst [vmem:[#allocation40_spill] sm:$0xff] %v8869_v16  ;;  %10586 = vst [vmem:[#allocation39_spill] sm:$0xff] %v8871_v0  ;;  %3241 = vmatmul.mubr.bf16.gmra.mrb[40].mxu1 %v8867_v39  ;;  %3402 = vmatmul.mubr.bf16.gmra.mrb[40].mxu0 %v8869_v16  ;;  %v1259_v40 = vmul.f32 %v6413_v5, %v10588_v34  ;;  %v1261_v28 = vmul.f32 %v6413_v5, %v10589_v58  ;;  %v10596_v16 = vld [vmem:[#allocation105_spill] sm:$0xff] }
 0x1ea   : > { %10587 = vst [vmem:[#allocation42_spill] sm:$0xff] %v8873_v52  ;;  %v1258_v44 = vmul.f32 %v6413_v5, %v10590_v53  ;;  %v1260_v62 = vmul.f32 %v6413_v5, %v10591_v3  ;;  %v1263_v7 = vmul.f32 %v6413_v5, %v10592_v18  ;;  %v1262_v36 = vmul.f32 %v6413_v5, %v10593_v38 }
 0x1ec   : > { %v6415_v43 = vpop.eup %6414 }
 0x1ed   : > { %v1253_v54 = vmul.f32 %v6415_v43, %v10594_v20  ;;  %v1255_v37 = vmul.f32 %v6415_v43, %v8429_v8  ;;  %v1252_v31 = vmul.f32 %v6415_v43, %v10595_v50  ;;  %v1254_v47 = vmul.f32 %v6415_v43, %v10596_v16 }
 0x1ee   : > { %v1257_v34 = vmul.f32 %v6415_v43, %v8447_v4  ;;  %v1256_v58 = vmul.f32 %v6415_v43, %v8435_v10 }
 0x1ef   : > { %v8891_v39 = vpack.c.bf16 %v1259_v40, %v1253_v54  ;;  %v8893_v53 = vpack.c.bf16 %v1261_v28, %v1255_v37  ;;  %v8895_v3 = vpack.c.bf16 %v1258_v44, %v1252_v31  ;;  %v8897_v18 = vpack.c.bf16 %v1260_v62, %v1254_v47  ;;  %v10599_v47 = vld [vmem:[#allocation107_spill] sm:$0xff]  ;;  %v10600_v28 = vld [vmem:[#allocation109_spill] sm:$0xff]  ;;  %v10601_v44 = vld [vmem:[#allocation106_spill] sm:$0xff] }
 0x1f0   : > { %v8899_v5 = vpack.c.bf16 %v1263_v7, %v1257_v34  ;;  %v8901_v38 = vpack.c.bf16 %v1262_v36, %v1256_v58  ;;  %v10602_v7 = vld [vmem:[#allocation108_spill] sm:$0xff]  ;;  %v6133_v34 = vld [vmem:[%s6752_s7 + $0x44] ss:$24 sps:$4 sm:$0xff]   ;;  %v6134_v58 = vld [vmem:[%s6752_s7 + $0x308] ss:$24 sps:$4 sm:$0xff]  }
 0x1f1   : > { %3250 = vmatprep.mubr.bf16.mxu1 %v8891_v39  ;;  %3411 = vmatprep.mubr.bf16.mxu0 %v8893_v53  ;;  %v6128_v31 = vld [vmem:[%s6752_s7 + $0x10] ss:$24 sps:$4 sm:$0xff]  }
 0x1f2   : > { %10597 = vst [vmem:[#allocation44_spill] sm:$0xff] %v8899_v5  ;;  %10598 = vst [vmem:[#allocation41_spill] sm:$0xff] %v8901_v38  ;;  %3251 = vmatmul.mubr.bf16.gmra.mrb[44].mxu1 %v8895_v3  ;;  %3412 = vmatmul.mubr.bf16.gmra.mrb[44].mxu0 %v8897_v18 }
 0x211   : > { %v1044_v4 = vpop.xlane.xlu1 %1043 }
 0x212   : > { %v1069_v8 = vmul.f32 0.0013020834, %v1044_v4  ;;  %v6142_v4 = vld [vmem:[%s6752_s7 + $0x33c] ss:$24 sps:$4 sm:$0xff]  }
 0x214   : > { %v1094_v10 = vadd.f32 1e-06, %v1069_v8  ;;  %v6131_v8 = vld [vmem:[%s6752_s7 + $0x40] ss:$24 sps:$4 sm:$0xff]  }
 0x216   : > { %6416 = vrsqrt.f32 %v1094_v10  ;;  %v6139_v10 = vld [vmem:[%s6752_s7 + $0x74] ss:$24 sps:$4 sm:$0xff]  }
 0x220   : > { %v8907_v16 = vpop.eup %6416 }
 0x221   : > { %v1265_v40 = vmul.f32 %v8907_v16, %v10599_v47  ;;  %v1267_v43 = vmul.f32 %v8907_v16, %v10600_v28  ;;  %v1264_v62 = vmul.f32 %v8907_v16, %v10601_v44  ;;  %v1266_v36 = vmul.f32 %v8907_v16, %v10602_v7  ;;  %v6140_v47 = vld [vmem:[%s6752_s7 + $0x338] ss:$24 sps:$4 sm:$0xff]   ;;  %v6148_v28 = vld [vmem:[%s6752_s7 + $0x36c] ss:$24 sps:$4 sm:$0xff]   ;;  %v6146_v44 = vld [vmem:[%s6752_s7 + $0x368] ss:$24 sps:$4 sm:$0xff]  }
 0x222   : > { %v6143_v7 = vld [vmem:[%s6752_s7 + $0xa0] ss:$24 sps:$4 sm:$0xff]  }
 0x223   : > { %v8917_v20 = vpack.c.bf16 %v1265_v40, %v1265_v40  ;;  %v8919_v54 = vpack.c.bf16 %v1267_v43, %v1267_v43  ;;  %v8921_v37 = vpack.c.bf16 %v1264_v62, %v1264_v62  ;;  %v8923_v50 = vpack.c.bf16 %v1266_v36, %v1266_v36  ;;  %v6137_v40 = vld [vmem:[%s6752_s7 + $0x70] ss:$24 sps:$4 sm:$0xff]   ;;  %v6145_v43 = vld [vmem:[%s6752_s7 + $0xa4] ss:$24 sps:$4 sm:$0xff]   ;;  %v6151_v36 = vld [vmem:[%s6752_s7 + $0xd4] ss:$24 sps:$4 sm:$0xff]  }
 0x224   : > { %v6154_v62 = vld [vmem:[%s6752_s7 + $0x39c] ss:$24 sps:$4 sm:$0xff]  }
 0x225   : > { %3260 = vmatprep.mubr.bf16.mxu1 %v8917_v20  ;;  %3421 = vmatprep.mubr.bf16.mxu0 %v8919_v54 }
 0x226   : > { %3261 = vmatmul.mubr.bf16.gmra.mrb[48].mxu1 %v8921_v37  ;;  %3422 = vmatmul.mubr.bf16.gmra.mrb[48].mxu0 %v8923_v50 }
 0x227   : > { %3462 = vmatprep.mubr.bf16.mxu0 %v8531_v13  ;;  %3623 = vmatprep.mubr.bf16.mxu1 %v8519_v2 }
 0x22e   : > { %3463 = vmatmul.mubr.bf16.vlgmr.msra.gmra.mrb[0].mxu0 %v8533_v19  ;;  %3624 = vmatmul.mubr.bf16.vlgmr.msra.gmra.mrb[52].mxu1 %v8523_v23 }
 0x22f   : > { %4075 = vmatpush1.bf16.msra.mxu0 %v6128_v31  ;;  %3472 = vmatprep.mubr.bf16.mxu0 %v8567_v56  ;;  %v6152_v31 = vld [vmem:[%s6752_s7 + $0x398] ss:$24 sps:$4 sm:$0xff]  }
 0x230   : > { %3633 = vmatprep.mubr.bf16.mxu1 %v8554_v63  ;;  %4076 = vmatprep.subr.bf16.mxu0 %v6133_v34  ;;  %v6149_v34 = vld [vmem:[%s6752_s7 + $0xd0] ss:$24 sps:$4 sm:$0xff]  }
 0x231   : > { %3753 = vmatpush1.bf16.msra.mxu1 %v6134_v58  ;;  %v6160_v58 = vld [vmem:[%s6752_s7 + $0x3cc] ss:$24 sps:$4 sm:$0xff]  }
 0x232   : > { %3754 = vmatprep.subr.bf16.mxu1 %v6142_v4  ;;  %v6157_v4 = vld [vmem:[%s6752_s7 + $0x104] ss:$24 sps:$4 sm:$0xff]  }
 0x233   : > { %4077 = vmatpush1.bf16.msra.mxu0 %v6131_v8  ;;  %v6158_v8 = vld [vmem:[%s6752_s7 + $0x3c8] ss:$24 sps:$4 sm:$0xff]  }
 0x234   : > { %4078 = vmatprep.subr.bf16.mxu0 %v6139_v10  ;;  %v6166_v10 = vld [vmem:[%s6752_s7 + $0x3fc] ss:$24 sps:$4 sm:$0xff]  }
 0x235   : > { %3755 = vmatpush1.bf16.msra.mxu1 %v6140_v47  ;;  %v6155_v47 = vld [vmem:[%s6752_s7 + $0x100] ss:$24 sps:$4 sm:$0xff]  }
 0x236   : > { %3473 = vmatmul.mubr.bf16.gmra.mrb[4].mxu0 %v8571_v29  ;;  %3634 = vmatmul.mubr.bf16.gmra.mrb[56].mxu1 %v8561_v60 }
 0x237   : > { %3482 = vmatprep.mubr.bf16.mxu0 %v8605_v9  ;;  %3643 = vmatprep.mubr.bf16.mxu1 %v8593_v1 }
 0x238   : > { %4079 = vmatpush1.bf16.msra.mxu0 %v6137_v40  ;;  %3756 = vmatprep.subr.bf16.mxu1 %v6148_v28  ;;  %v6163_v40 = vld [vmem:[%s6752_s7 + $0x134] ss:$24 sps:$4 sm:$0xff]   ;;  %v6164_v28 = vld [vmem:[%s6752_s7 + $0x3f8] ss:$24 sps:$4 sm:$0xff]  }
 0x239   : > { %4080 = vmatprep.subr.bf16.mxu0 %v6145_v43  ;;  %3757 = vmatpush1.bf16.msra.mxu1 %v6146_v44  ;;  %v6161_v43 = vld [vmem:[%s6752_s7 + $0x130] ss:$24 sps:$4 sm:$0xff]   ;;  %v6172_v44 = vld [vmem:[%s6752_s7 + $0x42c] ss:$24 sps:$4 sm:$0xff]  }
 0x23a   : > { %3758 = vmatprep.subr.bf16.mxu1 %v6154_v62  ;;  %v6169_v62 = vld [vmem:[%s6752_s7 + $0x164] ss:$24 sps:$4 sm:$0xff]  }
 0x23c   : > { %4081 = vmatpush1.bf16.msra.mxu0 %v6143_v7  ;;  %v6170_v7 = vld [vmem:[%s6752_s7 + $0x428] ss:$24 sps:$4 sm:$0xff]  }
 0x23d   : > { %4082 = vmatprep.subr.bf16.mxu0 %v6151_v36  ;;  %3759 = vmatpush1.bf16.msra.mxu1 %v6152_v31  ;;  %v6178_v36 = vld [vmem:[%s6752_s7 + $0x45c] ss:$24 sps:$4 sm:$0xff]   ;;  %v6167_v31 = vld [vmem:[%s6752_s7 + $0x160] ss:$24 sps:$4 sm:$0xff]  }
 0x23e   : > { %3483 = vmatmul.mubr.bf16.gmra.mrb[8].mxu0 %v8614_v41  ;;  %3644 = vmatmul.mubr.bf16.gmra.mrb[60].mxu1 %v8599_v11 }
 0x23f   : > { %3492 = vmatprep.mubr.bf16.mxu0 %v8641_v45  ;;  %3653 = vmatprep.mubr.bf16.mxu1 %v8629_v48 }
 0x240   : > { %4083 = vmatpush1.bf16.msra.mxu0 %v6149_v34  ;;  %3760 = vmatprep.subr.bf16.mxu1 %v6160_v58  ;;  %v6175_v34 = vld [vmem:[%s6752_s7 + $0x194] ss:$24 sps:$4 sm:$0xff]   ;;  %v6176_v58 = vld [vmem:[%s6752_s7 + $0x458] ss:$24 sps:$4 sm:$0xff]  }
 0x241   : > { %4084 = vmatprep.subr.bf16.mxu0 %v6157_v4  ;;  %3761 = vmatpush1.bf16.msra.mxu1 %v6158_v8  ;;  %v6173_v4 = vld [vmem:[%s6752_s7 + $0x190] ss:$24 sps:$4 sm:$0xff]   ;;  %v6184_v8 = vld [vmem:[%s6752_s7 + $0x48c] ss:$24 sps:$4 sm:$0xff]  }
 0x242   : > { %3762 = vmatprep.subr.bf16.mxu1 %v6166_v10  ;;  %v6181_v10 = vld [vmem:[%s6752_s7 + $0x1c4] ss:$24 sps:$4 sm:$0xff]  }
 0x244   : > { %4085 = vmatpush1.bf16.msra.mxu0 %v6155_v47  ;;  %v6182_v47 = vld [vmem:[%s6752_s7 + $0x488] ss:$24 sps:$4 sm:$0xff]  }
 0x245   : > { %4086 = vmatprep.subr.bf16.mxu0 %v6163_v40  ;;  %3763 = vmatpush1.bf16.msra.mxu1 %v6164_v28  ;;  %v6190_v40 = vld [vmem:[%s6752_s7 + $0x4bc] ss:$24 sps:$4 sm:$0xff]   ;;  %v6179_v28 = vld [vmem:[%s6752_s7 + $0x1c0] ss:$24 sps:$4 sm:$0xff]  }
 0x246   : > { %3493 = vmatmul.mubr.bf16.gmra.mrb[12].mxu0 %v8643_v30  ;;  %3654 = vmatmul.mubr.bf16.gmra.mrb[64].mxu1 %v8633_v51 }
 0x247   : > { %3502 = vmatprep.mubr.bf16.mxu0 %v8678_v61  ;;  %3663 = vmatprep.mubr.bf16.mxu1 %v8666_v17 }
 0x248   : > { %4087 = vmatpush1.bf16.msra.mxu0 %v6161_v43  ;;  %3764 = vmatprep.subr.bf16.mxu1 %v6172_v44  ;;  %v6187_v43 = vld [vmem:[%s6752_s7 + $0x1f4] ss:$24 sps:$4 sm:$0xff]   ;;  %v6188_v44 = vld [vmem:[%s6752_s7 + $0x4b8] ss:$24 sps:$4 sm:$0xff]  }
 0x249   : > { %4088 = vmatprep.subr.bf16.mxu0 %v6169_v62  ;;  %3765 = vmatpush1.bf16.msra.mxu1 %v6170_v7  ;;  %v6185_v62 = vld [vmem:[%s6752_s7 + $0x1f0] ss:$24 sps:$4 sm:$0xff]   ;;  %v6196_v7 = vld [vmem:[%s6752_s7 + $0x4ec] ss:$24 sps:$4 sm:$0xff]  }
 0x24a   : > { %3766 = vmatprep.subr.bf16.mxu1 %v6178_v36  ;;  %v6193_v36 = vld [vmem:[%s6752_s7 + $0x224] ss:$24 sps:$4 sm:$0xff]  }
 0x24c   : > { %4089 = vmatpush1.bf16.msra.mxu0 %v6167_v31  ;;  %v6194_v31 = vld [vmem:[%s6752_s7 + $0x4e8] ss:$24 sps:$4 sm:$0xff]  }
 0x24d   : > { %4090 = vmatprep.subr.bf16.mxu0 %v6175_v34  ;;  %3767 = vmatpush1.bf16.msra.mxu1 %v6176_v58  ;;  %v10603_v34 = vld [vmem:[#allocation14_spill] sm:$0xff]  ;;  %v6202_v58 = vld [vmem:[%s6752_s7 + $0x51c] ss:$24 sps:$4 sm:$0xff]  }
 0x24e   : > { %3503 = vmatmul.mubr.bf16.gmra.mrb[16].mxu0 %v8680_v46  ;;  %3664 = vmatmul.mubr.bf16.gmra.mrb[68].mxu1 %v8670_v59  ;;  %v6217_v46 = vld [vmem:[%s6752_s7 + $0x5ac] ss:$24 sps:$4 sm:$0xff]  }
 0x24f   : > { %3512 = vmatprep.mubr.bf16.mxu0 %v8714_v35  ;;  %3673 = vmatprep.mubr.bf16.mxu1 %v8702_v21 }
 0x250   : > { %4091 = vmatpush1.bf16.msra.mxu0 %v6173_v4  ;;  %3768 = vmatprep.subr.bf16.mxu1 %v6184_v8  ;;  %v10604_v4 = vld [vmem:[#allocation17_spill] sm:$0xff] }
 0x251   : > { %4092 = vmatprep.subr.bf16.mxu0 %v6181_v10  ;;  %3769 = vmatpush1.bf16.msra.mxu1 %v6182_v47  ;;  %v6191_v8 = vld [vmem:[%s6752_s7 + $0x220] ss:$24 sps:$4 sm:$0xff]   ;;  %v6199_v10 = vld [vmem:[%s6752_s7 + $0x254] ss:$24 sps:$4 sm:$0xff]  }
 0x252   : > { %3770 = vmatprep.subr.bf16.mxu1 %v6190_v40  ;;  %v6200_v47 = vld [vmem:[%s6752_s7 + $0x518] ss:$24 sps:$4 sm:$0xff]  }
 0x254   : > { %4093 = vmatpush1.bf16.msra.mxu0 %v6179_v28 }
 0x255   : > { %4094 = vmatprep.subr.bf16.mxu0 %v6187_v43  ;;  %3771 = vmatpush1.bf16.msra.mxu1 %v6188_v44  ;;  %v6197_v44 = vld [vmem:[%s6752_s7 + $0x250] ss:$24 sps:$4 sm:$0xff]  }
 0x256   : > { %3513 = vmatmul.mubr.bf16.gmra.mrb[20].mxu0 %v8716_v42  ;;  %3674 = vmatmul.mubr.bf16.gmra.mrb[72].mxu1 %v10603_v34  ;;  %v10606_v42 = vld [vmem:[#allocation22_spill] sm:$0xff] }
 0x257   : > { %3522 = vmatprep.mubr.bf16.mxu0 %v8750_v15  ;;  %3683 = vmatprep.mubr.bf16.mxu1 %v10604_v4 }
 0x258   : > { %4095 = vmatpush1.bf16.msra.mxu0 %v6185_v62  ;;  %3772 = vmatprep.subr.bf16.mxu1 %v6196_v7  ;;  %v6208_v62 = vld [vmem:[%s6752_s7 + $0x54c] ss:$24 sps:$4 sm:$0xff]  }
 0x259   : > { %4096 = vmatprep.subr.bf16.mxu0 %v6193_v36  ;;  %3773 = vmatpush1.bf16.msra.mxu1 %v6194_v31  ;;  %v6205_v7 = vld [vmem:[%s6752_s7 + $0x284] ss:$24 sps:$4 sm:$0xff]   ;;  %v6206_v36 = vld [vmem:[%s6752_s7 + $0x548] ss:$24 sps:$4 sm:$0xff]  }
 0x25a   : > { %v9002_v40 = vpop.f32.mrb[0].mxu1  ;;  %3774 = vmatprep.subr.bf16.mxu1 %v6202_v58  ;;  %v10605_v31 = vld [vmem:[#allocation26_spill] sm:$0xff]  ;;  %v6214_v58 = vld [vmem:[%s6752_s7 + $0x57c] ss:$24 sps:$4 sm:$0xff]  }
 0x25b   : > { %v9004_v28 = vpop.f32.mrb[1].mxu1 }
 0x25c   : > { %v9006_v43 = vpop.f32.mrb[2].mxu1  ;;  %4097 = vmatpush1.bf16.msra.mxu0 %v6191_v8  ;;  %v6203_v8 = vld [vmem:[%s6752_s7 + $0x280] ss:$24 sps:$4 sm:$0xff]  }
 0x25d   : > { %v9010_v15 = vpop.f32.mrb[3].mxu1  ;;  %4098 = vmatprep.subr.bf16.mxu0 %v6199_v10  ;;  %3775 = vmatpush1.bf16.msra.mxu1 %v6200_v47  ;;  %v6211_v10 = vld [vmem:[%s6752_s7 + $0x2b4] ss:$24 sps:$4 sm:$0xff]   ;;  %v6212_v47 = vld [vmem:[%s6752_s7 + $0x578] ss:$24 sps:$4 sm:$0xff]  }
 0x25e   : > { %3523 = vmatmul.mubr.bf16.gmra.mrb[24].mxu0 %v10605_v31  ;;  %3684 = vmatmul.mubr.bf16.gmra.mrb[76].mxu1 %v10606_v42 }
 0x25f   : > { %3532 = vmatprep.mubr.bf16.mxu0 %v8787_v22  ;;  %3693 = vmatprep.mubr.bf16.mxu1 %v8775_v33  ;;  %v6209_v22 = vld [vmem:[%s6752_s7 + $0x2b0] ss:$24 sps:$4 sm:$0xff]  }
 0x260   : > { %4099 = vmatpush1.bf16.msra.mxu0 %v6197_v44  ;;  %3776 = vmatprep.subr.bf16.mxu1 %v6208_v62  ;;  %v6215_v44 = vld [vmem:[%s6752_s7 + $0x5a8] ss:$24 sps:$4 sm:$0xff]   ;;  %v6220_v62 = vld [vmem:[%s6752_s7 + $0x2e4] ss:$24 sps:$4 sm:$0xff]  }
 0x261   : > { %4100 = vmatprep.subr.bf16.mxu0 %v6205_v7  ;;  %3777 = vmatpush1.bf16.msra.mxu1 %v6206_v36  ;;  %v6223_v36 = vld [vmem:[%s6752_s7 + $0x5dc] ss:$24 sps:$4 sm:$0xff]  }
 0x262   : > { %3778 = vmatprep.subr.bf16.mxu1 %v6214_v58  ;;  %v6218_v58 = vld [vmem:[%s6752_s7 + $0x2e0] ss:$24 sps:$4 sm:$0xff]  }
 0x263   : > { %v9022_v31 = vpop.f32.mrb[4].mxu1 }
 0x264   : > { %v9024_v35 = vpop.f32.mrb[5].mxu1  ;;  %4101 = vmatpush1.bf16.msra.mxu0 %v6203_v8  ;;  %v6221_v8 = vld [vmem:[%s6752_s7 + $0x5d8] ss:$24 sps:$4 sm:$0xff]  }
 0x265   : > { %v9028_v61 = vpop.f32.mrb[6].mxu1  ;;  %4102 = vmatprep.subr.bf16.mxu0 %v6211_v10  ;;  %3779 = vmatpush1.bf16.msra.mxu1 %v6212_v47  ;;  %v6226_v10 = vld [vmem:[%s6752_s7 + $0x314] ss:$24 sps:$4 sm:$0xff]  }
 0x266   : > { %v9032_v7 = vpop.f32.mrb[7].mxu1  ;;  %3533 = vmatmul.mubr.bf16.gmra.mrb[28].mxu0 %v8789_v26  ;;  %3694 = vmatmul.mubr.bf16.gmra.mrb[80].mxu1 %v8781_v14  ;;  %v6232_v47 = vld [vmem:[%s6752_s7 + $0x60c] ss:$24 sps:$4 sm:$0xff]  }
 0x267   : > { %3542 = vmatprep.mubr.bf16.mxu0 %v8815_v24  ;;  %3703 = vmatprep.mubr.bf16.mxu1 %v8807_v27 }
 0x268   : > { %4103 = vmatpush1.bf16.msra.mxu0 %v6209_v22  ;;  %3780 = vmatprep.subr.bf16.mxu1 %v6217_v46 }
 0x269   : > { %3781 = vmatpush1.bf16.msra.mxu1 %v6215_v44  ;;  %4104 = vmatprep.subr.bf16.mxu0 %v6220_v62 }
 0x26a   : > { %3782 = vmatprep.subr.bf16.mxu1 %v6223_v36 }
 0x26c   : > { %4105 = vmatpush1.bf16.msra.mxu0 %v6218_v58 }
 0x26d   : > { %3783 = vmatpush1.bf16.msra.mxu1 %v6221_v8  ;;  %4235 = vmatprep.subr.bf16.mxu0 %v6226_v10  ;;  %v10610_v8 = vld [vmem:[#allocation37_spill] sm:$0xff] }
 0x26e   : > { %3543 = vmatmul.mubr.bf16.gmra.mrb[32].mxu0 %v8817_v32  ;;  %3704 = vmatmul.mubr.bf16.gmra.mrb[84].mxu1 %v8811_v57 }
 0x26f   : > { %v9043_v26 = vpop.f32.mrb[8].mxu1  ;;  %3552 = vmatprep.mubr.bf16.mxu0 %v8843_v12  ;;  %3713 = vmatprep.mubr.bf16.mxu1 %v8835_v49 }
 0x270   : > { %v9047_v24 = vpop.f32.mrb[9].mxu1  ;;  %3913 = vmatprep.subr.bf16.mxu1 %v6232_v47 }
 0x271   : > { %v9051_v46 = vpop.f32.mrb[10].mxu1 }
 0x272   : > { %v9053_v22 = vpop.f32.mrb[11].mxu1 }
 0x276   : > { %3553 = vmatmul.mubr.bf16.gmra.mrb[36].mxu0 %v8845_v25  ;;  %3714 = vmatmul.mubr.bf16.gmra.mrb[88].mxu1 %v8839_v6 }
 0x277   : > { %v9055_v44 = vpop.f32.mrb[12].mxu1  ;;  %3562 = vmatprep.mubr.bf16.mxu0 %v8871_v0  ;;  %3723 = vmatprep.mubr.bf16.mxu1 %v8863_v55  ;;  %v10614_v0 = vld [vmem:[#allocation111_spill] sm:$0xff] }
 0x278   : > { %v9059_v62 = vpop.f32.mrb[13].mxu1  ;;  %v1269_v12 = vmul.f32 %v8907_v16, %v10614_v0 }
 0x279   : > { %10607 = vst [vmem:[#allocation43_spill] sm:$0xff] %v9059_v62  ;;  %v9063_v36 = vpop.f32.mrb[14].mxu1  ;;  %v10634_v62 = vld [vmem:[#allocation115_spill] sm:$0xff] }
 0x27a   : > { %10608 = vst [vmem:[#allocation46_spill] sm:$0xff] %v9063_v36  ;;  %v9065_v58 = vpop.f32.mrb[15].mxu1  ;;  %v6244_v36 = vld [vmem:[%s6752_s7 + $0x66c] ss:$24 sps:$4 sm:$0xff]  }
 0x27b   : > { %10609 = vst [vmem:[#allocation45_spill] sm:$0xff] %v9065_v58  ;;  %v9081_v58 = vpack.c.bf16 %v1269_v12, %v1269_v12 }
 0x27d   : > { %10616 = vst [vmem:[#allocation52_spill] sm:$0xff] %v9081_v58 }
 0x27e   : > { %3563 = vmatmul.mubr.bf16.gmra.mrb[40].mxu0 %v8873_v52  ;;  %3724 = vmatmul.mubr.bf16.gmra.mrb[92].mxu1 %v10610_v8  ;;  %v10618_v52 = vld [vmem:[#allocation110_spill] sm:$0xff] }
 0x27f   : > { %3572 = vmatprep.mubr.bf16.mxu0 %v8899_v5  ;;  %3733 = vmatprep.mubr.bf16.mxu1 %v8891_v39  ;;  %v1268_v0 = vmul.f32 %v8907_v16, %v10618_v52 }
 0x281   : > { %v9069_v10 = vpop.f32.mrb[16].mxu1 }
 0x282   : > { %10611 = vst [vmem:[#allocation48_spill] sm:$0xff] %v9069_v10  ;;  %v9073_v47 = vpop.f32.mrb[17].mxu1 }
 0x283   : > { %10612 = vst [vmem:[#allocation50_spill] sm:$0xff] %v9073_v47  ;;  %v9075_v25 = vpop.f32.mrb[18].mxu1  ;;  %v6238_v47 = vld [vmem:[%s6752_s7 + $0x63c] ss:$24 sps:$4 sm:$0xff]  }
 0x284   : > { %10613 = vst [vmem:[#allocation47_spill] sm:$0xff] %v9075_v25  ;;  %v9079_v32 = vpop.f32.mrb[19].mxu1 }
 0x285   : > { %10615 = vst [vmem:[#allocation49_spill] sm:$0xff] %v9079_v32  ;;  %v9097_v32 = vpack.c.bf16 %v1268_v0, %v1268_v0 }
 0x286   : > { %3573 = vmatmul.mubr.bf16.gmra.mrb[44].mxu0 %v8901_v38  ;;  %3734 = vmatmul.mubr.bf16.gmra.mrb[96].mxu1 %v8895_v3 }
 0x287   : > { %3582 = vmatprep.mubr.bf16.mxu0 %v9081_v58  ;;  %3743 = vmatprep.mubr.bf16.mxu1 %v8917_v20  ;;  %10622 = vst [vmem:[#allocation55_spill] sm:$0xff] %v9097_v32  ;;  %v10623_v58 = vld [vmem:[#allocation112_spill] sm:$0xff] }
 0x28b   : > { %v9087_v5 = vpop.f32.mrb[20].mxu1 }
 0x28c   : > { %10617 = vst [vmem:[#allocation51_spill] sm:$0xff] %v9087_v5  ;;  %v9091_v25 = vpop.f32.mrb[21].mxu1  ;;  %v10628_v5 = vld [vmem:[#allocation113_spill] sm:$0xff] }
 0x28d   : > { %10619 = vst [vmem:[#allocation54_spill] sm:$0xff] %v9091_v25  ;;  %v9093_v12 = vpop.f32.mrb[22].mxu1  ;;  %v6229_v25 = vld [vmem:[%s6752_s7 + $0x344] ss:$24 sps:$4 sm:$0xff]  }
 0x28e   : > { %10620 = vst [vmem:[#allocation56_spill] sm:$0xff] %v9093_v12  ;;  %v9095_v38 = vpop.f32.mrb[23].mxu1  ;;  %3583 = vmatmul.mubr.bf16.gmra.mrb[48].mxu0 %v9097_v32  ;;  %3744 = vmatmul.mubr.bf16.gmra.mrb[100].mxu1 %v8921_v37  ;;  %v6230_v32 = vld [vmem:[%s6752_s7 + $0x608] ss:$24 sps:$4 sm:$0xff]  }
 0x28f   : > { %10621 = vst [vmem:[#allocation53_spill] sm:$0xff] %v9095_v38  ;;  %3784 = vmatprep.mubr.bf16.mxu1 %v10623_v58  ;;  %4106 = vmatprep.mubr.bf16.mxu0 %v8519_v2  ;;  %v6224_v38 = vld [vmem:[%s6752_s7 + $0x310] ss:$24 sps:$4 sm:$0xff]   ;;  %v10629_v2 = vld [vmem:[#allocation114_spill] sm:$0xff] }
 0x295   : > { %v9103_v52 = vpop.f32.mrb[24].mxu1 }
 0x296   : > { %10624 = vst [vmem:[#allocation58_spill] sm:$0xff] %v9103_v52  ;;  %v9105_v16 = vpop.f32.mrb[25].mxu1  ;;  %3785 = vmatmul.mubr.bf16.vlgmr.msra.gmra.mrb[52].mxu1 %v10628_v5  ;;  %4107 = vmatmul.mubr.bf16.vlgmr.msra.gmra.mrb[52].mxu0 %v8523_v23  ;;  %v6227_v52 = vld [vmem:[%s6752_s7 + $0x340] ss:$24 sps:$4 sm:$0xff]  }
 0x297   : > { %10625 = vst [vmem:[#allocation57_spill] sm:$0xff] %v9105_v16  ;;  %v9107_v12 = vpop.f32.mrb[26].mxu1  ;;  %4236 = vmatpush1.bf16.msra.mxu0 %v6224_v38  ;;  %3794 = vmatprep.mubr.bf16.mxu1 %v10629_v2  ;;  %v6233_v38 = vld [vmem:[%s6752_s7 + $0x370] ss:$24 sps:$4 sm:$0xff]  }
 0x298   : > { %10626 = vst [vmem:[#allocation60_spill] sm:$0xff] %v9107_v12  ;;  %v9110_v0 = vpop.f32.mrb[27].mxu1  ;;  %4116 = vmatprep.mubr.bf16.mxu0 %v8554_v63  ;;  %4237 = vmatprep.subr.bf16.mxu0 %v6229_v25  ;;  %v6235_v12 = vld [vmem:[%s6752_s7 + $0x374] ss:$24 sps:$4 sm:$0xff]   ;;  %v6242_v25 = vld [vmem:[%s6752_s7 + $0x668] ss:$24 sps:$4 sm:$0xff]  }
 0x299   : > { %10627 = vst [vmem:[#allocation59_spill] sm:$0xff] %v9110_v0  ;;  %3914 = vmatpush1.bf16.msra.mxu1 %v6230_v32  ;;  %v6236_v0 = vld [vmem:[%s6752_s7 + $0x638] ss:$24 sps:$4 sm:$0xff]   ;;  %v6241_v32 = vld [vmem:[%s6752_s7 + $0x3a4] ss:$24 sps:$4 sm:$0xff]  }
 0x29a   : > { %3915 = vmatprep.subr.bf16.mxu1 %v6238_v47  ;;  %v6250_v47 = vld [vmem:[%s6752_s7 + $0x69c] ss:$24 sps:$4 sm:$0xff]  }
 0x29b   : > { %4238 = vmatpush1.bf16.msra.mxu0 %v6227_v52  ;;  %v10635_v52 = vld [vmem:[#allocation9_spill] sm:$0xff] }
 0x29c   : > { %4239 = vmatprep.subr.bf16.mxu0 %v6235_v12  ;;  %v6239_v12 = vld [vmem:[%s6752_s7 + $0x3a0] ss:$24 sps:$4 sm:$0xff]  }
 0x29d   : > { %3916 = vmatpush1.bf16.msra.mxu1 %v6236_v0  ;;  %v6247_v0 = vld [vmem:[%s6752_s7 + $0x3d4] ss:$24 sps:$4 sm:$0xff]  }
 0x29e   : > { %3795 = vmatmul.mubr.bf16.gmra.mrb[56].mxu1 %v10634_v62  ;;  %4117 = vmatmul.mubr.bf16.gmra.mrb[56].mxu0 %v8561_v60 }
 0x29f   : > { %3804 = vmatprep.mubr.bf16.mxu1 %v10635_v52  ;;  %4126 = vmatprep.mubr.bf16.mxu0 %v8593_v1 }
 0x2a0   : > { %v9122_v16 = vpop.f32.mrb[28].mxu1  ;;  %4240 = vmatpush1.bf16.msra.mxu0 %v6233_v38  ;;  %3917 = vmatprep.subr.bf16.mxu1 %v6244_v36  ;;  %v6253_v36 = vld [vmem:[%s6752_s7 + $0x404] ss:$24 sps:$4 sm:$0xff]   ;;  %v6254_v38 = vld [vmem:[%s6752_s7 + $0x6c8] ss:$24 sps:$4 sm:$0xff]  }
 0x2a1   : > { %10630 = vst [vmem:[#allocation62_spill] sm:$0xff] %v9122_v16  ;;  %v9124_v10 = vpop.f32.mrb[29].mxu1  ;;  %4241 = vmatprep.subr.bf16.mxu0 %v6241_v32  ;;  %3918 = vmatpush1.bf16.msra.mxu1 %v6242_v25  ;;  %v6256_v16 = vld [vmem:[%s6752_s7 + $0x6cc] ss:$24 sps:$4 sm:$0xff]  }
 0x2a2   : > { %10631 = vst [vmem:[#allocation61_spill] sm:$0xff] %v9124_v10  ;;  %v9126_v23 = vpop.f32.mrb[30].mxu1  ;;  %3919 = vmatprep.subr.bf16.mxu1 %v6250_v47  ;;  %v6245_v10 = vld [vmem:[%s6752_s7 + $0x3d0] ss:$24 sps:$4 sm:$0xff]   ;;  %v6262_v47 = vld [vmem:[%s6752_s7 + $0x6fc] ss:$24 sps:$4 sm:$0xff]  }
 0x2a3   : > { %10632 = vst [vmem:[#allocation64_spill] sm:$0xff] %v9126_v23  ;;  %v9130_v63 = vpop.f32.mrb[31].mxu1  ;;  %v10640_v25 = vld [vmem:[#allocation7_spill] sm:$0xff] }
 0x2a4   : > { %10633 = vst [vmem:[#allocation66_spill] sm:$0xff] %v9130_v63  ;;  %v6248_v63 = vld [vmem:[%s6752_s7 + $0x698] ss:$24 sps:$4 sm:$0xff]   ;;  %4242 = vmatpush1.bf16.msra.mxu0 %v6239_v12 }
 0x2a5   : > { %4243 = vmatprep.subr.bf16.mxu0 %v6247_v0  ;;  %3920 = vmatpush1.bf16.msra.mxu1 %v6248_v63  ;;  %v10641_v12 = vld [vmem:[#allocation8_spill] sm:$0xff]  ;;  %v6251_v0 = vld [vmem:[%s6752_s7 + $0x400] ss:$24 sps:$4 sm:$0xff]  }
 0x2a6   : > { %3805 = vmatmul.mubr.bf16.gmra.mrb[60].mxu1 %v10640_v25  ;;  %4127 = vmatmul.mubr.bf16.gmra.mrb[60].mxu0 %v8599_v11  ;;  %v6259_v63 = vld [vmem:[%s6752_s7 + $0x434] ss:$24 sps:$4 sm:$0xff]  }
 0x2a7   : > { %3814 = vmatprep.mubr.bf16.mxu1 %v10641_v12  ;;  %4136 = vmatprep.mubr.bf16.mxu0 %v8629_v48 }
 0x2a8   : > { %4244 = vmatpush1.bf16.msra.mxu0 %v6245_v10  ;;  %3921 = vmatprep.subr.bf16.mxu1 %v6256_v16  ;;  %v6265_v10 = vld [vmem:[%s6752_s7 + $0x464] ss:$24 sps:$4 sm:$0xff]   ;;  %v6266_v16 = vld [vmem:[%s6752_s7 + $0x728] ss:$24 sps:$4 sm:$0xff]  }
 0x2a9   : > { %v9142_v23 = vpop.f32.mrb[32].mxu1  ;;  %4245 = vmatprep.subr.bf16.mxu0 %v6253_v36  ;;  %3922 = vmatpush1.bf16.msra.mxu1 %v6254_v38  ;;  %v10646_v38 = vld [vmem:[#allocation11_spill] sm:$0xff] }
 0x2aa   : > { %10636 = vst [vmem:[#allocation63_spill] sm:$0xff] %v9142_v23  ;;  %v9144_v60 = vpop.f32.mrb[33].mxu1  ;;  %3923 = vmatprep.subr.bf16.mxu1 %v6262_v47  ;;  %v6268_v23 = vld [vmem:[%s6752_s7 + $0x72c] ss:$24 sps:$4 sm:$0xff]   ;;  %v6274_v47 = vld [vmem:[%s6752_s7 + $0x75c] ss:$24 sps:$4 sm:$0xff]  }
 0x2ab   : > { %10637 = vst [vmem:[#allocation65_spill] sm:$0xff] %v9144_v60  ;;  %v9148_v1 = vpop.f32.mrb[34].mxu1  ;;  %v6257_v60 = vld [vmem:[%s6752_s7 + $0x430] ss:$24 sps:$4 sm:$0xff]  }
 0x2ac   : > { %10638 = vst [vmem:[#allocation68_spill] sm:$0xff] %v9148_v1  ;;  %v9152_v32 = vpop.f32.mrb[35].mxu1  ;;  %4246 = vmatpush1.bf16.msra.mxu0 %v6251_v0  ;;  %v10647_v0 = vld [vmem:[#allocation10_spill] sm:$0xff] }
 0x2ad   : > { %10639 = vst [vmem:[#allocation67_spill] sm:$0xff] %v9152_v32  ;;  %v6260_v32 = vld [vmem:[%s6752_s7 + $0x6f8] ss:$24 sps:$4 sm:$0xff]   ;;  %4247 = vmatprep.subr.bf16.mxu0 %v6259_v63 }
 0x2ae   : > { %3924 = vmatpush1.bf16.msra.mxu1 %v6260_v32  ;;  %4137 = vmatmul.mubr.bf16.gmra.mrb[64].mxu0 %v8633_v51  ;;  %v6263_v63 = vld [vmem:[%s6752_s7 + $0x460] ss:$24 sps:$4 sm:$0xff]   ;;  %v6271_v32 = vld [vmem:[%s6752_s7 + $0x494] ss:$24 sps:$4 sm:$0xff]   ;;  %v6269_v51 = vld [vmem:[%s6752_s7 + $0x490] ss:$24 sps:$4 sm:$0xff]  }
 0x2af   : > { %3815 = vmatmul.mubr.bf16.gmra.mrb[64].mxu1 %v10646_v38  ;;  %4146 = vmatprep.mubr.bf16.mxu0 %v8666_v17  ;;  %v6277_v17 = vld [vmem:[%s6752_s7 + $0x4c4] ss:$24 sps:$4 sm:$0xff]  }
 0x2b0   : > { %3824 = vmatprep.mubr.bf16.mxu1 %v10647_v0  ;;  %4248 = vmatpush1.bf16.msra.mxu0 %v6257_v60 }
 0x2b1   : > { %3925 = vmatprep.subr.bf16.mxu1 %v6268_v23  ;;  %4249 = vmatprep.subr.bf16.mxu0 %v6265_v10  ;;  %v6278_v23 = vld [vmem:[%s6752_s7 + $0x788] ss:$24 sps:$4 sm:$0xff]  }
 0x2b2   : > { %v9162_v1 = vpop.f32.mrb[36].mxu1  ;;  %3926 = vmatpush1.bf16.msra.mxu1 %v6266_v16  ;;  %v10651_v10 = vld [vmem:[#allocation6_spill] sm:$0xff]  ;;  %v6286_v16 = vld [vmem:[%s6752_s7 + $0x7bc] ss:$24 sps:$4 sm:$0xff]  }
 0x2b3   : > { %10642 = vst [vmem:[#allocation69_spill] sm:$0xff] %v9162_v1  ;;  %v9164_v11 = vpop.f32.mrb[37].mxu1  ;;  %3927 = vmatprep.subr.bf16.mxu1 %v6274_v47 }
 0x2b4   : > { %10643 = vst [vmem:[#allocation70_spill] sm:$0xff] %v9164_v11  ;;  %v9168_v48 = vpop.f32.mrb[38].mxu1  ;;  %4250 = vmatpush1.bf16.msra.mxu0 %v6263_v63  ;;  %v6280_v11 = vld [vmem:[%s6752_s7 + $0x78c] ss:$24 sps:$4 sm:$0xff]   ;;  %v10653_v63 = vld [vmem:[#allocation12_spill] sm:$0xff] }
 0x2b5   : > { %10644 = vst [vmem:[#allocation72_spill] sm:$0xff] %v9168_v48  ;;  %v9172_v36 = vpop.f32.mrb[39].mxu1  ;;  %4251 = vmatprep.subr.bf16.mxu0 %v6271_v32  ;;  %v6283_v32 = vld [vmem:[%s6752_s7 + $0x4f4] ss:$24 sps:$4 sm:$0xff]  }
 0x2b6   : > { %10645 = vst [vmem:[#allocation74_spill] sm:$0xff] %v9172_v36  ;;  %v6272_v36 = vld [vmem:[%s6752_s7 + $0x758] ss:$24 sps:$4 sm:$0xff]   ;;  %4147 = vmatmul.mubr.bf16.gmra.mrb[68].mxu0 %v8670_v59 }
 0x2b7   : > { %3928 = vmatpush1.bf16.msra.mxu1 %v6272_v36  ;;  %4156 = vmatprep.mubr.bf16.mxu0 %v8702_v21  ;;  %v6275_v36 = vld [vmem:[%s6752_s7 + $0x4c0] ss:$24 sps:$4 sm:$0xff]   ;;  %v6289_v21 = vld [vmem:[%s6752_s7 + $0x524] ss:$24 sps:$4 sm:$0xff]  }
 0x2b8   : > { %3825 = vmatmul.mubr.bf16.gmra.mrb[68].mxu1 %v10651_v10  ;;  %4252 = vmatpush1.bf16.msra.mxu0 %v6269_v51 }
 0x2b9   : > { %3834 = vmatprep.mubr.bf16.mxu1 %v10653_v63  ;;  %3929 = vmatprep.subr.bf16.mxu1 %v6280_v11  ;;  %v6290_v11 = vld [vmem:[%s6752_s7 + $0x7e8] ss:$24 sps:$4 sm:$0xff]  }
 0x2ba   : > { %4253 = vmatprep.subr.bf16.mxu0 %v6277_v17  ;;  %v10657_v17 = vld [vmem:[#allocation16_spill] sm:$0xff] }
 0x2bb   : > { %3930 = vmatpush1.bf16.msra.mxu1 %v6278_v23  ;;  %v6298_v23 = vld [vmem:[%s6752_s7 + $0x81c] ss:$24 sps:$4 sm:$0xff]  }
 0x2bc   : > { %v9182_v48 = vpop.f32.mrb[40].mxu1  ;;  %3931 = vmatprep.subr.bf16.mxu1 %v6286_v16  ;;  %4254 = vmatpush1.bf16.msra.mxu0 %v6275_v36  ;;  %v10659_v36 = vld [vmem:[#allocation19_spill] sm:$0xff] }
 0x2bd   : > { %10648 = vst [vmem:[#allocation71_spill] sm:$0xff] %v9182_v48  ;;  %v9186_v1 = vpop.f32.mrb[41].mxu1  ;;  %4255 = vmatprep.subr.bf16.mxu0 %v6283_v32  ;;  %v6295_v32 = vld [vmem:[%s6752_s7 + $0x554] ss:$24 sps:$4 sm:$0xff]  }
 0x2be   : > { %10649 = vst [vmem:[#allocation73_spill] sm:$0xff] %v9186_v1  ;;  %v9190_v60 = vpop.f32.mrb[42].mxu1  ;;  %v6292_v1 = vld [vmem:[%s6752_s7 + $0x7ec] ss:$24 sps:$4 sm:$0xff]   ;;  %4157 = vmatmul.mubr.bf16.gmra.mrb[72].mxu0 %v10603_v34  ;;  %v6293_v34 = vld [vmem:[%s6752_s7 + $0x550] ss:$24 sps:$4 sm:$0xff]  }
 0x2bf   : > { %10650 = vst [vmem:[#allocation76_spill] sm:$0xff] %v9190_v60  ;;  %v9195_v47 = vpop.f32.mrb[43].mxu1  ;;  %v6284_v60 = vld [vmem:[%s6752_s7 + $0x7b8] ss:$24 sps:$4 sm:$0xff]   ;;  %4166 = vmatprep.mubr.bf16.mxu0 %v10604_v4  ;;  %v6302_v4 = vld [vmem:[%s6752_s7 + $0x848] ss:$24 sps:$4 sm:$0xff]  }
 0x2c0   : > { %10652 = vst [vmem:[#allocation75_spill] sm:$0xff] %v9195_v47  ;;  %v6281_v47 = vld [vmem:[%s6752_s7 + $0x4f0] ss:$24 sps:$4 sm:$0xff]   ;;  %3932 = vmatpush1.bf16.msra.mxu1 %v6284_v60  ;;  %v6287_v60 = vld [vmem:[%s6752_s7 + $0x520] ss:$24 sps:$4 sm:$0xff]  }
 0x2c1   : > { %3835 = vmatmul.mubr.bf16.gmra.mrb[72].mxu1 %v10657_v17  ;;  %4256 = vmatpush1.bf16.msra.mxu0 %v6281_v47  ;;  %v10660_v47 = vld [vmem:[#allocation21_spill] sm:$0xff] }
 0x2c2   : > { %3844 = vmatprep.mubr.bf16.mxu1 %v10659_v36  ;;  %3933 = vmatprep.subr.bf16.mxu1 %v6292_v1  ;;  %v6310_v1 = vld [vmem:[%s6752_s7 + $0x87c] ss:$24 sps:$4 sm:$0xff]  }
 0x2c3   : > { %4257 = vmatprep.subr.bf16.mxu0 %v6289_v21  ;;  %v10661_v21 = vld [vmem:[#allocation23_spill] sm:$0xff] }
 0x2c4   : > { %3934 = vmatpush1.bf16.msra.mxu1 %v6290_v11  ;;  %v6299_v11 = vld [vmem:[%s6752_s7 + $0x580] ss:$24 sps:$4 sm:$0xff]  }
 0x2c5   : > { %v9202_v59 = vpop.f32.mrb[44].mxu1  ;;  %3935 = vmatprep.subr.bf16.mxu1 %v6298_v23  ;;  %4258 = vmatpush1.bf16.msra.mxu0 %v6287_v60  ;;  %v6308_v23 = vld [vmem:[%s6752_s7 + $0x878] ss:$24 sps:$4 sm:$0xff]  }
 0x2c6   : > { %10654 = vst [vmem:[#allocation78_spill] sm:$0xff] %v9202_v59  ;;  %v9206_v48 = vpop.f32.mrb[45].mxu1  ;;  %4259 = vmatprep.subr.bf16.mxu0 %v6295_v32  ;;  %4167 = vmatmul.mubr.bf16.gmra.mrb[76].mxu0 %v10606_v42  ;;  %v6305_v60 = vld [vmem:[%s6752_s7 + $0x5b0] ss:$24 sps:$4 sm:$0xff]   ;;  %v6313_v42 = vld [vmem:[%s6752_s7 + $0x8ac] ss:$24 sps:$4 sm:$0xff]  }
 0x2c7   : > { %10655 = vst [vmem:[#allocation80_spill] sm:$0xff] %v9206_v48  ;;  %v9210_v51 = vpop.f32.mrb[46].mxu1  ;;  %v6301_v48 = vld [vmem:[%s6752_s7 + $0x584] ss:$24 sps:$4 sm:$0xff]   ;;  %4176 = vmatprep.mubr.bf16.mxu0 %v8775_v33  ;;  %v6311_v32 = vld [vmem:[%s6752_s7 + $0x8a8] ss:$24 sps:$4 sm:$0xff]  }
 0x2c8   : > { %10656 = vst [vmem:[#allocation77_spill] sm:$0xff] %v9210_v51  ;;  %v9215_v16 = vpop.f32.mrb[47].mxu1  ;;  %v6296_v51 = vld [vmem:[%s6752_s7 + $0x818] ss:$24 sps:$4 sm:$0xff]   ;;  %v6316_v59 = vld [vmem:[%s6752_s7 + $0x5e4] ss:$24 sps:$4 sm:$0xff]  }
 0x2c9   : > { %10658 = vst [vmem:[#allocation79_spill] sm:$0xff] %v9215_v16  ;;  %v6304_v16 = vld [vmem:[%s6752_s7 + $0x84c] ss:$24 sps:$4 sm:$0xff]   ;;  %3936 = vmatpush1.bf16.msra.mxu1 %v6296_v51  ;;  %4260 = vmatpush1.bf16.msra.mxu0 %v6293_v34  ;;  %v10662_v33 = vld [vmem:[#allocation25_spill] sm:$0xff] }
 0x2ca   : > { %3845 = vmatmul.mubr.bf16.gmra.mrb[76].mxu1 %v10660_v47  ;;  %3937 = vmatprep.subr.bf16.mxu1 %v6304_v16  ;;  %v6307_v51 = vld [vmem:[%s6752_s7 + $0x5b4] ss:$24 sps:$4 sm:$0xff]   ;;  %v6314_v34 = vld [vmem:[%s6752_s7 + $0x5e0] ss:$24 sps:$4 sm:$0xff]  }
 0x2cb   : > { %3854 = vmatprep.mubr.bf16.mxu1 %v10661_v21  ;;  %4261 = vmatprep.subr.bf16.mxu0 %v6301_v48  ;;  %v6319_v16 = vld [vmem:[%s6752_s7 + $0x8dc] ss:$24 sps:$4 sm:$0xff]   ;;  %v10663_v48 = vld [vmem:[#allocation30_spill] sm:$0xff] }
 0x2cd   : > { %3938 = vmatpush1.bf16.msra.mxu1 %v6302_v4  ;;  %4262 = vmatpush1.bf16.msra.mxu0 %v6299_v11  ;;  %v6317_v4 = vld [vmem:[%s6752_s7 + $0x8d8] ss:$24 sps:$4 sm:$0xff]  }
 0x2ce   : > { %3939 = vmatprep.subr.bf16.mxu1 %v6310_v1  ;;  %4263 = vmatprep.subr.bf16.mxu0 %v6307_v51  ;;  %v6322_v1 = vld [vmem:[%s6752_s7 + $0x614] ss:$24 sps:$4 sm:$0xff]  }
 0x2cf   : > { %4177 = vmatmul.mubr.bf16.gmra.mrb[80].mxu0 %v8781_v14  ;;  %v10664_v11 = vld [vmem:[#allocation32_spill] sm:$0xff]  ;;  %v10665_v14 = vld [vmem:[#allocation34_spill] sm:$0xff] }
 0x2d0   : > { %4186 = vmatprep.mubr.bf16.mxu0 %v8807_v27  ;;  %v10666_v27 = vld [vmem:[#allocation33_spill] sm:$0xff]  ;;  %v10668_v51 = vld [vmem:[#allocation40_spill] sm:$0xff] }
 0x2d1   : > { %3940 = vmatpush1.bf16.msra.mxu1 %v6308_v23  ;;  %4264 = vmatpush1.bf16.msra.mxu0 %v6305_v60  ;;  %v6320_v23 = vld [vmem:[%s6752_s7 + $0x610] ss:$24 sps:$4 sm:$0xff]  }
 0x2d2   : > { %3855 = vmatmul.mubr.bf16.gmra.mrb[80].mxu1 %v10662_v33  ;;  %3941 = vmatprep.subr.bf16.mxu1 %v6313_v42  ;;  %v6325_v42 = vld [vmem:[%s6752_s7 + $0x644] ss:$24 sps:$4 sm:$0xff]  }
 0x2d3   : > { %3864 = vmatprep.mubr.bf16.mxu1 %v10663_v48  ;;  %4265 = vmatprep.subr.bf16.mxu0 %v6316_v59  ;;  %v10667_v59 = vld [vmem:[#allocation35_spill] sm:$0xff] }
 0x2d5   : > { %3942 = vmatpush1.bf16.msra.mxu1 %v6311_v32  ;;  %4266 = vmatpush1.bf16.msra.mxu0 %v6314_v34  ;;  %v6323_v32 = vld [vmem:[%s6752_s7 + $0x640] ss:$24 sps:$4 sm:$0xff]   ;;  %v6328_v34 = vld [vmem:[%s6752_s7 + $0x674] ss:$24 sps:$4 sm:$0xff]  }
 0x2d6   : > { %3943 = vmatprep.subr.bf16.mxu1 %v6319_v16  ;;  %4396 = vmatprep.subr.bf16.mxu0 %v6322_v1 }
 0x2d7   : > { %4187 = vmatmul.mubr.bf16.gmra.mrb[84].mxu0 %v8811_v57 }
 0x2d8   : > { %4196 = vmatprep.mubr.bf16.mxu0 %v8835_v49 }
 0x2d9   : > { %3944 = vmatpush1.bf16.msra.mxu1 %v6317_v4 }
 0x2da   : > { %3865 = vmatmul.mubr.bf16.gmra.mrb[84].mxu1 %v10664_v11  ;;  %5401 = vmatprep.subr.bf16.mxu1 %v6322_v1 }
 0x2db   : > { %3874 = vmatprep.mubr.bf16.mxu1 %v10665_v14 }
 0x2df   : > { %4197 = vmatmul.mubr.bf16.gmra.mrb[88].mxu0 %v8839_v6  ;;  %v9276_v6 = vld [vmem:[%s9268_s24] sm:$0x3f] }
 0x2e0   : > { %4206 = vmatprep.mubr.bf16.mxu0 %v8863_v55  ;;  %v1638_v55 = vlaneseq }
 0x2e2   : > { %3875 = vmatmul.mubr.bf16.gmra.mrb[88].mxu1 %v10666_v27  ;;  %v9263_v57 = vshrl.u32 %v1638_v55, 7 }
 0x2e3   : > { %3884 = vmatprep.mubr.bf16.mxu1 %v10667_v59 }
 0x2e4   : > { %v1640_v49 = vsub.s32 0, %v9263_v57 }
 0x2e7   : > { %4207 = vmatmul.mubr.bf16.gmra.mrb[92].mxu0 %v10610_v8 }
 0x2e8   : > { %4216 = vmatprep.mubr.bf16.mxu0 %v8891_v39  ;;  %v1644_v39 = vsub.s32 1, %v9263_v57 }
 0x2ea   : > { %3885 = vmatmul.mubr.bf16.gmra.mrb[92].mxu1 %v10668_v51 }
 0x2eb   : > { %3894 = vmatprep.mubr.bf16.mxu1 %v8893_v53 }
 0x2ef   : > { %4217 = vmatmul.mubr.bf16.gmra.mrb[96].mxu0 %v8895_v3 }
 0x2f0   : > { %4226 = vmatprep.mubr.bf16.mxu0 %v8917_v20 }
 0x2f2   : > { %3895 = vmatmul.mubr.bf16.gmra.mrb[96].mxu1 %v8897_v18 }
 0x2f3   : > { %3904 = vmatprep.mubr.bf16.mxu1 %v8919_v54 }
 0x2f7   : > { %4227 = vmatmul.mubr.bf16.gmra.mrb[100].mxu0 %v8921_v37  ;;  %v9285_v37 = vrot.slane %v9276_v6, %v1640_v49 }
 0x2f8   : > { %4267 = vmatprep.mubr.bf16.mxu0 %v10623_v58  ;;  %v9289_v58 = vrot.slane %v9276_v6, %v1644_v39 }
 0x2f9   : > { %v9279_v3 = vpop.f32.mrb[48].mxu1  ;;  %v3143_v16 = vadd.f32 %v9002_v40, %v9285_v37 }
 0x2fa   : > { %3905 = vmatmul.mubr.bf16.gmra.mrb[100].mxu1 %v8923_v50  ;;  %v9281_v20 = vpop.f32.mrb[49].mxu1  ;;  %v3145_v4 = vadd.f32 %v9004_v28, %v9289_v58  ;;  %v3149_v40 = vadd.f32 %v9010_v15, %v9289_v58  ;;  %v6331_v15 = vld [vmem:[%s6752_s7 + $0x6a4] ss:$24 sps:$4 sm:$0xff]  }
 0x2fb   : > { %3945 = vmatprep.mubr.bf16.mxu1 %v8531_v13  ;;  %v3266_v8 = vpop.f32.mrb[50].mxu1 }
 0x2fc   : > { %v3267_v60 = vpop.f32.mrb[51].mxu1  ;;  %v6326_v8 = vld [vmem:[%s6752_s7 + $0x670] ss:$24 sps:$4 sm:$0xff]  }
 0x2fd   : > { %v3153_v60 = vadd.f32 %v9022_v31, %v9285_v37 }
 0x2ff   : > { %4268 = vmatmul.mubr.bf16.vlgmr.msra.gmra.mrb[52].mxu0 %v10628_v5  ;;  %v3147_v5 = vadd.f32 %v9006_v43, %v9285_v37 }
 0x300   : > { %4397 = vmatpush1.bf16.msra.mxu0 %v6320_v23  ;;  %4277 = vmatprep.mubr.bf16.mxu0 %v10629_v2 }
 0x301   : > { %4398 = vmatprep.subr.bf16.mxu0 %v6325_v42  ;;  %v3464_v1 = vpop.f32.mrb[0].mxu0 }
 0x302   : > { %3946 = vmatmul.mubr.bf16.vlgmr.msra.gmra.mrb[52].mxu1 %v8533_v19  ;;  %v5434_v55 = vadd.f32 %v3464_v1, %v3143_v16  ;;  %v3466_v49 = vpop.f32.mrb[1].mxu0 }
 0x303   : > { %3955 = vmatprep.mubr.bf16.mxu1 %v8567_v56  ;;  %5417 = vmatpush1.bf16.msra.mxu1 %v6320_v23  ;;  %v5436_v39 = vadd.f32 %v3466_v49, %v3145_v4  ;;  %v3468_v2 = vpop.f32.mrb[2].mxu0  ;;  %v3157_v4 = vadd.f32 %v9028_v61, %v9285_v37  ;;  %v6332_v49 = vld [vmem:[%s6752_s7 + $0x6d0] ss:$24 sps:$4 sm:$0xff]   ;;  %v6337_v61 = vld [vmem:[%s6752_s7 + $0x704] ss:$24 sps:$4 sm:$0xff]  }
 0x304   : > { %5402 = vmatprep.subr.bf16.mxu1 %v6325_v42  ;;  %4399 = vmatpush1.bf16.msra.mxu0 %v6323_v32  ;;  %4557 = vst [vmem:[%s9306_s28] sm:$0xff] %v5434_v55  ;;  %v5438_v28 = vadd.f32 %v3468_v2, %v3147_v5  ;;  %v3470_v43 = vpop.f32.mrb[3].mxu0  ;;  %v6329_v42 = vld [vmem:[%s6752_s7 + $0x6a0] ss:$24 sps:$4 sm:$0xff]   ;;  %v3165_v2 = vadd.f32 %v9047_v24, %v9289_v58 }
 0x305   : > { %4400 = vmatprep.subr.bf16.mxu0 %v6328_v34  ;;  %4558 = vst [vmem:[%s9306_s28 + $0x8] sm:$0xff] %v5436_v39  ;;  %v5440_v23 = vadd.f32 %v3470_v43, %v3149_v40  ;;  %v6335_v39 = vld [vmem:[%s6752_s7 + $0x700] ss:$24 sps:$4 sm:$0xff]   ;;  %v3167_v43 = vadd.f32 %v9051_v46, %v9285_v37  ;;  %v6343_v46 = vld [vmem:[%s6752_s7 + $0x764] ss:$24 sps:$4 sm:$0xff]  }
 0x306   : > { %4563 = vst [vmem:[%s9306_s28 + $0x30] sm:$0xff] %v5438_v28 }
 0x307   : > { %5418 = vmatpush1.bf16.msra.mxu1 %v6323_v32  ;;  %4278 = vmatmul.mubr.bf16.gmra.mrb[56].mxu0 %v10634_v62  ;;  %4564 = vst [vmem:[%s9306_s28 + $0x38] sm:$0xff] %v5440_v23  ;;  %v3155_v32 = vadd.f32 %v9024_v35, %v9289_v58  ;;  %v6334_v62 = vld [vmem:[%s6752_s7 + $0x6d4] ss:$24 sps:$4 sm:$0xff]  }
 0x308   : > { %4287 = vmatprep.mubr.bf16.mxu0 %v10635_v52  ;;  %4401 = vmatpush1.bf16.msra.mxu0 %v6326_v8 }
 0x309   : > { %5403 = vmatprep.subr.bf16.mxu1 %v6328_v34  ;;  %v3474_v16 = vpop.f32.mrb[4].mxu0  ;;  %4402 = vmatprep.subr.bf16.mxu0 %v6331_v15  ;;  %v3159_v34 = vadd.f32 %v9032_v7, %v9289_v58  ;;  %v3163_v7 = vadd.f32 %v9043_v26, %v9285_v37 }
 0x30a   : > { %3956 = vmatmul.mubr.bf16.gmra.mrb[56].mxu1 %v8571_v29  ;;  %v5442_v52 = vadd.f32 %v3474_v16, %v3153_v60  ;;  %v3476_v31 = vpop.f32.mrb[5].mxu0  ;;  %v3173_v16 = vadd.f32 %v9055_v44, %v9285_v37 }
 0x30b   : > { %3965 = vmatprep.mubr.bf16.mxu1 %v8605_v9  ;;  %5419 = vmatpush1.bf16.msra.mxu1 %v6326_v8  ;;  %v5444_v1 = vadd.f32 %v3476_v31, %v3155_v32  ;;  %v3478_v35 = vpop.f32.mrb[6].mxu0  ;;  %v3169_v8 = vadd.f32 %v9053_v22, %v9289_v58  ;;  %v10669_v22 = vld [vmem:[#allocation13_spill] sm:$0xff] }
 0x30c   : > { %5404 = vmatprep.subr.bf16.mxu1 %v6331_v15  ;;  %4569 = vst [vmem:[%s9306_s28 + $0x60] sm:$0xff] %v5442_v52  ;;  %v5446_v5 = vadd.f32 %v3478_v35, %v3157_v4  ;;  %v3480_v55 = vpop.f32.mrb[7].mxu0  ;;  %4403 = vmatpush1.bf16.msra.mxu0 %v6329_v42  ;;  %v10670_v4 = vld [vmem:[#allocation43_spill] sm:$0xff]  ;;  %v10672_v35 = vld [vmem:[#allocation45_spill] sm:$0xff] }
 0x30d   : > { %4570 = vst [vmem:[%s9306_s28 + $0x68] sm:$0xff] %v5444_v1  ;;  %v5448_v40 = vadd.f32 %v3480_v55, %v3159_v34  ;;  %4404 = vmatprep.subr.bf16.mxu0 %v6334_v62  ;;  %v3175_v52 = vadd.f32 %v10670_v4, %v9289_v58  ;;  %v10671_v34 = vld [vmem:[#allocation46_spill] sm:$0xff] }
 0x30e   : > { %4575 = vst [vmem:[%s9306_s28 + $0x90] sm:$0xff] %v5446_v5  ;;  %v3177_v1 = vadd.f32 %v10671_v34, %v9285_v37  ;;  %v3179_v5 = vadd.f32 %v10672_v35, %v9289_v58  ;;  %v6355_v34 = vld [vmem:[%s6752_s7 + $0x824] ss:$24 sps:$4 sm:$0xff]  }
 0x30f   : > { %5420 = vmatpush1.bf16.msra.mxu1 %v6329_v42  ;;  %4288 = vmatmul.mubr.bf16.gmra.mrb[60].mxu0 %v10640_v25  ;;  %4576 = vst [vmem:[%s9306_s28 + $0x98] sm:$0xff] %v5448_v40  ;;  %v6340_v25 = vld [vmem:[%s6752_s7 + $0x734] ss:$24 sps:$4 sm:$0xff]   ;;  %v6338_v42 = vld [vmem:[%s6752_s7 + $0x730] ss:$24 sps:$4 sm:$0xff]  }
 0x310   : > { %4297 = vmatprep.mubr.bf16.mxu0 %v10641_v12  ;;  %4405 = vmatpush1.bf16.msra.mxu0 %v6332_v49 }
 0x311   : > { %5405 = vmatprep.subr.bf16.mxu1 %v6334_v62  ;;  %v3484_v28 = vpop.f32.mrb[8].mxu0  ;;  %4406 = vmatprep.subr.bf16.mxu0 %v6337_v61  ;;  %v6341_v62 = vld [vmem:[%s6752_s7 + $0x760] ss:$24 sps:$4 sm:$0xff]  }
 0x312   : > { %3966 = vmatmul.mubr.bf16.gmra.mrb[60].mxu1 %v8614_v41  ;;  %v5450_v12 = vadd.f32 %v3484_v28, %v3163_v7  ;;  %v3486_v26 = vpop.f32.mrb[9].mxu0  ;;  %v6344_v7 = vld [vmem:[%s6752_s7 + $0x790] ss:$24 sps:$4 sm:$0xff]  }
 0x313   : > { %3975 = vmatprep.mubr.bf16.mxu1 %v8641_v45  ;;  %5421 = vmatpush1.bf16.msra.mxu1 %v6332_v49  ;;  %v5452_v23 = vadd.f32 %v3486_v26, %v3165_v2  ;;  %v3488_v24 = vpop.f32.mrb[10].mxu0  ;;  %v6349_v2 = vld [vmem:[%s6752_s7 + $0x7c4] ss:$24 sps:$4 sm:$0xff]   ;;  %v10673_v28 = vld [vmem:[#allocation15_spill] sm:$0xff]  ;;  %v6347_v26 = vld [vmem:[%s6752_s7 + $0x7c0] ss:$24 sps:$4 sm:$0xff]  }
 0x314   : > { %5406 = vmatprep.subr.bf16.mxu1 %v6337_v61  ;;  %4581 = vst [vmem:[%s9306_s28 + $0xc0] sm:$0xff] %v5450_v12  ;;  %v5454_v15 = vadd.f32 %v3488_v24, %v3167_v43  ;;  %v3490_v60 = vpop.f32.mrb[11].mxu0  ;;  %4407 = vmatpush1.bf16.msra.mxu0 %v6335_v39  ;;  %v10675_v43 = vld [vmem:[#allocation48_spill] sm:$0xff] }
 0x315   : > { %4582 = vst [vmem:[%s9306_s28 + $0xc8] sm:$0xff] %v5452_v23  ;;  %v5456_v32 = vadd.f32 %v3490_v60, %v3169_v8  ;;  %4408 = vmatprep.subr.bf16.mxu0 %v6340_v25  ;;  %v3183_v12 = vadd.f32 %v10675_v43, %v9285_v37  ;;  %v10676_v8 = vld [vmem:[#allocation50_spill] sm:$0xff] }
 0x316   : > { %4587 = vst [vmem:[%s9306_s28 + $0xf0] sm:$0xff] %v5454_v15  ;;  %v3185_v23 = vadd.f32 %v10676_v8, %v9289_v58  ;;  %v10677_v15 = vld [vmem:[#allocation47_spill] sm:$0xff] }
 0x317   : > { %5422 = vmatpush1.bf16.msra.mxu1 %v6335_v39  ;;  %4298 = vmatmul.mubr.bf16.gmra.mrb[64].mxu0 %v10646_v38  ;;  %4588 = vst [vmem:[%s9306_s28 + $0xf8] sm:$0xff] %v5456_v32  ;;  %v6346_v38 = vld [vmem:[%s6752_s7 + $0x794] ss:$24 sps:$4 sm:$0xff]   ;;  %v3187_v60 = vadd.f32 %v10677_v15, %v9285_v37  ;;  %v10678_v32 = vld [vmem:[#allocation49_spill] sm:$0xff] }
 0x318   : > { %4307 = vmatprep.mubr.bf16.mxu0 %v10647_v0  ;;  %4409 = vmatpush1.bf16.msra.mxu0 %v6338_v42  ;;  %v6361_v15 = vld [vmem:[%s6752_s7 + $0x884] ss:$24 sps:$4 sm:$0xff]  }
 0x319   : > { %5407 = vmatprep.subr.bf16.mxu1 %v6340_v25  ;;  %v3494_v31 = vpop.f32.mrb[12].mxu0  ;;  %4410 = vmatprep.subr.bf16.mxu0 %v6343_v46  ;;  %v10674_v25 = vld [vmem:[#allocation18_spill] sm:$0xff] }
 0x31a   : > { %3976 = vmatmul.mubr.bf16.gmra.mrb[64].mxu1 %v8643_v30  ;;  %v5458_v0 = vadd.f32 %v3494_v31, %v3173_v16  ;;  %v3496_v44 = vpop.f32.mrb[13].mxu0  ;;  %v6350_v31 = vld [vmem:[%s6752_s7 + $0x7f0] ss:$24 sps:$4 sm:$0xff]  }
 0x31b   : > { %3985 = vmatprep.mubr.bf16.mxu1 %v10669_v22  ;;  %5423 = vmatpush1.bf16.msra.mxu1 %v6338_v42  ;;  %v5460_v55 = vadd.f32 %v3496_v44, %v3175_v52  ;;  %v3498_v49 = vpop.f32.mrb[14].mxu0  ;;  %v10681_v44 = vld [vmem:[#allocation51_spill] sm:$0xff] }
 0x31c   : > { %5408 = vmatprep.subr.bf16.mxu1 %v6343_v46  ;;  %4593 = vst [vmem:[%s9306_s28 + $0x120] sm:$0xff] %v5458_v0  ;;  %v5462_v40 = vadd.f32 %v3498_v49, %v3177_v1  ;;  %v3500_v61 = vpop.f32.mrb[15].mxu0  ;;  %4411 = vmatpush1.bf16.msra.mxu0 %v6341_v62  ;;  %v3189_v46 = vadd.f32 %v10678_v32, %v9289_v58  ;;  %v10679_v1 = vld [vmem:[#allocation20_spill] sm:$0xff] }
 0x31d   : > { %4594 = vst [vmem:[%s9306_s28 + $0x128] sm:$0xff] %v5460_v55  ;;  %v5464_v39 = vadd.f32 %v3500_v61, %v3179_v5  ;;  %4412 = vmatprep.subr.bf16.mxu0 %v6346_v38  ;;  %v10680_v0 = vld [vmem:[#allocation24_spill] sm:$0xff]  ;;  %v3193_v35 = vadd.f32 %v10681_v44, %v9285_v37  ;;  %v6353_v5 = vld [vmem:[%s6752_s7 + $0x820] ss:$24 sps:$4 sm:$0xff]  }
 0x31e   : > { %4599 = vst [vmem:[%s9306_s28 + $0x150] sm:$0xff] %v5462_v40  ;;  %v10682_v55 = vld [vmem:[#allocation54_spill] sm:$0xff]  ;;  %v10683_v61 = vld [vmem:[#allocation56_spill] sm:$0xff] }
 0x31f   : > { %5424 = vmatpush1.bf16.msra.mxu1 %v6341_v62  ;;  %4308 = vmatmul.mubr.bf16.gmra.mrb[68].mxu0 %v10651_v10  ;;  %4600 = vst [vmem:[%s9306_s28 + $0x158] sm:$0xff] %v5464_v39  ;;  %v6352_v10 = vld [vmem:[%s6752_s7 + $0x7f4] ss:$24 sps:$4 sm:$0xff]   ;;  %v3195_v49 = vadd.f32 %v10682_v55, %v9289_v58 }
 0x320   : > { %4317 = vmatprep.mubr.bf16.mxu0 %v10653_v63  ;;  %4413 = vmatpush1.bf16.msra.mxu0 %v6344_v7 }
 0x321   : > { %5409 = vmatprep.subr.bf16.mxu1 %v6346_v38  ;;  %v3504_v24 = vpop.f32.mrb[16].mxu0  ;;  %4414 = vmatprep.subr.bf16.mxu0 %v6349_v2 }
 0x322   : > { %3986 = vmatmul.mubr.bf16.gmra.mrb[68].mxu1 %v10673_v28  ;;  %v5466_v63 = vadd.f32 %v3504_v24, %v3183_v12  ;;  %v3506_v42 = vpop.f32.mrb[17].mxu0  ;;  %v6356_v24 = vld [vmem:[%s6752_s7 + $0x850] ss:$24 sps:$4 sm:$0xff]  }
 0x323   : > { %3995 = vmatprep.mubr.bf16.mxu1 %v10674_v25  ;;  %5425 = vmatpush1.bf16.msra.mxu1 %v6344_v7  ;;  %v5468_v16 = vadd.f32 %v3506_v42, %v3185_v23  ;;  %v3508_v62 = vpop.f32.mrb[18].mxu0  ;;  %v3197_v7 = vadd.f32 %v10683_v61, %v9285_v37  ;;  %v10687_v42 = vld [vmem:[#allocation58_spill] sm:$0xff] }
 0x324   : > { %5410 = vmatprep.subr.bf16.mxu1 %v6349_v2  ;;  %4605 = vst [vmem:[%s9306_s28 + $0x180] sm:$0xff] %v5466_v63  ;;  %v5470_v4 = vadd.f32 %v3508_v62, %v3187_v60  ;;  %v3510_v52 = vpop.f32.mrb[19].mxu0  ;;  %4415 = vmatpush1.bf16.msra.mxu0 %v6347_v26  ;;  %v10684_v2 = vld [vmem:[#allocation53_spill] sm:$0xff]  ;;  %v10685_v60 = vld [vmem:[#allocation26_spill] sm:$0xff]  ;;  %v10686_v63 = vld [vmem:[#allocation28_spill] sm:$0xff]  ;;  %v3203_v32 = vadd.f32 %v10687_v42, %v9285_v37 }
 0x325   : > { %4606 = vst [vmem:[%s9306_s28 + $0x188] sm:$0xff] %v5468_v16  ;;  %v5472_v38 = vadd.f32 %v3510_v52, %v3189_v46  ;;  %4416 = vmatprep.subr.bf16.mxu0 %v6352_v10  ;;  %v3199_v43 = vadd.f32 %v10684_v2, %v9289_v58  ;;  %v6359_v46 = vld [vmem:[%s6752_s7 + $0x880] ss:$24 sps:$4 sm:$0xff]   ;;  %v10689_v52 = vld [vmem:[#allocation60_spill] sm:$0xff]  ;;  %v6367_v61 = vld [vmem:[%s6752_s7 + $0x8e4] ss:$24 sps:$4 sm:$0xff]  }
 0x326   : > { %4611 = vst [vmem:[%s9306_s28 + $0x1b0] sm:$0xff] %v5470_v4  ;;  %v10688_v16 = vld [vmem:[#allocation57_spill] sm:$0xff] }
 0x327   : > { %5426 = vmatpush1.bf16.msra.mxu1 %v6347_v26  ;;  %4318 = vmatmul.mubr.bf16.gmra.mrb[72].mxu0 %v10657_v17  ;;  %4612 = vst [vmem:[%s9306_s28 + $0x1b8] sm:$0xff] %v5472_v38  ;;  %v6358_v17 = vld [vmem:[%s6752_s7 + $0x854] ss:$24 sps:$4 sm:$0xff]   ;;  %v3205_v62 = vadd.f32 %v10688_v16, %v9289_v58 }
 0x328   : > { %4327 = vmatprep.mubr.bf16.mxu0 %v10659_v36  ;;  %4417 = vmatpush1.bf16.msra.mxu0 %v6350_v31 }
 0x329   : > { %5411 = vmatprep.subr.bf16.mxu1 %v6352_v10  ;;  %v3514_v40 = vpop.f32.mrb[20].mxu0  ;;  %4418 = vmatprep.subr.bf16.mxu0 %v6355_v34 }
 0x32a   : > { %3996 = vmatmul.mubr.bf16.gmra.mrb[72].mxu1 %v10679_v1  ;;  %v5474_v36 = vadd.f32 %v3514_v40, %v3193_v35  ;;  %v3516_v39 = vpop.f32.mrb[21].mxu0  ;;  %v6362_v40 = vld [vmem:[%s6752_s7 + $0x8b0] ss:$24 sps:$4 sm:$0xff]  }
 0x32b   : > { %4005 = vmatprep.mubr.bf16.mxu1 %v10680_v0  ;;  %5427 = vmatpush1.bf16.msra.mxu1 %v6350_v31  ;;  %v5476_v12 = vadd.f32 %v3516_v39, %v3195_v49  ;;  %v3518_v26 = vpop.f32.mrb[22].mxu0  ;;  %v3207_v31 = vadd.f32 %v10689_v52, %v9285_v37  ;;  %v10693_v39 = vld [vmem:[#allocation62_spill] sm:$0xff]  ;;  %v10699_v52 = vld [vmem:[#allocation63_spill] sm:$0xff] }
 0x32c   : > { %5412 = vmatprep.subr.bf16.mxu1 %v6355_v34  ;;  %4617 = vst [vmem:[%s9306_s28 + $0x1e0] sm:$0xff] %v5474_v36  ;;  %v5478_v8 = vadd.f32 %v3518_v26, %v3197_v7  ;;  %v3520_v23 = vpop.f32.mrb[23].mxu0  ;;  %4419 = vmatpush1.bf16.msra.mxu0 %v6353_v5  ;;  %v10690_v34 = vld [vmem:[#allocation59_spill] sm:$0xff]  ;;  %v10692_v36 = vld [vmem:[#allocation29_spill] sm:$0xff]  ;;  %v3213_v2 = vadd.f32 %v10693_v39, %v9285_v37 }
 0x32d   : > { %4618 = vst [vmem:[%s9306_s28 + $0x1e8] sm:$0xff] %v5476_v12  ;;  %v5480_v10 = vadd.f32 %v3520_v23, %v3199_v43  ;;  %4420 = vmatprep.subr.bf16.mxu0 %v6358_v17  ;;  %v3209_v44 = vadd.f32 %v10690_v34, %v9289_v58  ;;  %v10691_v7 = vld [vmem:[#allocation27_spill] sm:$0xff]  ;;  %v6365_v43 = vld [vmem:[%s6752_s7 + $0x8e0] ss:$24 sps:$4 sm:$0xff]  }
 0x32e   : > { %4623 = vst [vmem:[%s9306_s28 + $0x210] sm:$0xff] %v5478_v8  ;;  %v10694_v12 = vld [vmem:[#allocation61_spill] sm:$0xff] }
 0x32f   : > { %5428 = vmatpush1.bf16.msra.mxu1 %v6353_v5  ;;  %4328 = vmatmul.mubr.bf16.gmra.mrb[76].mxu0 %v10660_v47  ;;  %4624 = vst [vmem:[%s9306_s28 + $0x218] sm:$0xff] %v5480_v10  ;;  %v6364_v47 = vld [vmem:[%s6752_s7 + $0x8b4] ss:$24 sps:$4 sm:$0xff]   ;;  %v3215_v26 = vadd.f32 %v10694_v12, %v9289_v58  ;;  %v10696_v10 = vld [vmem:[#allocation66_spill] sm:$0xff]  ;;  %v10705_v12 = vld [vmem:[#allocation69_spill] sm:$0xff]  ;;  %s5400_s7 = smul.u32 (%p10722_p9), 48, %s6678_s16 }
 0x330   : > { %4337 = vmatprep.mubr.bf16.mxu0 %v10661_v21  ;;  %4421 = vmatpush1.bf16.msra.mxu0 %v6356_v24 }
 0x331   : > { %5413 = vmatprep.subr.bf16.mxu1 %v6358_v17  ;;  %v3524_v4 = vpop.f32.mrb[24].mxu0  ;;  %4422 = vmatprep.subr.bf16.mxu0 %v6361_v15  ;;  %s9842_s30 = scalar_lea.vmem (%p10722_p9), %s10154_s3, %s5400_s7 }
 0x332   : > { %4006 = vmatmul.mubr.bf16.gmra.mrb[76].mxu1 %v10685_v60  ;;  %v5482_v21 = vadd.f32 %v3524_v4, %v3203_v32  ;;  %v3526_v38 = vpop.f32.mrb[25].mxu0  ;;  %v10697_v4 = vld [vmem:[#allocation31_spill] sm:$0xff] }
 0x333   : > { %4015 = vmatprep.mubr.bf16.mxu1 %v10686_v63  ;;  %5429 = vmatpush1.bf16.msra.mxu1 %v6356_v24  ;;  %v5484_v35 = vadd.f32 %v3526_v38, %v3205_v62  ;;  %v3528_v5 = vpop.f32.mrb[26].mxu0 }
 0x334   : > { %5414 = vmatprep.subr.bf16.mxu1 %v6361_v15  ;;  %4629 = vst [vmem:[%s9306_s28 + $0x240] sm:$0xff] %v5482_v21  ;;  %v5486_v55 = vadd.f32 %v3528_v5, %v3207_v31  ;;  %v3530_v49 = vpop.f32.mrb[27].mxu0  ;;  %4423 = vmatpush1.bf16.msra.mxu0 %v6359_v46  ;;  %v3219_v15 = vadd.f32 %v10696_v10, %v9289_v58  ;;  %v10700_v21 = vld [vmem:[#allocation65_spill] sm:$0xff] }
 0x335   : > { %4630 = vst [vmem:[%s9306_s28 + $0x248] sm:$0xff] %v5484_v35  ;;  %v5488_v17 = vadd.f32 %v3530_v49, %v3209_v44  ;;  %4424 = vmatprep.subr.bf16.mxu0 %v6364_v47  ;;  %v3223_v31 = vadd.f32 %v10699_v52, %v9285_v37  ;;  %v3225_v38 = vadd.f32 %v10700_v21, %v9289_v58  ;;  %v10701_v44 = vld [vmem:[#allocation68_spill] sm:$0xff]  ;;  %v10709_v52 = vld [vmem:[#allocation42_spill] sm:$0xff]  ;;  %v10711_v21 = vld [vmem:[#allocation71_spill] sm:$0xff] }
 0x336   : > { %4635 = vst [vmem:[%s9306_s28 + $0x270] sm:$0xff] %v5486_v55  ;;  %v3227_v35 = vadd.f32 %v10701_v44, %v9285_v37  ;;  %v10702_v55 = vld [vmem:[#allocation67_spill] sm:$0xff] }
 0x337   : > { %5430 = vmatpush1.bf16.msra.mxu1 %v6359_v46  ;;  %4338 = vmatmul.mubr.bf16.gmra.mrb[80].mxu0 %v10662_v33  ;;  %4636 = vst [vmem:[%s9306_s28 + $0x278] sm:$0xff] %v5488_v17  ;;  %v10695_v33 = vld [vmem:[#allocation64_spill] sm:$0xff]  ;;  %v3229_v49 = vadd.f32 %v10702_v55, %v9289_v58 }
 0x338   : > { %4347 = vmatprep.mubr.bf16.mxu0 %v10663_v48  ;;  %4425 = vmatpush1.bf16.msra.mxu0 %v6362_v40  ;;  %v3217_v23 = vadd.f32 %v10695_v33, %v9285_v37 }
 0x339   : > { %5415 = vmatprep.subr.bf16.mxu1 %v6364_v47  ;;  %v3534_v8 = vpop.f32.mrb[28].mxu0  ;;  %4426 = vmatprep.subr.bf16.mxu0 %v6367_v61  ;;  %v10698_v47 = vld [vmem:[#allocation36_spill] sm:$0xff] }
 0x33a   : > { %4016 = vmatmul.mubr.bf16.gmra.mrb[80].mxu1 %v10691_v7  ;;  %v5490_v24 = vadd.f32 %v3534_v8, %v3213_v2  ;;  %v3536_v48 = vpop.f32.mrb[29].mxu0  ;;  %v10703_v2 = vld [vmem:[#allocation38_spill] sm:$0xff] }
 0x33b   : > { %4025 = vmatprep.mubr.bf16.mxu1 %v10692_v36  ;;  %5431 = vmatpush1.bf16.msra.mxu1 %v6362_v40  ;;  %v5492_v42 = vadd.f32 %v3536_v48, %v3215_v26  ;;  %v3538_v32 = vpop.f32.mrb[30].mxu0  ;;  %v3233_v26 = vadd.f32 %v10705_v12, %v9285_v37  ;;  %v10706_v8 = vld [vmem:[#allocation70_spill] sm:$0xff]  ;;  %v10715_v12 = vld [vmem:[#allocation41_spill] sm:$0xff] }
 0x33c   : > { %5416 = vmatprep.subr.bf16.mxu1 %v6367_v61  ;;  %4641 = vst [vmem:[%s9306_s28 + $0x2a0] sm:$0xff] %v5490_v24  ;;  %v5494_v46 = vadd.f32 %v3538_v32, %v3217_v23  ;;  %v3540_v16 = vpop.f32.mrb[31].mxu0  ;;  %4427 = vmatpush1.bf16.msra.mxu0 %v6365_v43  ;;  %v3235_v33 = vadd.f32 %v10706_v8, %v9289_v58  ;;  %v10707_v24 = vld [vmem:[#allocation72_spill] sm:$0xff]  ;;  %v10717_v8 = vld [vmem:[#allocation78_spill] sm:$0xff] }
 0x33d   : > { %4642 = vst [vmem:[%s9306_s28 + $0x2a8] sm:$0xff] %v5492_v42  ;;  %v5496_v62 = vadd.f32 %v3540_v16, %v3219_v15  ;;  %v3237_v48 = vadd.f32 %v10707_v24, %v9285_v37  ;;  %v10708_v15 = vld [vmem:[#allocation74_spill] sm:$0xff] }
 0x33e   : > { %4647 = vst [vmem:[%s9306_s28 + $0x2d0] sm:$0xff] %v5494_v46  ;;  %v3239_v42 = vadd.f32 %v10708_v15, %v9289_v58 }
 0x33f   : > { %5432 = vmatpush1.bf16.msra.mxu1 %v6365_v43  ;;  %4348 = vmatmul.mubr.bf16.gmra.mrb[84].mxu0 %v10664_v11  ;;  %4648 = vst [vmem:[%s9306_s28 + $0x2d8] sm:$0xff] %v5496_v62  ;;  %v10704_v43 = vld [vmem:[#allocation39_spill] sm:$0xff] }
 0x340   : > { %4357 = vmatprep.mubr.bf16.mxu0 %v10665_v14 }
 0x341   : > { %v3544_v34 = vpop.f32.mrb[32].mxu0 }
 0x342   : > { %4026 = vmatmul.mubr.bf16.gmra.mrb[84].mxu1 %v10697_v4  ;;  %v5498_v5 = vadd.f32 %v3544_v34, %v3223_v31  ;;  %v3546_v11 = vpop.f32.mrb[33].mxu0  ;;  %v10710_v31 = vld [vmem:[#allocation44_spill] sm:$0xff]  ;;  %v10712_v34 = vld [vmem:[#allocation73_spill] sm:$0xff] }
 0x343   : > { %4035 = vmatprep.mubr.bf16.mxu1 %v10698_v47  ;;  %v5500_v40 = vadd.f32 %v3546_v11, %v3225_v38  ;;  %v3548_v17 = vpop.f32.mrb[34].mxu0  ;;  %v3243_v38 = vadd.f32 %v10711_v21, %v9285_v37  ;;  %v3245_v44 = vadd.f32 %v10712_v34, %v9289_v58  ;;  %v10721_v21 = vld [vmem:[#allocation55_spill] sm:$0xff]  ;;  %v3265_v34 = vadd.f32 %v9281_v20, %v9289_v58 }
 0x344   : > { %4653 = vst [vmem:[%s9306_s28 + $0x300] sm:$0xff] %v5498_v5  ;;  %v5502_v14 = vadd.f32 %v3548_v17, %v3227_v35  ;;  %v3550_v61 = vpop.f32.mrb[35].mxu0  ;;  %v10713_v5 = vld [vmem:[#allocation76_spill] sm:$0xff] }
 0x345   : > { %4654 = vst [vmem:[%s9306_s28 + $0x308] sm:$0xff] %v5500_v40  ;;  %v5504_v39 = vadd.f32 %v3550_v61, %v3229_v49  ;;  %v3247_v11 = vadd.f32 %v10713_v5, %v9285_v37  ;;  %v10714_v49 = vld [vmem:[#allocation75_spill] sm:$0xff] }
 0x346   : > { %4659 = vst [vmem:[%s9306_s28 + $0x330] sm:$0xff] %v5502_v14  ;;  %v3249_v40 = vadd.f32 %v10714_v49, %v9289_v58 }
 0x347   : > { %4358 = vmatmul.mubr.bf16.gmra.mrb[88].mxu0 %v10666_v27  ;;  %4660 = vst [vmem:[%s9306_s28 + $0x338] sm:$0xff] %v5504_v39 }
 0x348   : > { %4367 = vmatprep.mubr.bf16.mxu0 %v10667_v59 }
 0x349   : > { %v3554_v23 = vpop.f32.mrb[36].mxu0 }
 0x34a   : > { %4036 = vmatmul.mubr.bf16.gmra.mrb[88].mxu1 %v10703_v2  ;;  %v5506_v10 = vadd.f32 %v3554_v23, %v3233_v26  ;;  %v3556_v27 = vpop.f32.mrb[37].mxu0  ;;  %v10716_v26 = vld [vmem:[#allocation52_spill] sm:$0xff] }
 0x34b   : > { %4045 = vmatprep.mubr.bf16.mxu1 %v10704_v43  ;;  %v5508_v32 = vadd.f32 %v3556_v27, %v3235_v33  ;;  %v3558_v46 = vpop.f32.mrb[38].mxu0  ;;  %v3253_v33 = vadd.f32 %v10717_v8, %v9285_v37  ;;  %v10718_v23 = vld [vmem:[#allocation80_spill] sm:$0xff] }
 0x34c   : > { %4665 = vst [vmem:[%s9306_s28 + $0x360] sm:$0xff] %v5506_v10  ;;  %v5510_v59 = vadd.f32 %v3558_v46, %v3237_v48  ;;  %v3560_v16 = vpop.f32.mrb[39].mxu0  ;;  %v3255_v24 = vadd.f32 %v10718_v23, %v9289_v58  ;;  %v10719_v10 = vld [vmem:[#allocation77_spill] sm:$0xff] }
 0x34d   : > { %4666 = vst [vmem:[%s9306_s28 + $0x368] sm:$0xff] %v5508_v32  ;;  %v5512_v62 = vadd.f32 %v3560_v16, %v3239_v42  ;;  %v3257_v27 = vadd.f32 %v10719_v10, %v9285_v37  ;;  %v10720_v42 = vld [vmem:[#allocation79_spill] sm:$0xff] }
 0x34e   : > { %4671 = vst [vmem:[%s9306_s28 + $0x390] sm:$0xff] %v5510_v59  ;;  %v3259_v32 = vadd.f32 %v10720_v42, %v9289_v58 }
 0x34f   : > { %4368 = vmatmul.mubr.bf16.gmra.mrb[92].mxu0 %v10668_v51  ;;  %4672 = vst [vmem:[%s9306_s28 + $0x398] sm:$0xff] %v5512_v62 }
 0x350   : > { %4377 = vmatprep.mubr.bf16.mxu0 %v8893_v53 }
 0x351   : > { %v3564_v35 = vpop.f32.mrb[40].mxu0 }
 0x352   : > { %4046 = vmatmul.mubr.bf16.gmra.mrb[92].mxu1 %v10709_v52  ;;  %v5514_v55 = vadd.f32 %v3564_v35, %v3243_v38  ;;  %v3566_v51 = vpop.f32.mrb[41].mxu0  ;;  %v3263_v38 = vadd.f32 %v9279_v3, %v9285_v37 }
 0x353   : > { %4055 = vmatprep.mubr.bf16.mxu1 %v10710_v31  ;;  %v5516_v17 = vadd.f32 %v3566_v51, %v3245_v44  ;;  %v3568_v14 = vpop.f32.mrb[42].mxu0 }
 0x354   : > { %4677 = vst [vmem:[%s9306_s28 + $0x3c0] sm:$0xff] %v5514_v55  ;;  %v5518_v53 = vadd.f32 %v3568_v14, %v3247_v11  ;;  %v3570_v61 = vpop.f32.mrb[43].mxu0 }
 0x355   : > { %4678 = vst [vmem:[%s9306_s28 + $0x3c8] sm:$0xff] %v5516_v17  ;;  %v5520_v39 = vadd.f32 %v3570_v61, %v3249_v40 }
 0x356   : > { %4683 = vst [vmem:[%s9306_s28 + $0x3f0] sm:$0xff] %v5518_v53 }
 0x357   : > { %4378 = vmatmul.mubr.bf16.gmra.mrb[96].mxu0 %v8897_v18  ;;  %4684 = vst [vmem:[%s9306_s28 + $0x3f8] sm:$0xff] %v5520_v39 }
 0x358   : > { %4387 = vmatprep.mubr.bf16.mxu0 %v8919_v54 }
 0x359   : > { %v3574_v48 = vpop.f32.mrb[44].mxu0 }
 0x35a   : > { %4056 = vmatmul.mubr.bf16.gmra.mrb[96].mxu1 %v10715_v12  ;;  %v5522_v15 = vadd.f32 %v3574_v48, %v3253_v33  ;;  %v3576_v18 = vpop.f32.mrb[45].mxu0 }
 0x35b   : > { %4065 = vmatprep.mubr.bf16.mxu1 %v10716_v26  ;;  %v5524_v46 = vadd.f32 %v3576_v18, %v3255_v24  ;;  %v3578_v59 = vpop.f32.mrb[46].mxu0 }
 0x35c   : > { %4689 = vst [vmem:[%s9306_s28 + $0x420] sm:$0xff] %v5522_v15  ;;  %v5526_v54 = vadd.f32 %v3578_v59, %v3257_v27  ;;  %v3580_v16 = vpop.f32.mrb[47].mxu0 }
 0x35d   : > { %4690 = vst [vmem:[%s9306_s28 + $0x428] sm:$0xff] %v5524_v46  ;;  %v5528_v62 = vadd.f32 %v3580_v16, %v3259_v32 }
 0x35e   : > { %4695 = vst [vmem:[%s9306_s28 + $0x450] sm:$0xff] %v5526_v54 }
 0x35f   : > { %4388 = vmatmul.mubr.bf16.gmra.mrb[100].mxu0 %v8923_v50  ;;  %4696 = vst [vmem:[%s9306_s28 + $0x458] sm:$0xff] %v5528_v62 }
 0x360   : > { %4428 = vmatprep.mubr.bf16.mxu0 %v8531_v13  ;;  %v1648_v13 = vsub.s32 2, %v9263_v57 }
 0x361   : > { %v3584_v44 = vpop.f32.mrb[48].mxu0 }
 0x362   : > { %4066 = vmatmul.mubr.bf16.gmra.mrb[100].mxu1 %v10721_v21  ;;  %v5530_v35 = vadd.f32 %v3584_v44, %v3263_v38  ;;  %v3586_v5 = vpop.f32.mrb[49].mxu0 }
 0x363   : > { %4498 = vmatprep.mubr.bf16.mxu1 %v10686_v63  ;;  %v5532_v11 = vadd.f32 %v3586_v5, %v3265_v34  ;;  %v3588_v55 = vpop.f32.mrb[50].mxu0 }
 0x364   : > { %4701 = vst [vmem:[%s9306_s28 + $0x480] sm:$0xf] %v5530_v35  ;;  %v3589_v51 = vpop.f32.mrb[51].mxu0 }
 0x365   : > { %4702 = vst [vmem:[%s9306_s28 + $0x488] sm:$0xf] %v5532_v11 }
 0x367   : > { %4429 = vmatmul.mubr.bf16.vlgmr.msra.gmra.mrb[52].mxu0 %v8533_v19  ;;  %v1652_v19 = vsub.s32 3, %v9263_v57 }
 0x368   : > { %4438 = vmatprep.mubr.bf16.mxu0 %v8567_v56  ;;  %v9552_v56 = vrot.slane %v9276_v6, %v1648_v13 }
 0x36a   : > { %4499 = vmatmul.mubr.bf16.vlgmr.msra.gmra.mrb[104].mxu1 %v10691_v7 }
 0x36b   : > { %4508 = vmatprep.mubr.bf16.mxu1 %v10692_v36 }
 0x36f   : > { %4439 = vmatmul.mubr.bf16.gmra.mrb[56].mxu0 %v8571_v29  ;;  %v9555_v29 = vrot.slane %v9276_v6, %v1652_v19 }
 0x370   : > { %4448 = vmatprep.mubr.bf16.mxu0 %v8605_v9 }
 0x372   : > { %4509 = vmatmul.mubr.bf16.gmra.mrb[108].mxu1 %v10697_v4 }
 0x373   : > { %4518 = vmatprep.mubr.bf16.mxu1 %v10698_v47 }
 0x377   : > { %4449 = vmatmul.mubr.bf16.gmra.mrb[60].mxu0 %v8614_v41 }
 0x378   : > { %4458 = vmatprep.mubr.bf16.mxu0 %v8641_v45 }
 0x37a   : > { %4519 = vmatmul.mubr.bf16.gmra.mrb[112].mxu1 %v10703_v2 }
 0x37b   : > { %4528 = vmatprep.mubr.bf16.mxu1 %v10704_v43 }
 0x37f   : > { %4459 = vmatmul.mubr.bf16.gmra.mrb[64].mxu0 %v8643_v30 }
 0x380   : > { %4468 = vmatprep.mubr.bf16.mxu0 %v10669_v22 }
 0x382   : > { %4529 = vmatmul.mubr.bf16.gmra.mrb[116].mxu1 %v10709_v52 }
 0x383   : > { %4538 = vmatprep.mubr.bf16.mxu1 %v10710_v31 }
 0x387   : > { %4469 = vmatmul.mubr.bf16.gmra.mrb[68].mxu0 %v10673_v28 }
 0x388   : > { %4478 = vmatprep.mubr.bf16.mxu0 %v10674_v25 }
 0x38a   : > { %4539 = vmatmul.mubr.bf16.gmra.mrb[120].mxu1 %v10715_v12 }
 0x38b   : > { %4548 = vmatprep.mubr.bf16.mxu1 %v10716_v26 }
 0x38f   : > { %4479 = vmatmul.mubr.bf16.gmra.mrb[72].mxu0 %v10679_v1 }
 0x390   : > { %4488 = vmatprep.mubr.bf16.mxu0 %v10680_v0 }
 0x392   : > { %4549 = vmatmul.mubr.bf16.gmra.mrb[124].mxu1 %v10721_v21 }
 0x397   : > { %4489 = vmatmul.mubr.bf16.gmra.mrb[76].mxu0 %v10685_v60 }
 0x3d5   : > { %v3947_v9 = vpop.f32.mrb[52].mxu1 }
 0x3d6   : > { %v5533_v41 = vadd.f32 %v3947_v9, %v9552_v56  ;;  %v3949_v45 = vpop.f32.mrb[53].mxu1 }
 0x3d7   : > { %v5534_v30 = vadd.f32 %v3949_v45, %v9555_v29  ;;  %v3951_v50 = vpop.f32.mrb[54].mxu1 }
 0x3d8   : > { %4559 = vst [vmem:[%s9306_s28 + $0x10] sm:$0xff] %v5533_v41  ;;  %v5535_v3 = vadd.f32 %v3951_v50, %v9552_v56  ;;  %v3953_v20 = vpop.f32.mrb[55].mxu1 }
 0x3d9   : > { %4560 = vst [vmem:[%s9306_s28 + $0x18] sm:$0xff] %v5534_v30  ;;  %v5536_v37 = vadd.f32 %v3953_v20, %v9555_v29 }
 0x3da   : > { %4565 = vst [vmem:[%s9306_s28 + $0x40] sm:$0xff] %v5535_v3 }
 0x3db   : > { %4566 = vst [vmem:[%s9306_s28 + $0x48] sm:$0xff] %v5536_v37 }
 0x3dd   : > { %v3957_v6 = vpop.f32.mrb[56].mxu1 }
 0x3de   : > { %v5537_v58 = vadd.f32 %v3957_v6, %v9552_v56  ;;  %v3959_v22 = vpop.f32.mrb[57].mxu1 }
 0x3df   : > { %v5538_v28 = vadd.f32 %v3959_v22, %v9555_v29  ;;  %v3961_v25 = vpop.f32.mrb[58].mxu1 }
 0x3e0   : > { %4571 = vst [vmem:[%s9306_s28 + $0x70] sm:$0xff] %v5537_v58  ;;  %v5539_v1 = vadd.f32 %v3961_v25, %v9552_v56  ;;  %v3963_v0 = vpop.f32.mrb[59].mxu1 }
 0x3e1   : > { %4572 = vst [vmem:[%s9306_s28 + $0x78] sm:$0xff] %v5538_v28  ;;  %v5540_v60 = vadd.f32 %v3963_v0, %v9555_v29 }
 0x3e2   : > { %4577 = vst [vmem:[%s9306_s28 + $0xa0] sm:$0xff] %v5539_v1 }
 0x3e3   : > { %4578 = vst [vmem:[%s9306_s28 + $0xa8] sm:$0xff] %v5540_v60 }
 0x3e5   : > { %v3967_v63 = vpop.f32.mrb[60].mxu1 }
 0x3e6   : > { %v5541_v7 = vadd.f32 %v3967_v63, %v9552_v56  ;;  %v3969_v36 = vpop.f32.mrb[61].mxu1 }
 0x3e7   : > { %v5542_v4 = vadd.f32 %v3969_v36, %v9555_v29  ;;  %v3971_v47 = vpop.f32.mrb[62].mxu1 }
 0x3e8   : > { %4583 = vst [vmem:[%s9306_s28 + $0xd0] sm:$0xff] %v5541_v7  ;;  %v5543_v2 = vadd.f32 %v3971_v47, %v9552_v56  ;;  %v3973_v43 = vpop.f32.mrb[63].mxu1 }
 0x3e9   : > { %4584 = vst [vmem:[%s9306_s28 + $0xd8] sm:$0xff] %v5542_v4  ;;  %v5544_v52 = vadd.f32 %v3973_v43, %v9555_v29 }
 0x3ea   : > { %4589 = vst [vmem:[%s9306_s28 + $0x100] sm:$0xff] %v5543_v2 }
 0x3eb   : > { %4590 = vst [vmem:[%s9306_s28 + $0x108] sm:$0xff] %v5544_v52 }
 0x3ed   : > { %v3977_v31 = vpop.f32.mrb[64].mxu1 }
 0x3ee   : > { %v5545_v49 = vadd.f32 %v3977_v31, %v9552_v56  ;;  %v3979_v40 = vpop.f32.mrb[65].mxu1 }
 0x3ef   : > { %v5546_v17 = vadd.f32 %v3979_v40, %v9555_v29  ;;  %v3981_v14 = vpop.f32.mrb[66].mxu1 }
 0x3f0   : > { %4595 = vst [vmem:[%s9306_s28 + $0x130] sm:$0xff] %v5545_v49  ;;  %v5547_v53 = vadd.f32 %v3981_v14, %v9552_v56  ;;  %v3983_v61 = vpop.f32.mrb[67].mxu1 }
 0x3f1   : > { %4596 = vst [vmem:[%s9306_s28 + $0x138] sm:$0xff] %v5546_v17  ;;  %v5548_v39 = vadd.f32 %v3983_v61, %v9555_v29 }
 0x3f2   : > { %4601 = vst [vmem:[%s9306_s28 + $0x160] sm:$0xff] %v5547_v53 }
 0x3f3   : > { %4602 = vst [vmem:[%s9306_s28 + $0x168] sm:$0xff] %v5548_v39 }
 0x3f5   : > { %v3987_v12 = vpop.f32.mrb[68].mxu1 }
 0x3f6   : > { %v5549_v26 = vadd.f32 %v3987_v12, %v9552_v56  ;;  %v3989_v8 = vpop.f32.mrb[69].mxu1 }
 0x3f7   : > { %v5550_v33 = vadd.f32 %v3989_v8, %v9555_v29  ;;  %v3991_v23 = vpop.f32.mrb[70].mxu1 }
 0x3f8   : > { %4607 = vst [vmem:[%s9306_s28 + $0x190] sm:$0xff] %v5549_v26  ;;  %v5551_v24 = vadd.f32 %v3991_v23, %v9552_v56  ;;  %v3993_v48 = vpop.f32.mrb[71].mxu1 }
 0x3f9   : > { %4608 = vst [vmem:[%s9306_s28 + $0x198] sm:$0xff] %v5550_v33  ;;  %v5552_v10 = vadd.f32 %v3993_v48, %v9555_v29 }
 0x3fa   : > { %4613 = vst [vmem:[%s9306_s28 + $0x1c0] sm:$0xff] %v5551_v24 }
 0x3fb   : > { %4614 = vst [vmem:[%s9306_s28 + $0x1c8] sm:$0xff] %v5552_v10 }
 0x3fd   : > { %v3997_v27 = vpop.f32.mrb[72].mxu1 }
 0x3fe   : > { %v5553_v15 = vadd.f32 %v3997_v27, %v9552_v56  ;;  %v3999_v18 = vpop.f32.mrb[73].mxu1 }
 0x3ff   : > { %v5554_v42 = vadd.f32 %v3999_v18, %v9555_v29  ;;  %v4001_v32 = vpop.f32.mrb[74].mxu1 }
 0x400   : > { %4619 = vst [vmem:[%s9306_s28 + $0x1f0] sm:$0xff] %v5553_v15  ;;  %v5555_v46 = vadd.f32 %v4001_v32, %v9552_v56  ;;  %v4003_v59 = vpop.f32.mrb[75].mxu1 }
 0x401   : > { %4620 = vst [vmem:[%s9306_s28 + $0x1f8] sm:$0xff] %v5554_v42  ;;  %v5556_v54 = vadd.f32 %v4003_v59, %v9555_v29 }
 0x402   : > { %4625 = vst [vmem:[%s9306_s28 + $0x220] sm:$0xff] %v5555_v46 }
 0x403   : > { %4626 = vst [vmem:[%s9306_s28 + $0x228] sm:$0xff] %v5556_v54 }
 0x405   : > { %v4007_v16 = vpop.f32.mrb[76].mxu1 }
 0x406   : > { %v5557_v62 = vadd.f32 %v4007_v16, %v9552_v56  ;;  %v4009_v21 = vpop.f32.mrb[77].mxu1 }
 0x407   : > { %v5558_v38 = vadd.f32 %v4009_v21, %v9555_v29  ;;  %v4011_v34 = vpop.f32.mrb[78].mxu1 }
 0x408   : > { %4631 = vst [vmem:[%s9306_s28 + $0x250] sm:$0xff] %v5557_v62  ;;  %v5559_v44 = vadd.f32 %v4011_v34, %v9552_v56  ;;  %v4013_v35 = vpop.f32.mrb[79].mxu1 }
 0x409   : > { %4632 = vst [vmem:[%s9306_s28 + $0x258] sm:$0xff] %v5558_v38  ;;  %v5560_v5 = vadd.f32 %v4013_v35, %v9555_v29 }
 0x40a   : > { %4637 = vst [vmem:[%s9306_s28 + $0x280] sm:$0xff] %v5559_v44  ;;  %v9613_v55 = vpop.f32.mrb[80].mxu0 }
 0x40b   : > { %4638 = vst [vmem:[%s9306_s28 + $0x288] sm:$0xff] %v5560_v5  ;;  %v9616_v19 = vpop.f32.mrb[81].mxu0  ;;  %v1656_v5 = vsub.s32 4, %v9263_v57 }
 0x40c   : > { %v9619_v45 = vpop.f32.mrb[82].mxu0 }
 0x40d   : > { %v4017_v11 = vpop.f32.mrb[80].mxu1  ;;  %v9623_v3 = vpop.f32.mrb[83].mxu0 }
 0x40e   : > { %v5561_v51 = vadd.f32 %v4017_v11, %v9552_v56  ;;  %v4019_v13 = vpop.f32.mrb[81].mxu1  ;;  %v1660_v11 = vsub.s32 5, %v9263_v57 }
 0x40f   : > { %v5562_v9 = vadd.f32 %v4019_v13, %v9555_v29  ;;  %v4021_v41 = vpop.f32.mrb[82].mxu1 }
 0x410   : > { %4643 = vst [vmem:[%s9306_s28 + $0x2b0] sm:$0xff] %v5561_v51  ;;  %v5563_v30 = vadd.f32 %v4021_v41, %v9552_v56  ;;  %v4023_v50 = vpop.f32.mrb[83].mxu1 }
 0x411   : > { %4644 = vst [vmem:[%s9306_s28 + $0x2b8] sm:$0xff] %v5562_v9  ;;  %v5564_v20 = vadd.f32 %v4023_v50, %v9555_v29 }
 0x412   : > { %4649 = vst [vmem:[%s9306_s28 + $0x2e0] sm:$0xff] %v5563_v30  ;;  %v9629_v6 = vpop.f32.mrb[84].mxu0 }
 0x413   : > { %4650 = vst [vmem:[%s9306_s28 + $0x2e8] sm:$0xff] %v5564_v20  ;;  %v9632_v28 = vpop.f32.mrb[85].mxu0 }
 0x414   : > { %v9635_v0 = vpop.f32.mrb[86].mxu0 }
 0x415   : > { %v4027_v37 = vpop.f32.mrb[84].mxu1  ;;  %v9639_v7 = vpop.f32.mrb[87].mxu0 }
 0x416   : > { %v5565_v58 = vadd.f32 %v4027_v37, %v9552_v56  ;;  %v4029_v22 = vpop.f32.mrb[85].mxu1 }
 0x417   : > { %v5566_v25 = vadd.f32 %v4029_v22, %v9555_v29  ;;  %v4031_v1 = vpop.f32.mrb[86].mxu1 }
 0x418   : > { %4655 = vst [vmem:[%s9306_s28 + $0x310] sm:$0xff] %v5565_v58  ;;  %v5567_v60 = vadd.f32 %v4031_v1, %v9552_v56  ;;  %v4033_v63 = vpop.f32.mrb[87].mxu1  ;;  %v6568_v58 = vld [vmem:[%s9268_s24] sm:$0x3f] }
 0x419   : > { %4656 = vst [vmem:[%s9306_s28 + $0x318] sm:$0xff] %v5566_v25  ;;  %v5568_v36 = vadd.f32 %v4033_v63, %v9555_v29  ;;  %v9702_v22 = vrot.slane %v6568_v58, %v1656_v5 }
 0x41a   : > { %4661 = vst [vmem:[%s9306_s28 + $0x340] sm:$0xff] %v5567_v60  ;;  %v9645_v47 = vpop.f32.mrb[88].mxu0  ;;  %v9705_v60 = vrot.slane %v6568_v58, %v1660_v11 }
 0x41b   : > { %4662 = vst [vmem:[%s9306_s28 + $0x348] sm:$0xff] %v5568_v36  ;;  %v9648_v52 = vpop.f32.mrb[89].mxu0  ;;  %v5611_v57 = vadd.f32 %v9613_v55, %v9702_v22  ;;  %v5615_v36 = vadd.f32 %v9619_v45, %v9702_v22 }
 0x41c   : > { %v9651_v40 = vpop.f32.mrb[90].mxu0 }
 0x41d   : > { %v4037_v4 = vpop.f32.mrb[88].mxu1  ;;  %v9655_v53 = vpop.f32.mrb[91].mxu0 }
 0x41e   : > { %v5569_v2 = vadd.f32 %v4037_v4, %v9552_v56  ;;  %v4039_v43 = vpop.f32.mrb[89].mxu1 }
 0x41f   : > { %v5570_v31 = vadd.f32 %v4039_v43, %v9555_v29  ;;  %v4041_v49 = vpop.f32.mrb[90].mxu1 }
 0x420   : > { %4667 = vst [vmem:[%s9306_s28 + $0x370] sm:$0xff] %v5569_v2  ;;  %v5571_v17 = vadd.f32 %v4041_v49, %v9552_v56  ;;  %v4043_v14 = vpop.f32.mrb[91].mxu1  ;;  %v5617_v49 = vadd.f32 %v9623_v3, %v9705_v60 }
 0x421   : > { %4668 = vst [vmem:[%s9306_s28 + $0x378] sm:$0xff] %v5570_v31  ;;  %v5572_v61 = vadd.f32 %v4043_v14, %v9555_v29 }
 0x422   : > { %4673 = vst [vmem:[%s9306_s28 + $0x3a0] sm:$0xff] %v5571_v17  ;;  %v9661_v12 = vpop.f32.mrb[92].mxu0 }
 0x423   : > { %4674 = vst [vmem:[%s9306_s28 + $0x3a8] sm:$0xff] %v5572_v61  ;;  %v9664_v33 = vpop.f32.mrb[93].mxu0 }
 0x424   : > { %v9667_v48 = vpop.f32.mrb[94].mxu0 }
 0x425   : > { %v4047_v39 = vpop.f32.mrb[92].mxu1  ;;  %v9671_v15 = vpop.f32.mrb[95].mxu0 }
 0x426   : > { %v5573_v26 = vadd.f32 %v4047_v39, %v9552_v56  ;;  %v4049_v8 = vpop.f32.mrb[93].mxu1 }
 0x427   : > { %v5574_v23 = vadd.f32 %v4049_v8, %v9555_v29  ;;  %v4051_v24 = vpop.f32.mrb[94].mxu1 }
 0x428   : > { %4679 = vst [vmem:[%s9306_s28 + $0x3d0] sm:$0xff] %v5573_v26  ;;  %v5575_v10 = vadd.f32 %v4051_v24, %v9552_v56  ;;  %v4053_v27 = vpop.f32.mrb[95].mxu1  ;;  %v5621_v24 = vadd.f32 %v9632_v28, %v9705_v60 }
 0x429   : > { %4680 = vst [vmem:[%s9306_s28 + $0x3d8] sm:$0xff] %v5574_v23  ;;  %v5576_v18 = vadd.f32 %v4053_v27, %v9555_v29  ;;  %v5619_v23 = vadd.f32 %v9629_v6, %v9702_v22 }
 0x42a   : > { %4685 = vst [vmem:[%s9306_s28 + $0x400] sm:$0xff] %v5575_v10  ;;  %v9677_v32 = vpop.f32.mrb[96].mxu0 }
 0x42b   : > { %4686 = vst [vmem:[%s9306_s28 + $0x408] sm:$0xff] %v5576_v18  ;;  %v9680_v54 = vpop.f32.mrb[97].mxu0  ;;  %v5623_v18 = vadd.f32 %v9635_v0, %v9702_v22 }
 0x42c   : > { %v9683_v21 = vpop.f32.mrb[98].mxu0 }
 0x42d   : > { %v4057_v42 = vpop.f32.mrb[96].mxu1  ;;  %v9687_v44 = vpop.f32.mrb[99].mxu0 }
 0x42e   : > { %v5577_v46 = vadd.f32 %v4057_v42, %v9552_v56  ;;  %v4059_v59 = vpop.f32.mrb[97].mxu1 }
 0x42f   : > { %v5578_v16 = vadd.f32 %v4059_v59, %v9555_v29  ;;  %v4061_v62 = vpop.f32.mrb[98].mxu1 }
 0x430   : > { %4691 = vst [vmem:[%s9306_s28 + $0x430] sm:$0xff] %v5577_v46  ;;  %v5579_v38 = vadd.f32 %v4061_v62, %v9552_v56  ;;  %v4063_v34 = vpop.f32.mrb[99].mxu1  ;;  %v5625_v62 = vadd.f32 %v9639_v7, %v9705_v60 }
 0x431   : > { %4692 = vst [vmem:[%s9306_s28 + $0x438] sm:$0xff] %v5578_v16  ;;  %v5580_v35 = vadd.f32 %v4063_v34, %v9555_v29 }
 0x432   : > { %4697 = vst [vmem:[%s9306_s28 + $0x460] sm:$0xff] %v5579_v38  ;;  %v9695_v13 = vpop.f32.mrb[100].mxu0 }
 0x433   : > { %4698 = vst [vmem:[%s9306_s28 + $0x468] sm:$0xff] %v5580_v35  ;;  %v9698_v30 = vpop.f32.mrb[101].mxu0 }
 0x434   : > { %v4393_v37 = vpop.f32.mrb[102].mxu0 }
 0x435   : > { %v4067_v51 = vpop.f32.mrb[100].mxu1  ;;  %v4394_v1 = vpop.f32.mrb[103].mxu0  ;;  %v5631_v37 = vadd.f32 %v9651_v40, %v9702_v22 }
 0x436   : > { %v5581_v9 = vadd.f32 %v4067_v51, %v9552_v56  ;;  %v4069_v41 = vpop.f32.mrb[101].mxu1  ;;  %v5613_v56 = vadd.f32 %v9616_v19, %v9705_v60 }
 0x437   : > { %v5582_v50 = vadd.f32 %v4069_v41, %v9555_v29  ;;  %v4071_v20 = vpop.f32.mrb[102].mxu1  ;;  %v5629_v41 = vadd.f32 %v9648_v52, %v9705_v60 }
 0x438   : > { %4703 = vst [vmem:[%s9306_s28 + $0x490] sm:$0xf] %v5581_v9  ;;  %v4072_v25 = vpop.f32.mrb[103].mxu1  ;;  %v5627_v9 = vadd.f32 %v9645_v47, %v9702_v22 }
 0x439   : > { %4704 = vst [vmem:[%s9306_s28 + $0x498] sm:$0xf] %v5582_v50 }
 0x43a   : > { %v4430_v29 = vpop.f32.mrb[52].mxu0 }
 0x43b   : > { %v5583_v4 = vadd.f32 %v4430_v29, %v9702_v22  ;;  %v4432_v43 = vpop.f32.mrb[53].mxu0 }
 0x43c   : > { %v5584_v55 = vadd.f32 %v4432_v43, %v9705_v60  ;;  %v4434_v17 = vpop.f32.mrb[54].mxu0 }
 0x43d   : > { %v4500_v63 = vpop.f32.mrb[104].mxu1  ;;  %4561 = vst [vmem:[%s9306_s28 + $0x20] sm:$0xff] %v5583_v4  ;;  %v5585_v45 = vadd.f32 %v4434_v17, %v9702_v22  ;;  %v4436_v39 = vpop.f32.mrb[55].mxu0  ;;  %v5639_v17 = vadd.f32 %v9667_v48, %v9702_v22 }
 0x43e   : > { %v5612_v2 = vadd.f32 %v5611_v57, %v4500_v63  ;;  %v4502_v31 = vpop.f32.mrb[105].mxu1  ;;  %4562 = vst [vmem:[%s9306_s28 + $0x28] sm:$0xff] %v5584_v55  ;;  %v5586_v8 = vadd.f32 %v4436_v39, %v9705_v60 }
 0x43f   : > { %v5614_v19 = vadd.f32 %v5613_v56, %v4502_v31  ;;  %v4504_v14 = vpop.f32.mrb[106].mxu1  ;;  %4567 = vst [vmem:[%s9306_s28 + $0x50] sm:$0xff] %v5585_v45  ;;  %v5633_v56 = vadd.f32 %v9655_v53, %v9705_v60  ;;  %v5635_v31 = vadd.f32 %v9661_v12, %v9702_v22 }
 0x440   : > { %4645 = vst [vmem:[%s9306_s28 + $0x2c0] sm:$0xff] %v5612_v2  ;;  %v5616_v61 = vadd.f32 %v5615_v36, %v4504_v14  ;;  %v4506_v26 = vpop.f32.mrb[107].mxu1  ;;  %4568 = vst [vmem:[%s9306_s28 + $0x58] sm:$0xff] %v5586_v8 }
 0x441   : > { %4646 = vst [vmem:[%s9306_s28 + $0x2c8] sm:$0xff] %v5614_v19  ;;  %v5618_v3 = vadd.f32 %v5617_v49, %v4506_v26  ;;  %v5637_v49 = vadd.f32 %v9664_v33, %v9705_v60  ;;  %v5641_v26 = vadd.f32 %v9671_v15, %v9705_v60 }
 0x442   : > { %4651 = vst [vmem:[%s9306_s28 + $0x2f0] sm:$0xff] %v5616_v61  ;;  %v4440_v10 = vpop.f32.mrb[56].mxu0 }
 0x443   : > { %4652 = vst [vmem:[%s9306_s28 + $0x2f8] sm:$0xff] %v5618_v3  ;;  %v5587_v42 = vadd.f32 %v4440_v10, %v9702_v22  ;;  %v4442_v59 = vpop.f32.mrb[57].mxu0 }
 0x444   : > { %v5588_v6 = vadd.f32 %v4442_v59, %v9705_v60  ;;  %v4444_v38 = vpop.f32.mrb[58].mxu0 }
 0x445   : > { %v4510_v27 = vpop.f32.mrb[108].mxu1  ;;  %4573 = vst [vmem:[%s9306_s28 + $0x80] sm:$0xff] %v5587_v42  ;;  %v5589_v0 = vadd.f32 %v4444_v38, %v9702_v22  ;;  %v4446_v5 = vpop.f32.mrb[59].mxu0  ;;  %v5645_v42 = vadd.f32 %v9680_v54, %v9705_v60 }
 0x446   : > { %v5620_v46 = vadd.f32 %v5619_v23, %v4510_v27  ;;  %v4512_v16 = vpop.f32.mrb[109].mxu1  ;;  %4574 = vst [vmem:[%s9306_s28 + $0x88] sm:$0xff] %v5588_v6  ;;  %v5590_v51 = vadd.f32 %v4446_v5, %v9705_v60 }
 0x447   : > { %v5622_v28 = vadd.f32 %v5621_v24, %v4512_v16  ;;  %v4514_v34 = vpop.f32.mrb[110].mxu1  ;;  %4579 = vst [vmem:[%s9306_s28 + $0xb0] sm:$0xff] %v5589_v0  ;;  %v5647_v16 = vadd.f32 %v9683_v21, %v9702_v22 }
 0x448   : > { %4657 = vst [vmem:[%s9306_s28 + $0x320] sm:$0xff] %v5620_v46  ;;  %v5624_v35 = vadd.f32 %v5623_v18, %v4514_v34  ;;  %v4516_v11 = vpop.f32.mrb[111].mxu1  ;;  %4580 = vst [vmem:[%s9306_s28 + $0xb8] sm:$0xff] %v5590_v51  ;;  %v5643_v18 = vadd.f32 %v9677_v32, %v9702_v22  ;;  %v5649_v34 = vadd.f32 %v9687_v44, %v9705_v60 }
 0x449   : > { %4658 = vst [vmem:[%s9306_s28 + $0x328] sm:$0xff] %v5622_v28  ;;  %v5626_v7 = vadd.f32 %v5625_v62, %v4516_v11 }
 0x44a   : > { %4663 = vst [vmem:[%s9306_s28 + $0x350] sm:$0xff] %v5624_v35  ;;  %v4450_v50 = vpop.f32.mrb[60].mxu0 }
 0x44b   : > { %4664 = vst [vmem:[%s9306_s28 + $0x358] sm:$0xff] %v5626_v7  ;;  %v5591_v58 = vadd.f32 %v4450_v50, %v9702_v22  ;;  %v4452_v1 = vpop.f32.mrb[61].mxu0 }
 0x44c   : > { %v5592_v47 = vadd.f32 %v4452_v1, %v9705_v60  ;;  %v4454_v29 = vpop.f32.mrb[62].mxu0 }
 0x44d   : > { %v4520_v20 = vpop.f32.mrb[112].mxu1  ;;  %4585 = vst [vmem:[%s9306_s28 + $0xe0] sm:$0xff] %v5591_v58  ;;  %v5593_v40 = vadd.f32 %v4454_v29, %v9702_v22  ;;  %v4456_v4 = vpop.f32.mrb[63].mxu0 }
 0x44e   : > { %v5628_v25 = vadd.f32 %v5627_v9, %v4520_v20  ;;  %v4522_v57 = vpop.f32.mrb[113].mxu1  ;;  %4586 = vst [vmem:[%s9306_s28 + $0xe8] sm:$0xff] %v5592_v47  ;;  %v5594_v43 = vadd.f32 %v4456_v4, %v9705_v60  ;;  %v5651_v9 = vadd.f32 %v9695_v13, %v9702_v22 }
 0x44f   : > { %v5630_v52 = vadd.f32 %v5629_v41, %v4522_v57  ;;  %v4524_v63 = vpop.f32.mrb[114].mxu1  ;;  %4591 = vst [vmem:[%s9306_s28 + $0x110] sm:$0xff] %v5593_v40  ;;  %v5653_v41 = vadd.f32 %v9698_v30, %v9705_v60 }
 0x450   : > { %4669 = vst [vmem:[%s9306_s28 + $0x380] sm:$0xff] %v5628_v25  ;;  %v5632_v36 = vadd.f32 %v5631_v37, %v4524_v63  ;;  %v4526_v2 = vpop.f32.mrb[115].mxu1  ;;  %4592 = vst [vmem:[%s9306_s28 + $0x118] sm:$0xff] %v5594_v43 }
 0x451   : > { %4670 = vst [vmem:[%s9306_s28 + $0x388] sm:$0xff] %v5630_v52  ;;  %v5634_v53 = vadd.f32 %v5633_v56, %v4526_v2 }
 0x452   : > { %4675 = vst [vmem:[%s9306_s28 + $0x3b0] sm:$0xff] %v5632_v36  ;;  %v4460_v55 = vpop.f32.mrb[64].mxu0 }
 0x453   : > { %4676 = vst [vmem:[%s9306_s28 + $0x3b8] sm:$0xff] %v5634_v53  ;;  %v5595_v14 = vadd.f32 %v4460_v55, %v9702_v22  ;;  %v4462_v61 = vpop.f32.mrb[65].mxu0  ;;  %v4731_v55 = vld [vmem:[%s9306_s28 + $0x8] sm:$0xff] (%p10722_p9) }
 0x454   : > { %v5596_v12 = vadd.f32 %v4462_v61, %v9705_v60  ;;  %v4464_v8 = vpop.f32.mrb[66].mxu0  ;;  %v4743_v61 = vld [vmem:[%s9306_s28 + $0x38] sm:$0xff] (%p10722_p9)  ;;  %4732 = vst [vmem:[%s9842_s30 + $0x8] sm:$0xff] (%p10722_p9), %v4731_v55 }
 0x455   : > { %v4530_v19 = vpop.f32.mrb[116].mxu1  ;;  %4597 = vst [vmem:[%s9306_s28 + $0x140] sm:$0xff] %v5595_v14  ;;  %v5597_v48 = vadd.f32 %v4464_v8, %v9702_v22  ;;  %v4466_v24 = vpop.f32.mrb[67].mxu0  ;;  %v4739_v14 = vld [vmem:[%s9306_s28 + $0x28] sm:$0xff] (%p10722_p9)  ;;  %4744 = vst [vmem:[%s9842_s30 + $0xc8] sm:$0xff] (%p10722_p9), %v4743_v61  ;;  %v4753_v8 = vld [vmem:[%s9306_s28 + $0x60] sm:$0xff] (%p10722_p9) }
 0x456   : > { %v5636_v45 = vadd.f32 %v5635_v31, %v4530_v19  ;;  %v4532_v39 = vpop.f32.mrb[117].mxu1  ;;  %4598 = vst [vmem:[%s9306_s28 + $0x148] sm:$0xff] %v5596_v12  ;;  %v5598_v27 = vadd.f32 %v4466_v24, %v9705_v60  ;;  %v4733_v19 = vld [vmem:[%s9306_s28 + $0x10] sm:$0xff] (%p10722_p9)  ;;  %4740 = vst [vmem:[%s9842_s30 + $0x28] sm:$0xff] (%p10722_p9), %v4739_v14  ;;  %v4761_v24 = vld [vmem:[%s9306_s28 + $0x80] sm:$0xff] (%p10722_p9) }
 0x457   : > { %v5638_v33 = vadd.f32 %v5637_v49, %v4532_v39  ;;  %v4534_v3 = vpop.f32.mrb[118].mxu1  ;;  %4603 = vst [vmem:[%s9306_s28 + $0x170] sm:$0xff] %v5597_v48  ;;  %v4745_v39 = vld [vmem:[%s9306_s28 + $0x40] sm:$0xff] (%p10722_p9)  ;;  %4734 = vst [vmem:[%s9842_s30 + $0x10] sm:$0xff] (%p10722_p9), %v4733_v19  ;;  %v4749_v12 = vld [vmem:[%s9306_s28 + $0x50] sm:$0xff] (%p10722_p9) }
 0x458   : > { %4681 = vst [vmem:[%s9306_s28 + $0x3e0] sm:$0xff] %v5636_v45  ;;  %v5640_v23 = vadd.f32 %v5639_v17, %v4534_v3  ;;  %v4536_v10 = vpop.f32.mrb[119].mxu1  ;;  %4604 = vst [vmem:[%s9306_s28 + $0x178] sm:$0xff] %v5598_v27  ;;  %v4737_v17 = vld [vmem:[%s9306_s28 + $0x20] sm:$0xff] (%p10722_p9)  ;;  %v4741_v45 = vld [vmem:[%s9306_s28 + $0x30] sm:$0xff] (%p10722_p9) }
 0x459   : > { %4682 = vst [vmem:[%s9306_s28 + $0x3e8] sm:$0xff] %v5638_v33  ;;  %v5642_v15 = vadd.f32 %v5641_v26, %v4536_v10  ;;  %4738 = vst [vmem:[%s9842_s30 + $0x20] sm:$0xff] (%p10722_p9), %v4737_v17  ;;  %v4747_v26 = vld [vmem:[%s9306_s28 + $0x48] sm:$0xff] (%p10722_p9)  ;;  %v4751_v33 = vld [vmem:[%s9306_s28 + $0x58] sm:$0xff] (%p10722_p9) }
 0x45a   : > { %4687 = vst [vmem:[%s9306_s28 + $0x410] sm:$0xff] %v5640_v23  ;;  %v4470_v46 = vpop.f32.mrb[68].mxu0  ;;  %4742 = vst [vmem:[%s9842_s30 + $0xc0] sm:$0xff] (%p10722_p9), %v4741_v45  ;;  %v4755_v3 = vld [vmem:[%s9306_s28 + $0x68] sm:$0xff] (%p10722_p9)  ;;  %v4757_v48 = vld [vmem:[%s9306_s28 + $0x70] sm:$0xff] (%p10722_p9) }
 0x45b   : > { %4688 = vst [vmem:[%s9306_s28 + $0x418] sm:$0xff] %v5642_v15  ;;  %v5599_v62 = vadd.f32 %v4470_v46, %v9702_v22  ;;  %v4472_v28 = vpop.f32.mrb[69].mxu0  ;;  %4746 = vst [vmem:[%s9842_s30 + $0xd0] sm:$0xff] (%p10722_p9), %v4745_v39  ;;  %v4759_v23 = vld [vmem:[%s9306_s28 + $0x78] sm:$0xff] (%p10722_p9)  ;;  %v4763_v10 = vld [vmem:[%s9306_s28 + $0x88] sm:$0xff] (%p10722_p9) }
 0x45c   : > { %v5600_v32 = vadd.f32 %v4472_v28, %v9705_v60  ;;  %v4474_v0 = vpop.f32.mrb[70].mxu0  ;;  %4748 = vst [vmem:[%s9842_s30 + $0xd8] sm:$0xff] (%p10722_p9), %v4747_v26  ;;  %4750 = vst [vmem:[%s9842_s30 + $0xe0] sm:$0xff] (%p10722_p9), %v4749_v12  ;;  %v4765_v27 = vld [vmem:[%s9306_s28 + $0x90] sm:$0xff] (%p10722_p9)  ;;  %v4767_v15 = vld [vmem:[%s9306_s28 + $0x98] sm:$0xff] (%p10722_p9) }
 0x45d   : > { %v4540_v59 = vpop.f32.mrb[120].mxu1  ;;  %4609 = vst [vmem:[%s9306_s28 + $0x1a0] sm:$0xff] %v5599_v62  ;;  %v5601_v21 = vadd.f32 %v4474_v0, %v9702_v22  ;;  %v4476_v11 = vpop.f32.mrb[71].mxu0  ;;  %4752 = vst [vmem:[%s9842_s30 + $0xe8] sm:$0xff] (%p10722_p9), %v4751_v33  ;;  %v4773_v46 = vld [vmem:[%s9306_s28 + $0xb0] sm:$0xff] (%p10722_p9)  ;;  %v4779_v62 = vld [vmem:[%s9306_s28 + $0xc8] sm:$0xff] (%p10722_p9) }
 0x45e   : > { %v5644_v6 = vadd.f32 %v5643_v18, %v4540_v59  ;;  %v4542_v38 = vpop.f32.mrb[121].mxu1  ;;  %4610 = vst [vmem:[%s9306_s28 + $0x1a8] sm:$0xff] %v5600_v32  ;;  %v5602_v7 = vadd.f32 %v4476_v11, %v9705_v60  ;;  %4754 = vst [vmem:[%s9842_s30 + $0x180] sm:$0xff] (%p10722_p9), %v4753_v8  ;;  %v4769_v18 = vld [vmem:[%s9306_s28 + $0xa0] sm:$0xff] (%p10722_p9)  ;;  %v4775_v59 = vld [vmem:[%s9306_s28 + $0xb8] sm:$0xff] (%p10722_p9) }
 0x45f   : > { %v5646_v54 = vadd.f32 %v5645_v42, %v4542_v38  ;;  %v4544_v35 = vpop.f32.mrb[122].mxu1  ;;  %4615 = vst [vmem:[%s9306_s28 + $0x1d0] sm:$0xff] %v5601_v21  ;;  %4756 = vst [vmem:[%s9842_s30 + $0x188] sm:$0xff] (%p10722_p9), %v4755_v3  ;;  %v4771_v42 = vld [vmem:[%s9306_s28 + $0xa8] sm:$0xff] (%p10722_p9)  ;;  %v4783_v28 = vld [vmem:[%s9306_s28 + $0xd8] sm:$0xff] (%p10722_p9) }
 0x460   : > { %4693 = vst [vmem:[%s9306_s28 + $0x440] sm:$0xff] %v5644_v6  ;;  %v5648_v5 = vadd.f32 %v5647_v16, %v4544_v35  ;;  %v4546_v51 = vpop.f32.mrb[123].mxu1  ;;  %4616 = vst [vmem:[%s9306_s28 + $0x1d8] sm:$0xff] %v5602_v7  ;;  %v4777_v16 = vld [vmem:[%s9306_s28 + $0xc0] sm:$0xff] (%p10722_p9)  ;;  %v4781_v6 = vld [vmem:[%s9306_s28 + $0xd0] sm:$0xff] (%p10722_p9) }
 0x461   : > { %4694 = vst [vmem:[%s9306_s28 + $0x448] sm:$0xff] %v5646_v54  ;;  %v5650_v44 = vadd.f32 %v5649_v34, %v4546_v51  ;;  %4758 = vst [vmem:[%s9842_s30 + $0x190] sm:$0xff] (%p10722_p9), %v4757_v48  ;;  %v4785_v38 = vld [vmem:[%s9306_s28 + $0xe0] sm:$0xff] (%p10722_p9)  ;;  %v4787_v34 = vld [vmem:[%s9306_s28 + $0xe8] sm:$0xff] (%p10722_p9) }
 0x462   : > { %4699 = vst [vmem:[%s9306_s28 + $0x470] sm:$0xff] %v5648_v5  ;;  %v4480_v50 = vpop.f32.mrb[72].mxu0  ;;  %4760 = vst [vmem:[%s9842_s30 + $0x198] sm:$0xff] (%p10722_p9), %v4759_v23  ;;  %v4789_v32 = vld [vmem:[%s9306_s28 + $0xf0] sm:$0xff] (%p10722_p9)  ;;  %v4791_v54 = vld [vmem:[%s9306_s28 + $0xf8] sm:$0xff] (%p10722_p9) }
 0x463   : > { %4700 = vst [vmem:[%s9306_s28 + $0x478] sm:$0xff] %v5650_v44  ;;  %v5603_v37 = vadd.f32 %v4480_v50, %v9702_v22  ;;  %v4482_v25 = vpop.f32.mrb[73].mxu0  ;;  %4762 = vst [vmem:[%s9842_s30 + $0x1a0] sm:$0xff] (%p10722_p9), %v4761_v24  ;;  %v4793_v0 = vld [vmem:[%s9306_s28 + $0x100] sm:$0xff] (%p10722_p9)  ;;  %v4795_v35 = vld [vmem:[%s9306_s28 + $0x108] sm:$0xff] (%p10722_p9) }
 0x464   : > { %v5604_v57 = vadd.f32 %v4482_v25, %v9705_v60  ;;  %v4484_v47 = vpop.f32.mrb[74].mxu0  ;;  %4764 = vst [vmem:[%s9842_s30 + $0x1a8] sm:$0xff] (%p10722_p9), %v4763_v10  ;;  %4766 = vst [vmem:[%s9842_s30 + $0x240] sm:$0xff] (%p10722_p9), %v4765_v27  ;;  %v4797_v21 = vld [vmem:[%s9306_s28 + $0x110] sm:$0xff] (%p10722_p9)  ;;  %v4799_v5 = vld [vmem:[%s9306_s28 + $0x118] sm:$0xff] (%p10722_p9) }
 0x465   : > { %v4550_v20 = vpop.f32.mrb[124].mxu1  ;;  %4621 = vst [vmem:[%s9306_s28 + $0x200] sm:$0xff] %v5603_v37  ;;  %v5605_v13 = vadd.f32 %v4484_v47, %v9702_v22  ;;  %v4486_v30 = vpop.f32.mrb[75].mxu0  ;;  %4768 = vst [vmem:[%s9842_s30 + $0x248] sm:$0xff] (%p10722_p9), %v4767_v15  ;;  %v4801_v11 = vld [vmem:[%s9306_s28 + $0x120] sm:$0xff] (%p10722_p9)  ;;  %v4803_v51 = vld [vmem:[%s9306_s28 + $0x128] sm:$0xff] (%p10722_p9) }
 0x466   : > { %v5652_v58 = vadd.f32 %v5651_v9, %v4550_v20  ;;  %v4552_v1 = vpop.f32.mrb[125].mxu1  ;;  %4622 = vst [vmem:[%s9306_s28 + $0x208] sm:$0xff] %v5604_v57  ;;  %v5606_v63 = vadd.f32 %v4486_v30, %v9705_v60  ;;  %4770 = vst [vmem:[%s9842_s30 + $0x250] sm:$0xff] (%p10722_p9), %v4769_v18  ;;  %v4805_v7 = vld [vmem:[%s9306_s28 + $0x130] sm:$0xff] (%p10722_p9)  ;;  %v4807_v44 = vld [vmem:[%s9306_s28 + $0x138] sm:$0xff] (%p10722_p9) }
 0x467   : > { %v5654_v56 = vadd.f32 %v5653_v41, %v4552_v1  ;;  %v4554_v52 = vpop.f32.mrb[126].mxu1  ;;  %4627 = vst [vmem:[%s9306_s28 + $0x230] sm:$0xff] %v5605_v13  ;;  %4772 = vst [vmem:[%s9842_s30 + $0x258] sm:$0xff] (%p10722_p9), %v4771_v42  ;;  %v4809_v9 = vld [vmem:[%s9306_s28 + $0x140] sm:$0xff] (%p10722_p9)  ;;  %v4811_v41 = vld [vmem:[%s9306_s28 + $0x148] sm:$0xff] (%p10722_p9) }
 0x468   : > { %4705 = vst [vmem:[%s9306_s28 + $0x4a0] sm:$0xf] %v5652_v58  ;;  %v4555_v29 = vpop.f32.mrb[127].mxu1  ;;  %4628 = vst [vmem:[%s9306_s28 + $0x238] sm:$0xff] %v5606_v63  ;;  %v4813_v50 = vld [vmem:[%s9306_s28 + $0x150] sm:$0xff] (%p10722_p9)  ;;  %v4815_v20 = vld [vmem:[%s9306_s28 + $0x158] sm:$0xff] (%p10722_p9) }
 0x469   : > { %4706 = vst [vmem:[%s9306_s28 + $0x4a8] sm:$0xf] %v5654_v56  ;;  %4774 = vst [vmem:[%s9842_s30 + $0x260] sm:$0xff] (%p10722_p9), %v4773_v46  ;;  %v4817_v37 = vld [vmem:[%s9306_s28 + $0x160] sm:$0xff] (%p10722_p9)  ;;  %v4819_v58 = vld [vmem:[%s9306_s28 + $0x168] sm:$0xff] (%p10722_p9) }
 0x46a   : > { %v4490_v40 = vpop.f32.mrb[76].mxu0  ;;  %4713 = sbr.rel (!%p10722_p9) target bundleno = 1197 (0x4ad), region = 40  ;;  %4776 = vst [vmem:[%s9842_s30 + $0x268] sm:$0xff] (%p10722_p9), %v4775_v59  ;;  %4778 = vst [vmem:[%s9842_s30 + $0x300] sm:$0xff] (%p10722_p9), %v4777_v16  ;;  %v4821_v25 = vld [vmem:[%s9306_s28 + $0x170] sm:$0xff] (%p10722_p9)  ;;  %v4823_v1 = vld [vmem:[%s9306_s28 + $0x178] sm:$0xff] (%p10722_p9) }
 0x46b   : > { %v5607_v36 = vadd.f32 %v4490_v40, %v9702_v22  ;;  %v4492_v4 = vpop.f32.mrb[77].mxu0  ;;  %4780 = vst [vmem:[%s9842_s30 + $0x308] sm:$0xff] (%p10722_p9), %v4779_v62  ;;  %4782 = vst [vmem:[%s9842_s30 + $0x310] sm:$0xff] (%p10722_p9), %v4781_v6  ;;  %v4825_v57 = vld [vmem:[%s9306_s28 + $0x180] sm:$0xff] (%p10722_p9)  ;;  %v4827_v56 = vld [vmem:[%s9306_s28 + $0x188] sm:$0xff] (%p10722_p9) }
 0x46c   : > { %v5608_v2 = vadd.f32 %v4492_v4, %v9705_v60  ;;  %v4494_v43 = vpop.f32.mrb[78].mxu0  ;;  %4784 = vst [vmem:[%s9842_s30 + $0x318] sm:$0xff] (%p10722_p9), %v4783_v28  ;;  %4786 = vst [vmem:[%s9842_s30 + $0x320] sm:$0xff] (%p10722_p9), %v4785_v38  ;;  %v4829_v47 = vld [vmem:[%s9306_s28 + $0x190] sm:$0xff] (%p10722_p9)  ;;  %v4831_v52 = vld [vmem:[%s9306_s28 + $0x198] sm:$0xff] (%p10722_p9) }
 0x46d   : > { %4633 = vst [vmem:[%s9306_s28 + $0x260] sm:$0xff] %v5607_v36  ;;  %v5609_v53 = vadd.f32 %v4494_v43, %v9702_v22  ;;  %v4496_v31 = vpop.f32.mrb[79].mxu0  ;;  %v4729_v22 = vld [vmem:[%s9306_s28] sm:$0xff] (%p10722_p9)  ;;  %4788 = vst [vmem:[%s9842_s30 + $0x328] sm:$0xff] (%p10722_p9), %v4787_v34  ;;  %v4835_v30 = vld [vmem:[%s9306_s28 + $0x1a8] sm:$0xff] (%p10722_p9) }
 0x46e   : > { %4634 = vst [vmem:[%s9306_s28 + $0x268] sm:$0xff] %v5608_v2  ;;  %v5610_v49 = vadd.f32 %v4496_v31, %v9705_v60  ;;  %v4735_v60 = vld [vmem:[%s9306_s28 + $0x18] sm:$0xff] (%p10722_p9)  ;;  %4730 = vst [vmem:[%s9842_s30] sm:$0xff] (%p10722_p9), %v4729_v22  ;;  %v4833_v13 = vld [vmem:[%s9306_s28 + $0x1a0] sm:$0xff] (%p10722_p9) }
 0x46f   : > { %4639 = vst [vmem:[%s9306_s28 + $0x290] sm:$0xff] %v5609_v53  ;;  %4736 = vst [vmem:[%s9842_s30 + $0x18] sm:$0xff] (%p10722_p9), %v4735_v60  ;;  %v4837_v29 = vld [vmem:[%s9306_s28 + $0x1b0] sm:$0xff] (%p10722_p9)  ;;  %v4839_v63 = vld [vmem:[%s9306_s28 + $0x1b8] sm:$0xff] (%p10722_p9) }
 0x470   : > { %4640 = vst [vmem:[%s9306_s28 + $0x298] sm:$0xff] %v5610_v49  ;;  %4790 = vst [vmem:[%s9842_s30 + $0x3c0] sm:$0xff] (%p10722_p9), %v4789_v32  ;;  %v4841_v40 = vld [vmem:[%s9306_s28 + $0x1c0] sm:$0xff] (%p10722_p9)  ;;  %v4843_v36 = vld [vmem:[%s9306_s28 + $0x1c8] sm:$0xff] (%p10722_p9) }
 0x471   : > { %4792 = vst [vmem:[%s9842_s30 + $0x3c8] sm:$0xff] %v4791_v54  ;;  %4794 = vst [vmem:[%s9842_s30 + $0x3d0] sm:$0xff] %v4793_v0  ;;  %v4845_v4 = vld [vmem:[%s9306_s28 + $0x1d0] sm:$0xff]  ;;  %v4847_v2 = vld [vmem:[%s9306_s28 + $0x1d8] sm:$0xff] }
 0x472   : > { %4796 = vst [vmem:[%s9842_s30 + $0x3d8] sm:$0xff] %v4795_v35  ;;  %4798 = vst [vmem:[%s9842_s30 + $0x3e0] sm:$0xff] %v4797_v21  ;;  %v4849_v43 = vld [vmem:[%s9306_s28 + $0x1e0] sm:$0xff]  ;;  %v4851_v53 = vld [vmem:[%s9306_s28 + $0x1e8] sm:$0xff] }
 0x473   : > { %4800 = vst [vmem:[%s9842_s30 + $0x3e8] sm:$0xff] %v4799_v5  ;;  %4802 = vst [vmem:[%s9842_s30 + $0x480] sm:$0xff] %v4801_v11  ;;  %v4853_v31 = vld [vmem:[%s9306_s28 + $0x1f0] sm:$0xff]  ;;  %v4855_v49 = vld [vmem:[%s9306_s28 + $0x1f8] sm:$0xff] }
 0x474   : > { %4804 = vst [vmem:[%s9842_s30 + $0x488] sm:$0xff] %v4803_v51  ;;  %4806 = vst [vmem:[%s9842_s30 + $0x490] sm:$0xff] %v4805_v7  ;;  %v4857_v22 = vld [vmem:[%s9306_s28 + $0x200] sm:$0xff]  ;;  %v4859_v55 = vld [vmem:[%s9306_s28 + $0x208] sm:$0xff] }
 0x475   : > { %4808 = vst [vmem:[%s9842_s30 + $0x498] sm:$0xff] %v4807_v44  ;;  %4810 = vst [vmem:[%s9842_s30 + $0x4a0] sm:$0xff] %v4809_v9  ;;  %v4861_v19 = vld [vmem:[%s9306_s28 + $0x210] sm:$0xff]  ;;  %v4863_v60 = vld [vmem:[%s9306_s28 + $0x218] sm:$0xff] }
 0x476   : > { %4812 = vst [vmem:[%s9842_s30 + $0x4a8] sm:$0xff] %v4811_v41  ;;  %4814 = vst [vmem:[%s9842_s30 + $0x540] sm:$0xff] %v4813_v50  ;;  %v4865_v17 = vld [vmem:[%s9306_s28 + $0x220] sm:$0xff]  ;;  %v4867_v14 = vld [vmem:[%s9306_s28 + $0x228] sm:$0xff] }
 0x477   : > { %4816 = vst [vmem:[%s9842_s30 + $0x548] sm:$0xff] %v4815_v20  ;;  %4818 = vst [vmem:[%s9842_s30 + $0x550] sm:$0xff] %v4817_v37  ;;  %v4869_v45 = vld [vmem:[%s9306_s28 + $0x230] sm:$0xff]  ;;  %v4871_v61 = vld [vmem:[%s9306_s28 + $0x238] sm:$0xff] }
 0x478   : > { %4820 = vst [vmem:[%s9842_s30 + $0x558] sm:$0xff] %v4819_v58  ;;  %4822 = vst [vmem:[%s9842_s30 + $0x560] sm:$0xff] %v4821_v25  ;;  %v4873_v39 = vld [vmem:[%s9306_s28 + $0x240] sm:$0xff]  ;;  %v4875_v26 = vld [vmem:[%s9306_s28 + $0x248] sm:$0xff] }
 0x479   : > { %4824 = vst [vmem:[%s9842_s30 + $0x568] sm:$0xff] %v4823_v1  ;;  %4826 = vst [vmem:[%s9842_s30 + $0x600] sm:$0xff] %v4825_v57  ;;  %v4877_v12 = vld [vmem:[%s9306_s28 + $0x250] sm:$0xff]  ;;  %v4879_v33 = vld [vmem:[%s9306_s28 + $0x258] sm:$0xff] }
 0x47a   : > { %4828 = vst [vmem:[%s9842_s30 + $0x608] sm:$0xff] %v4827_v56  ;;  %4830 = vst [vmem:[%s9842_s30 + $0x610] sm:$0xff] %v4829_v47  ;;  %v4881_v8 = vld [vmem:[%s9306_s28 + $0x260] sm:$0xff]  ;;  %v4883_v3 = vld [vmem:[%s9306_s28 + $0x268] sm:$0xff] }
 0x47b   : > { %4832 = vst [vmem:[%s9842_s30 + $0x618] sm:$0xff] %v4831_v52  ;;  %4834 = vst [vmem:[%s9842_s30 + $0x620] sm:$0xff] %v4833_v13  ;;  %v4885_v48 = vld [vmem:[%s9306_s28 + $0x270] sm:$0xff]  ;;  %v4887_v23 = vld [vmem:[%s9306_s28 + $0x278] sm:$0xff] }
 0x47c   : > { %4836 = vst [vmem:[%s9842_s30 + $0x628] sm:$0xff] %v4835_v30  ;;  %4838 = vst [vmem:[%s9842_s30 + $0x6c0] sm:$0xff] %v4837_v29  ;;  %v4889_v24 = vld [vmem:[%s9306_s28 + $0x280] sm:$0xff]  ;;  %v4891_v10 = vld [vmem:[%s9306_s28 + $0x288] sm:$0xff] }
 0x47d   : > { %4840 = vst [vmem:[%s9842_s30 + $0x6c8] sm:$0xff] %v4839_v63  ;;  %4842 = vst [vmem:[%s9842_s30 + $0x6d0] sm:$0xff] %v4841_v40  ;;  %v4893_v27 = vld [vmem:[%s9306_s28 + $0x290] sm:$0xff]  ;;  %v4895_v15 = vld [vmem:[%s9306_s28 + $0x298] sm:$0xff] }
 0x47e   : > { %4844 = vst [vmem:[%s9842_s30 + $0x6d8] sm:$0xff] %v4843_v36  ;;  %4846 = vst [vmem:[%s9842_s30 + $0x6e0] sm:$0xff] %v4845_v4  ;;  %v4897_v18 = vld [vmem:[%s9306_s28 + $0x2a0] sm:$0xff]  ;;  %v4899_v42 = vld [vmem:[%s9306_s28 + $0x2a8] sm:$0xff] }
 0x47f   : > { %4848 = vst [vmem:[%s9842_s30 + $0x6e8] sm:$0xff] %v4847_v2  ;;  %4850 = vst [vmem:[%s9842_s30 + $0x780] sm:$0xff] %v4849_v43  ;;  %v4901_v46 = vld [vmem:[%s9306_s28 + $0x2b0] sm:$0xff]  ;;  %v4903_v59 = vld [vmem:[%s9306_s28 + $0x2b8] sm:$0xff] }
 0x480   : > { %4852 = vst [vmem:[%s9842_s30 + $0x788] sm:$0xff] %v4851_v53  ;;  %4854 = vst [vmem:[%s9842_s30 + $0x790] sm:$0xff] %v4853_v31  ;;  %v4905_v16 = vld [vmem:[%s9306_s28 + $0x2c0] sm:$0xff]  ;;  %v4907_v62 = vld [vmem:[%s9306_s28 + $0x2c8] sm:$0xff] }
 0x481   : > { %4856 = vst [vmem:[%s9842_s30 + $0x798] sm:$0xff] %v4855_v49  ;;  %4858 = vst [vmem:[%s9842_s30 + $0x7a0] sm:$0xff] %v4857_v22  ;;  %v4909_v6 = vld [vmem:[%s9306_s28 + $0x2d0] sm:$0xff]  ;;  %v4911_v28 = vld [vmem:[%s9306_s28 + $0x2d8] sm:$0xff] }
 0x482   : > { %4860 = vst [vmem:[%s9842_s30 + $0x7a8] sm:$0xff] %v4859_v55  ;;  %4862 = vst [vmem:[%s9842_s30 + $0x840] sm:$0xff] %v4861_v19  ;;  %v4913_v38 = vld [vmem:[%s9306_s28 + $0x2e0] sm:$0xff]  ;;  %v4915_v34 = vld [vmem:[%s9306_s28 + $0x2e8] sm:$0xff] }
 0x483   : > { %4864 = vst [vmem:[%s9842_s30 + $0x848] sm:$0xff] %v4863_v60  ;;  %4866 = vst [vmem:[%s9842_s30 + $0x850] sm:$0xff] %v4865_v17  ;;  %v4917_v32 = vld [vmem:[%s9306_s28 + $0x2f0] sm:$0xff]  ;;  %v4919_v54 = vld [vmem:[%s9306_s28 + $0x2f8] sm:$0xff] }
 0x484   : > { %4868 = vst [vmem:[%s9842_s30 + $0x858] sm:$0xff] %v4867_v14  ;;  %4870 = vst [vmem:[%s9842_s30 + $0x860] sm:$0xff] %v4869_v45  ;;  %v4921_v0 = vld [vmem:[%s9306_s28 + $0x300] sm:$0xff]  ;;  %v4923_v35 = vld [vmem:[%s9306_s28 + $0x308] sm:$0xff] }
 0x485   : > { %4872 = vst [vmem:[%s9842_s30 + $0x868] sm:$0xff] %v4871_v61  ;;  %4874 = vst [vmem:[%s9842_s30 + $0x900] sm:$0xff] %v4873_v39  ;;  %v4925_v21 = vld [vmem:[%s9306_s28 + $0x310] sm:$0xff]  ;;  %v4927_v5 = vld [vmem:[%s9306_s28 + $0x318] sm:$0xff] }
 0x486   : > { %4876 = vst [vmem:[%s9842_s30 + $0x908] sm:$0xff] %v4875_v26  ;;  %4878 = vst [vmem:[%s9842_s30 + $0x910] sm:$0xff] %v4877_v12  ;;  %v4929_v11 = vld [vmem:[%s9306_s28 + $0x320] sm:$0xff]  ;;  %v4931_v51 = vld [vmem:[%s9306_s28 + $0x328] sm:$0xff] }
 0x487   : > { %4880 = vst [vmem:[%s9842_s30 + $0x918] sm:$0xff] %v4879_v33  ;;  %4882 = vst [vmem:[%s9842_s30 + $0x920] sm:$0xff] %v4881_v8  ;;  %v4933_v7 = vld [vmem:[%s9306_s28 + $0x330] sm:$0xff]  ;;  %v4935_v44 = vld [vmem:[%s9306_s28 + $0x338] sm:$0xff] }
 0x488   : > { %4884 = vst [vmem:[%s9842_s30 + $0x928] sm:$0xff] %v4883_v3  ;;  %4886 = vst [vmem:[%s9842_s30 + $0x9c0] sm:$0xff] %v4885_v48  ;;  %v4937_v9 = vld [vmem:[%s9306_s28 + $0x340] sm:$0xff]  ;;  %v4939_v41 = vld [vmem:[%s9306_s28 + $0x348] sm:$0xff] }
 0x489   : > { %4888 = vst [vmem:[%s9842_s30 + $0x9c8] sm:$0xff] %v4887_v23  ;;  %4890 = vst [vmem:[%s9842_s30 + $0x9d0] sm:$0xff] %v4889_v24  ;;  %v4941_v50 = vld [vmem:[%s9306_s28 + $0x350] sm:$0xff]  ;;  %v4943_v20 = vld [vmem:[%s9306_s28 + $0x358] sm:$0xff] }
 0x48a   : > { %4892 = vst [vmem:[%s9842_s30 + $0x9d8] sm:$0xff] %v4891_v10  ;;  %4894 = vst [vmem:[%s9842_s30 + $0x9e0] sm:$0xff] %v4893_v27  ;;  %v4945_v37 = vld [vmem:[%s9306_s28 + $0x360] sm:$0xff]  ;;  %v4947_v58 = vld [vmem:[%s9306_s28 + $0x368] sm:$0xff] }
 0x48b   : > { %4896 = vst [vmem:[%s9842_s30 + $0x9e8] sm:$0xff] %v4895_v15  ;;  %4898 = vst [vmem:[%s9842_s30 + $0xa80] sm:$0xff] %v4897_v18  ;;  %v4949_v25 = vld [vmem:[%s9306_s28 + $0x370] sm:$0xff]  ;;  %v4951_v1 = vld [vmem:[%s9306_s28 + $0x378] sm:$0xff] }
 0x48c   : > { %4900 = vst [vmem:[%s9842_s30 + $0xa88] sm:$0xff] %v4899_v42  ;;  %4902 = vst [vmem:[%s9842_s30 + $0xa90] sm:$0xff] %v4901_v46  ;;  %v4953_v57 = vld [vmem:[%s9306_s28 + $0x380] sm:$0xff]  ;;  %v4955_v56 = vld [vmem:[%s9306_s28 + $0x388] sm:$0xff] }
 0x48d   : > { %4904 = vst [vmem:[%s9842_s30 + $0xa98] sm:$0xff] %v4903_v59  ;;  %4906 = vst [vmem:[%s9842_s30 + $0xaa0] sm:$0xff] %v4905_v16  ;;  %v4957_v47 = vld [vmem:[%s9306_s28 + $0x390] sm:$0xff]  ;;  %v4959_v52 = vld [vmem:[%s9306_s28 + $0x398] sm:$0xff] }
 0x48e   : > { %4908 = vst [vmem:[%s9842_s30 + $0xaa8] sm:$0xff] %v4907_v62  ;;  %4910 = vst [vmem:[%s9842_s30 + $0xb40] sm:$0xff] %v4909_v6  ;;  %v4961_v13 = vld [vmem:[%s9306_s28 + $0x3a0] sm:$0xff]  ;;  %v4963_v30 = vld [vmem:[%s9306_s28 + $0x3a8] sm:$0xff] }
 0x48f   : > { %4912 = vst [vmem:[%s9842_s30 + $0xb48] sm:$0xff] %v4911_v28  ;;  %4914 = vst [vmem:[%s9842_s30 + $0xb50] sm:$0xff] %v4913_v38  ;;  %v4965_v29 = vld [vmem:[%s9306_s28 + $0x3b0] sm:$0xff]  ;;  %v4967_v63 = vld [vmem:[%s9306_s28 + $0x3b8] sm:$0xff] }
 0x490   : > { %4916 = vst [vmem:[%s9842_s30 + $0xb58] sm:$0xff] %v4915_v34  ;;  %4918 = vst [vmem:[%s9842_s30 + $0xb60] sm:$0xff] %v4917_v32  ;;  %v4969_v40 = vld [vmem:[%s9306_s28 + $0x3c0] sm:$0xff]  ;;  %v4971_v36 = vld [vmem:[%s9306_s28 + $0x3c8] sm:$0xff] }
 0x491   : > { %4920 = vst [vmem:[%s9842_s30 + $0xb68] sm:$0xff] %v4919_v54  ;;  %4922 = vst [vmem:[%s9842_s30 + $0xc00] sm:$0xff] %v4921_v0  ;;  %v4973_v4 = vld [vmem:[%s9306_s28 + $0x3d0] sm:$0xff]  ;;  %v4975_v2 = vld [vmem:[%s9306_s28 + $0x3d8] sm:$0xff] }
 0x492   : > { %4924 = vst [vmem:[%s9842_s30 + $0xc08] sm:$0xff] %v4923_v35  ;;  %4926 = vst [vmem:[%s9842_s30 + $0xc10] sm:$0xff] %v4925_v21  ;;  %v4977_v43 = vld [vmem:[%s9306_s28 + $0x3e0] sm:$0xff]  ;;  %v4979_v53 = vld [vmem:[%s9306_s28 + $0x3e8] sm:$0xff] }
 0x493   : > { %4928 = vst [vmem:[%s9842_s30 + $0xc18] sm:$0xff] %v4927_v5  ;;  %4930 = vst [vmem:[%s9842_s30 + $0xc20] sm:$0xff] %v4929_v11  ;;  %v4981_v31 = vld [vmem:[%s9306_s28 + $0x3f0] sm:$0xff]  ;;  %v4983_v49 = vld [vmem:[%s9306_s28 + $0x3f8] sm:$0xff] }
 0x494   : > { %4932 = vst [vmem:[%s9842_s30 + $0xc28] sm:$0xff] %v4931_v51  ;;  %4934 = vst [vmem:[%s9842_s30 + $0xcc0] sm:$0xff] %v4933_v7  ;;  %v4985_v22 = vld [vmem:[%s9306_s28 + $0x400] sm:$0xff]  ;;  %v4987_v55 = vld [vmem:[%s9306_s28 + $0x408] sm:$0xff] }
 0x495   : > { %4936 = vst [vmem:[%s9842_s30 + $0xcc8] sm:$0xff] %v4935_v44  ;;  %4938 = vst [vmem:[%s9842_s30 + $0xcd0] sm:$0xff] %v4937_v9  ;;  %v4989_v19 = vld [vmem:[%s9306_s28 + $0x410] sm:$0xff]  ;;  %v4991_v60 = vld [vmem:[%s9306_s28 + $0x418] sm:$0xff] }
 0x496   : > { %4940 = vst [vmem:[%s9842_s30 + $0xcd8] sm:$0xff] %v4939_v41  ;;  %4942 = vst [vmem:[%s9842_s30 + $0xce0] sm:$0xff] %v4941_v50  ;;  %v4993_v17 = vld [vmem:[%s9306_s28 + $0x420] sm:$0xff]  ;;  %v4995_v14 = vld [vmem:[%s9306_s28 + $0x428] sm:$0xff] }
 0x497   : > { %4944 = vst [vmem:[%s9842_s30 + $0xce8] sm:$0xff] %v4943_v20  ;;  %4946 = vst [vmem:[%s9842_s30 + $0xd80] sm:$0xff] %v4945_v37  ;;  %v4997_v45 = vld [vmem:[%s9306_s28 + $0x430] sm:$0xff]  ;;  %v4999_v61 = vld [vmem:[%s9306_s28 + $0x438] sm:$0xff] }
 0x498   : > { %4948 = vst [vmem:[%s9842_s30 + $0xd88] sm:$0xff] %v4947_v58  ;;  %4950 = vst [vmem:[%s9842_s30 + $0xd90] sm:$0xff] %v4949_v25  ;;  %v5001_v39 = vld [vmem:[%s9306_s28 + $0x440] sm:$0xff]  ;;  %v5003_v26 = vld [vmem:[%s9306_s28 + $0x448] sm:$0xff] }
 0x499   : > { %4952 = vst [vmem:[%s9842_s30 + $0xd98] sm:$0xff] %v4951_v1  ;;  %4954 = vst [vmem:[%s9842_s30 + $0xda0] sm:$0xff] %v4953_v57  ;;  %v5005_v12 = vld [vmem:[%s9306_s28 + $0x450] sm:$0xff]  ;;  %v5007_v33 = vld [vmem:[%s9306_s28 + $0x458] sm:$0xff] }
 0x49a   : > { %4956 = vst [vmem:[%s9842_s30 + $0xda8] sm:$0xff] %v4955_v56  ;;  %4958 = vst [vmem:[%s9842_s30 + $0xe40] sm:$0xff] %v4957_v47  ;;  %v5009_v8 = vld [vmem:[%s9306_s28 + $0x460] sm:$0xff]  ;;  %v5011_v3 = vld [vmem:[%s9306_s28 + $0x468] sm:$0xff] }
 0x49b   : > { %4960 = vst [vmem:[%s9842_s30 + $0xe48] sm:$0xff] %v4959_v52  ;;  %4962 = vst [vmem:[%s9842_s30 + $0xe50] sm:$0xff] %v4961_v13  ;;  %v5013_v48 = vld [vmem:[%s9306_s28 + $0x470] sm:$0xff]  ;;  %v5015_v23 = vld [vmem:[%s9306_s28 + $0x478] sm:$0xff] }
 0x49c   : > { %4964 = vst [vmem:[%s9842_s30 + $0xe58] sm:$0xff] %v4963_v30  ;;  %4966 = vst [vmem:[%s9842_s30 + $0xe60] sm:$0xff] %v4965_v29  ;;  %v5017_v24 = vld [vmem:[%s9306_s28 + $0x480] sm:$0xff]  ;;  %v5019_v10 = vld [vmem:[%s9306_s28 + $0x488] sm:$0xff] }
 0x49d   : > { %4968 = vst [vmem:[%s9842_s30 + $0xe68] sm:$0xff] %v4967_v63  ;;  %4970 = vst [vmem:[%s9842_s30 + $0xf00] sm:$0xff] %v4969_v40  ;;  %v5021_v27 = vld [vmem:[%s9306_s28 + $0x490] sm:$0xff]  ;;  %v5023_v15 = vld [vmem:[%s9306_s28 + $0x498] sm:$0xff] }
 0x49e   : > { %4972 = vst [vmem:[%s9842_s30 + $0xf08] sm:$0xff] %v4971_v36  ;;  %4974 = vst [vmem:[%s9842_s30 + $0xf10] sm:$0xff] %v4973_v4  ;;  %v5025_v18 = vld [vmem:[%s9306_s28 + $0x4a0] sm:$0xff]  ;;  %v5027_v42 = vld [vmem:[%s9306_s28 + $0x4a8] sm:$0xff] }
 0x49f   : > { %4976 = vst [vmem:[%s9842_s30 + $0xf18] sm:$0xff] %v4975_v2  ;;  %4978 = vst [vmem:[%s9842_s30 + $0xf20] sm:$0xff] %v4977_v43 }
 0x4a0   : > { %4980 = vst [vmem:[%s9842_s30 + $0xf28] sm:$0xff] %v4979_v53  ;;  %4982 = vst [vmem:[%s9842_s30 + $0xfc0] sm:$0xff] %v4981_v31 }
 0x4a1   : > { %4984 = vst [vmem:[%s9842_s30 + $0xfc8] sm:$0xff] %v4983_v49  ;;  %4986 = vst [vmem:[%s9842_s30 + $0xfd0] sm:$0xff] %v4985_v22 }
 0x4a2   : > { %4988 = vst [vmem:[%s9842_s30 + $0xfd8] sm:$0xff] %v4987_v55  ;;  %4990 = vst [vmem:[%s9842_s30 + $0xfe0] sm:$0xff] %v4989_v19 }
 0x4a3   : > { %4992 = vst [vmem:[%s9842_s30 + $0xfe8] sm:$0xff] %v4991_v60  ;;  %4994 = vst [vmem:[%s9842_s30 + $0x1080] sm:$0xff] %v4993_v17 }
 0x4a4   : > { %4996 = vst [vmem:[%s9842_s30 + $0x1088] sm:$0xff] %v4995_v14  ;;  %4998 = vst [vmem:[%s9842_s30 + $0x1090] sm:$0xff] %v4997_v45 }
 0x4a5   : > { %5000 = vst [vmem:[%s9842_s30 + $0x1098] sm:$0xff] %v4999_v61  ;;  %5002 = vst [vmem:[%s9842_s30 + $0x10a0] sm:$0xff] %v5001_v39 }
 0x4a6   : > { %5004 = vst [vmem:[%s9842_s30 + $0x10a8] sm:$0xff] %v5003_v26  ;;  %5006 = vst [vmem:[%s9842_s30 + $0x1140] sm:$0xff] %v5005_v12 }
 0x4a7   : > { %5008 = vst [vmem:[%s9842_s30 + $0x1148] sm:$0xff] %v5007_v33  ;;  %5010 = vst [vmem:[%s9842_s30 + $0x1150] sm:$0xff] %v5009_v8 }
 0x4a8   : > { %5012 = vst [vmem:[%s9842_s30 + $0x1158] sm:$0xff] %v5011_v3  ;;  %5014 = vst [vmem:[%s9842_s30 + $0x1160] sm:$0xff] %v5013_v48 }
 0x4a9   : > { %5016 = vst [vmem:[%s9842_s30 + $0x1168] sm:$0xff] %v5015_v23  ;;  %5018 = vst [vmem:[%s9842_s30 + $0x1200] sm:$0xff] %v5017_v24 }
 0x4aa   : > { %5020 = vst [vmem:[%s9842_s30 + $0x1208] sm:$0xff] %v5019_v10  ;;  %5022 = vst [vmem:[%s9842_s30 + $0x1210] sm:$0xff] %v5021_v27 }
 0x4ab   : > { %5024 = vst [vmem:[%s9842_s30 + $0x1218] sm:$0xff] %v5023_v15  ;;  %5026 = vst [vmem:[%s9842_s30 + $0x1220] sm:$0xff] %v5025_v18 }
 0x4ac   : > { %5028 = vst [vmem:[%s9842_s30 + $0x1228] sm:$0xff] %v5027_v42 }
 0x4ad PF: > { %p13_p10 = scmp.ge.s32.totalorder %s6681_s17, 6   ;;  %s10723_s12 = smov %s6625_s13 }
 0x4ae   : > { %s10724_s13 = smov %s6629_s14  ;;  %s10725_s14 = smov %s6691_s20 }
 0x4af   : > { %s10726_s15 = smov %s6681_s17  ;;  %15 = sbr.rel (!%p13_p10) target bundleno = 3 (0x3), region = 98 }
 0x4b6   :  { %5044 = vsyncpa [#allocation3], 1 }
 0x4b7   :  { %5046 = vsyncpa [#allocation3 + $0x1], 1 }

</bundles_post_ra>
